<compile_context>
chip_gen: v7x
topology: tpu7x:2x2x1
jax: 0.10.0
libtpu: 0.0.40
codegen_flags: <defaults>
</compile_context>

<pallas_src>
import jax
import jax.numpy as jnp
from jax import lax
from jax.experimental import pallas as pl
from jax.experimental.pallas import tpu as pltpu

jax.config.update("jax_default_matmul_precision", "float32")

# ---------------- configuration ----------------
EMBED = 32            # embed_size
HEADS = 4             # heads
SEQ = 8               # seq_len
FEXP = 2              # forward_expansion
BATCH = 2
CH = SEQ * HEADS      # BatchNorm1d channels for 'temporal'/'spatial'
FF = FEXP * EMBED
EPS = 1e-5            # nn.BatchNorm1d default
NEG_SLOPE = 0.01      # nn.LeakyReLU default
_HIGH = lax.Precision.HIGHEST


# ======================================================================
# Single fused kernel
# ======================================================================
def _fused_block_kernel(x_ref, wqkv_ref, bqkv_ref, e_ref, wo_ref, bo_ref,
                        w1_ref, b1_ref, w2_ref, b2_ref,
                        g1_ref, be1_ref, g2_ref, be2_ref, o_ref):
    hn, s_, e_ = e_ref.shape          # (H*N, S, E)  -- batched-attention batch dim
    ns = x_ref.shape[0]               # N * S
    n = ns // s_                      # batch
    h_ = hn // n                      # heads
    rows = hn * s_                    # total tokens (head-major row order (h, n, s))

    # ---- gather tokens into head-major row order (h, n, s) -------------------
    x2 = x_ref[...]                                                    # (N*S, H*E)
    x_hm = jnp.concatenate(
        [x2[:, h * e_:(h + 1) * e_] for h in range(h_)], axis=0)       # (rows, E)

    # ---- fused Q/K/V projection: one (rows, E) @ (E, 3E) matmul ---------------
    qkv = jnp.dot(x_hm, wqkv_ref[...], precision=_HIGH,
                  preferred_element_type=jnp.float32) + bqkv_ref[...]
    q3 = qkv[:, :e_].reshape(hn, s_, e_)
    k3 = qkv[:, e_:2 * e_].reshape(hn, s_, e_)
    v3 = qkv[:, 2 * e_:].reshape(hn, s_, e_)

    # ---- relative-position term, batched over (head, batch) ------------------
    qe = jnp.einsum('bse,bte->bst', q3, e_ref[...], precision=_HIGH,
                    preferred_element_type=jnp.float32)                # (B, S, S)

    row = lax.broadcasted_iota(jnp.int32, (s_, s_), 0)
    col = lax.broadcasted_iota(jnp.int32, (s_, s_), 1)

    # _mask_positions + _skew in closed form:
    #   s_mat[b, i, j] = qe[b, i, j + S - 1 - i]  for j <= i, else 0.
    # Diagonal selectors are built from iotas (no captured constants).
    s_mat = jnp.zeros((hn, s_, s_), jnp.float32)
    for d in range(s_):
        sel = (row - col) == d                                         # 1 where i-j==d
        s_mat = s_mat + jnp.where(sel, qe[:, :, s_ - 1 - d:s_ - d], 0.0)

    # ---- masked scaled-dot-product attention (batched over B=H*N) ------------
    qk = jnp.einsum('bqe,bke->bqk', q3, k3, precision=_HIGH,
                    preferred_element_type=jnp.float32)                # (B, S, S)
    # masked_fill(mask == 0, -1e20) with mask = triu(ones, 1)  -> fill j <= i
    qk = jnp.where(col <= row, jnp.float32(-1e20), qk)
    scaled = qk * jnp.float32(1.0 / (e_ ** 0.5))
    m = jnp.max(scaled, axis=-1, keepdims=True)
    p = jnp.exp(scaled - m)
    denom = jnp.sum(p, axis=-1, keepdims=True)
    attn = p * pl.reciprocal(denom, approx=False) + s_mat              # softmax + S

    z = jnp.einsum('bqk,bkd->bqd', attn, v3, precision=_HIGH,
                   preferred_element_type=jnp.float32).reshape(rows, e_)
    z = jnp.dot(z, wo_ref[...], precision=_HIGH,
                preferred_element_type=jnp.float32) + bo_ref[...]

    # ---- training-mode BatchNorm1d: per channel (h, s), stats over (n, e) ----
    def batchnorm(t, g_rows, b_rows):
        se = jnp.sum(t, axis=-1, keepdims=True)                        # (rows, 1)
        sq = jnp.sum(t * t, axis=-1, keepdims=True)                    # (rows, 1)
        se4 = se.reshape(h_, n, s_, 1)
        sq4 = sq.reshape(h_, n, s_, 1)
        tot, totq = se4[:, 0:1], sq4[:, 0:1]
        for i in range(1, n):                                          # static, tiny n
            tot = tot + se4[:, i:i + 1]
            totq = totq + sq4[:, i:i + 1]
        inv_cnt = jnp.float32(1.0 / (n * e_))
        mean = tot * inv_cnt                                           # (h,1,s,1)
        var = totq * inv_cnt - mean * mean                             # biased var
        rstd = lax.rsqrt(var + jnp.float32(EPS))
        mean_r = jnp.concatenate([mean] * n, axis=1).reshape(rows, 1)
        rstd_r = jnp.concatenate([rstd] * n, axis=1).reshape(rows, 1)
        return (t - mean_r) * rstd_r * g_rows + b_rows

    h1 = batchnorm(z + x_hm, g1_ref[...], be1_ref[...])                # (rows, E)

    # ---- feed-forward (Linear -> LeakyReLU -> Linear), one matmul each -------
    f = jnp.dot(h1, w1_ref[...], precision=_HIGH,
                preferred_element_type=jnp.float32) + b1_ref[...]
    f = jnp.where(f >= 0, f, jnp.float32(NEG_SLOPE) * f)
    f = jnp.dot(f, w2_ref[...], precision=_HIGH,
                preferred_element_type=jnp.float32) + b2_ref[...]

    y = batchnorm(f + h1, g2_ref[...], be2_ref[...])                   # rows (h, n, s)

    # ---- scatter head-major rows back to lane-dense (N*S, H*E), one store ----
    out2d = jnp.concatenate(
        [y[h * n * s_:(h + 1) * n * s_, :] for h in range(h_)], axis=1)
    o_ref[...] = out2d.astype(o_ref.dtype)


def _full_spec(shape):
    zeros = (0,) * len(shape)
    return pl.BlockSpec(shape, lambda i, z=zeros: z)


# ======================================================================
# Full TransformerBlock forward (single fused pallas_call)
# ======================================================================
@jax.jit
def transformer_block_forward(x, params):
    n, ch, e = x.shape
    s, h = SEQ, HEADS
    assert ch == s * h and e == EMBED

    # Free metadata reshape: (N, S*H, E) is memory-identical to (N*S, H*E).
    x2 = x.reshape(n * s, h * e)

    # Parameter packing / weight-side prep.
    wqkv = jnp.concatenate([params["wq"], params["wk"], params["wv"]], axis=1)  # (E, 3E)
    bqkv = jnp.concatenate([params["bq"], params["bk"], params["bv"]], axis=1)  # (1, 3E)

    # Relative embedding pre-broadcast over batch (batched-attention index b = h*N + i).
    e_b = jnp.broadcast_to(params["rel_E"][:, None], (h, n, s, e)).reshape(h * n, s, e)

    def to_rows(v):  # per-channel (c = s*H + h) -> per-row (h, n, s) column vector
        hs = v.reshape(s, h).T                                         # (H, S)
        return jnp.broadcast_to(hs[:, None, :], (h, n, s)).reshape(h * n * s, 1)

    args = (x2, wqkv, bqkv, e_b, params["wo"], params["bo"],
            params["w1"], params["b1"], params["w2"], params["b2"],
            to_rows(params["g1"]), to_rows(params["be1"]),
            to_rows(params["g2"]), to_rows(params["be2"]))

    out2 = pl.pallas_call(
        _fused_block_kernel,
        grid=(1,),
        in_specs=[_full_spec(a.shape) for a in args],
        out_specs=_full_spec((n * s, h * e)),
        out_shape=jax.ShapeDtypeStruct((n * s, h * e), jnp.float32),
        compiler_params=pltpu.CompilerParams(
            dimension_semantics=("arbitrary",)),
    )(*args)

    # Free metadata reshape back to the module's (N, S*H, E) layout.
    return out2.reshape(n, ch, e)


# ======================================================================
# Deterministic parameter init (synthetic, PyTorch-like shapes).
# ======================================================================
def init_params(key):
    ks = jax.random.split(key, 11)

    def linear(k, fin, fout):
        kw, kb = jax.random.split(k)
        bound = 1.0 / (fin ** 0.5)
        w = jax.random.uniform(kw, (fin, fout), jnp.float32, -bound, bound)
        b = jax.random.uniform(kb, (1, fout), jnp.float32, -bound, bound)
        return w, b

    wq, bq = linear(ks[0], EMBED, EMBED)
    wk, bk = linear(ks[1], EMBED, EMBED)
    wv, bv = linear(ks[2], EMBED, EMBED)
    wo, bo = linear(ks[3], EMBED, EMBED)
    w1, b1 = linear(ks[4], EMBED, FF)
    w2, b2 = linear(ks[5], FF, EMBED)
    rel_e = jax.random.normal(ks[6], (HEADS, SEQ, EMBED), jnp.float32)  # torch.randn
    g1 = jax.random.uniform(ks[7], (CH,), jnp.float32, 0.5, 1.5)
    be1 = jax.random.uniform(ks[8], (CH,), jnp.float32, -0.5, 0.5)
    g2 = jax.random.uniform(ks[9], (CH,), jnp.float32, 0.5, 1.5)
    be2 = jax.random.uniform(ks[10], (CH,), jnp.float32, -0.5, 0.5)
    return dict(
        wq=wq, bq=bq, wk=wk, bk=bk, wv=wv, bv=bv, wo=wo, bo=bo,
        w1=w1, b1=b1, w2=w2, b2=b2, rel_E=rel_e,
        g1=g1, be1=be1, g2=g2, be2=be2,
    )


# ======================================================================
# Pure-JAX reference (mirrors the PyTorch forward exactly) for validation
# ======================================================================
def reference_forward(x, p):
    n = x.shape[0]
    s, h, e = SEQ, HEADS, EMBED
    q = x @ p["wq"] + p["bq"]
    k = x @ p["wk"] + p["bk"]
    v = x @ p["wv"] + p["bv"]
    q = q.reshape(n, s, h, e)
    k = k.reshape(n, s, h, e)
    v = v.reshape(n, s, h, e)

    qt = jnp.transpose(q, (0, 2, 1, 3))                          # (N,H,S,E)
    qe = jnp.einsum('nhse,hte->nhst', qt, p["rel_E"])            # (N,H,S,S)
    ii = jnp.arange(s)[:, None]
    jj = jnp.arange(s)[None, :]
    qe = jnp.where(jj < s - 1 - ii, 0.0, qe)                     # _mask_positions
    padded = jnp.pad(qe, ((0, 0), (0, 0), (0, 0), (1, 0)))       # _skew
    skew = padded.reshape(n, h, s + 1, s)[:, :, 1:, :]

    qk = jnp.einsum('nqhd,nkhd->nhqk', q, k)
    qk = jnp.where(jj <= ii, -1e20, qk)                          # masked_fill(mask==0,...)
    attn = jax.nn.softmax(qk / (e ** 0.5), axis=-1) + skew

    z = jnp.einsum('nhql,nlhd->nqhd', attn, v).reshape(n, s * h, e)
    z = z @ p["wo"] + p["bo"]

    def bn(hx, g, b):
        m = jnp.mean(hx, axis=(0, 2), keepdims=True)
        var = jnp.mean(hx * hx, axis=(0, 2), keepdims=True) - m * m
        return (hx - m) * lax.rsqrt(var + EPS) * g.reshape(1, -1, 1) + b.reshape(1, -1, 1)

    h1 = bn(z + x, p["g1"], p["be1"])
    f = h1 @ p["w1"] + p["b1"]
    f = jnp.where(f >= 0, f, NEG_SLOPE * f)
    f = f @ p["w2"] + p["b2"]
    return bn(f + h1, p["g2"], p["be2"])


if __name__ == "__main__":
    key = jax.random.PRNGKey(0)
    k_x, k_p = jax.random.split(key)
    params = init_params(k_p)
    x = jax.random.normal(k_x, (BATCH, SEQ * HEADS, EMBED), jnp.float32)

    out = jax.block_until_ready(transformer_block_forward(x, params))
    assert out.shape == (BATCH, SEQ * HEADS, EMBED)

    ref = reference_forward(x, params)
    err = float(jnp.max(jnp.abs(out - ref)))
    assert err < 5e-3, f"mismatch vs pure-JAX reference: max abs err = {err}"
    print("KERNEL_OK")
</pallas_src>

<mosaic_0001>
module attributes {stable_mosaic.version = 11 : i64} {
  func.func @_fused_block_kernel(%arg0: i32, %arg1: memref<16x128xf32, #tpu.memory_space<vmem>>, %arg2: memref<32x96xf32, #tpu.memory_space<vmem>>, %arg3: memref<1x96xf32, #tpu.memory_space<vmem>>, %arg4: memref<8x8x32xf32, #tpu.memory_space<vmem>>, %arg5: memref<32x32xf32, #tpu.memory_space<vmem>>, %arg6: memref<1x32xf32, #tpu.memory_space<vmem>>, %arg7: memref<32x64xf32, #tpu.memory_space<vmem>>, %arg8: memref<1x64xf32, #tpu.memory_space<vmem>>, %arg9: memref<64x32xf32, #tpu.memory_space<vmem>>, %arg10: memref<1x32xf32, #tpu.memory_space<vmem>>, %arg11: memref<64x1xf32, #tpu.memory_space<vmem>>, %arg12: memref<64x1xf32, #tpu.memory_space<vmem>>, %arg13: memref<64x1xf32, #tpu.memory_space<vmem>>, %arg14: memref<64x1xf32, #tpu.memory_space<vmem>>, %arg15: memref<16x128xf32, #tpu.memory_space<vmem>>) attributes {dimension_semantics = [#tpu.dimension_semantics<arbitrary>], iteration_bounds = array<i64: 1>, scalar_prefetch = 0 : i64, scratch_operands = 0 : i64, tpu.core_type = #tpu.core_type<tc>, window_params = [{pipeline_mode = #tpu.pipeline_mode<synchronous>, transform_indices = @transform_0, window_bounds = array<i64: 16, 128>}, {pipeline_mode = #tpu.pipeline_mode<synchronous>, transform_indices = @transform_1, window_bounds = array<i64: 32, 96>}, {pipeline_mode = #tpu.pipeline_mode<synchronous>, transform_indices = @transform_2, window_bounds = array<i64: 1, 96>}, {pipeline_mode = #tpu.pipeline_mode<synchronous>, transform_indices = @transform_3, window_bounds = array<i64: 8, 8, 32>}, {pipeline_mode = #tpu.pipeline_mode<synchronous>, transform_indices = @transform_4, window_bounds = array<i64: 32, 32>}, {pipeline_mode = #tpu.pipeline_mode<synchronous>, transform_indices = @transform_5, window_bounds = array<i64: 1, 32>}, {pipeline_mode = #tpu.pipeline_mode<synchronous>, transform_indices = @transform_6, window_bounds = array<i64: 32, 64>}, {pipeline_mode = #tpu.pipeline_mode<synchronous>, transform_indices = @transform_7, window_bounds = array<i64: 1, 64>}, {pipeline_mode = #tpu.pipeline_mode<synchronous>, transform_indices = @transform_8, window_bounds = array<i64: 64, 32>}, {pipeline_mode = #tpu.pipeline_mode<synchronous>, transform_indices = @transform_9, window_bounds = array<i64: 1, 32>}, {pipeline_mode = #tpu.pipeline_mode<synchronous>, transform_indices = @transform_10, window_bounds = array<i64: 64, 1>}, {pipeline_mode = #tpu.pipeline_mode<synchronous>, transform_indices = @transform_11, window_bounds = array<i64: 64, 1>}, {pipeline_mode = #tpu.pipeline_mode<synchronous>, transform_indices = @transform_12, window_bounds = array<i64: 64, 1>}, {pipeline_mode = #tpu.pipeline_mode<synchronous>, transform_indices = @transform_13, window_bounds = array<i64: 64, 1>}, {pipeline_mode = #tpu.pipeline_mode<synchronous>, transform_indices = @transform_14, window_bounds = array<i64: 16, 128>}]} {
    %c0 = arith.constant 0 : index
    %c0_0 = arith.constant 0 : index
    %0 = vector.load %arg1[%c0, %c0_0] : memref<16x128xf32, #tpu.memory_space<vmem>>, vector<16x128xf32>
    %1 = vector.extract_strided_slice %0 {offsets = [0, 0], sizes = [16, 32], strides = [1, 1]} : vector<16x128xf32> to vector<16x32xf32>
    %2 = vector.extract_strided_slice %0 {offsets = [0, 32], sizes = [16, 32], strides = [1, 1]} : vector<16x128xf32> to vector<16x32xf32>
    %3 = vector.extract_strided_slice %0 {offsets = [0, 64], sizes = [16, 32], strides = [1, 1]} : vector<16x128xf32> to vector<16x32xf32>
    %4 = vector.extract_strided_slice %0 {offsets = [0, 96], sizes = [16, 32], strides = [1, 1]} : vector<16x128xf32> to vector<16x32xf32>
    %5 = tpu.concatenate %1, %2, %3, %4 in 0 : vector<16x32xf32>, vector<16x32xf32>, vector<16x32xf32>, vector<16x32xf32> -> vector<64x32xf32>
    %c0_1 = arith.constant 0 : index
    %c0_2 = arith.constant 0 : index
    %6 = vector.load %arg2[%c0_1, %c0_2] : memref<32x96xf32, #tpu.memory_space<vmem>>, vector<32x96xf32>
    %cst = arith.constant dense<0.000000e+00> : vector<64x96xf32>
    %7 = tpu.matmul %5, %6, %cst {dimension_numbers = #tpu.dot_dimension_numbers<[1], [0], [0], [1], [0, 0, 1, 1], [], []>, precision = #tpu.contract_precision<fp32>} : vector<64x32xf32>, vector<32x96xf32>, vector<64x96xf32> -> vector<64x96xf32>
    %c0_3 = arith.constant 0 : index
    %c0_4 = arith.constant 0 : index
    %8 = vector.load %arg3[%c0_3, %c0_4] : memref<1x96xf32, #tpu.memory_space<vmem>>, vector<1x96xf32>
    %9 = vector.broadcast %8 : vector<1x96xf32> to vector<64x96xf32>
    %10 = arith.addf %7, %9 : vector<64x96xf32>
    %11 = vector.extract_strided_slice %10 {offsets = [0, 0], sizes = [64, 32], strides = [1, 1]} : vector<64x96xf32> to vector<64x32xf32>
    %12 = vector.shape_cast %11 : vector<64x32xf32> to vector<8x8x32xf32>
    %13 = vector.extract_strided_slice %10 {offsets = [0, 32], sizes = [64, 32], strides = [1, 1]} : vector<64x96xf32> to vector<64x32xf32>
    %14 = vector.shape_cast %13 : vector<64x32xf32> to vector<8x8x32xf32>
    %15 = vector.extract_strided_slice %10 {offsets = [0, 64], sizes = [64, 32], strides = [1, 1]} : vector<64x96xf32> to vector<64x32xf32>
    %16 = vector.shape_cast %15 : vector<64x32xf32> to vector<8x8x32xf32>
    %c0_5 = arith.constant 0 : index
    %c0_6 = arith.constant 0 : index
    %c0_7 = arith.constant 0 : index
    %17 = vector.load %arg4[%c0_5, %c0_6, %c0_7] : memref<8x8x32xf32, #tpu.memory_space<vmem>>, vector<8x8x32xf32>
    "tpu.trace_start"() <{level = 10 : i32, message = "bse,bte->bst"}> : () -> ()
    %cst_8 = arith.constant dense<0.000000e+00> : vector<8x8x8xf32>
    %18 = tpu.matmul %12, %17, %cst_8 {dimension_numbers = #tpu.dot_dimension_numbers<[2], [2], [1], [1], [0, 0, 0, 1, 1, 1], [0], [0]>, precision = #tpu.contract_precision<fp32>} : vector<8x8x32xf32>, vector<8x8x32xf32>, vector<8x8x8xf32> -> vector<8x8x8xf32>
    "tpu.trace_stop"() : () -> ()
    %19 = tpu.iota {dimensions = array<i32: 0>} : vector<8x8xi32>
    %20 = tpu.iota {dimensions = array<i32: 1>} : vector<8x8xi32>
    %cst_9 = arith.constant 0.000000e+00 : f32
    %21 = vector.broadcast %cst_9 : f32 to vector<8x8x8xf32>
    %22 = arith.subi %19, %20 : vector<8x8xi32>
    %c0_i32 = arith.constant 0 : i32
    %23 = vector.broadcast %c0_i32 : i32 to vector<8x8xi32>
    %24 = arith.cmpi eq, %22, %23 : vector<8x8xi32>
    %25 = vector.extract_strided_slice %18 {offsets = [0, 0, 7], sizes = [8, 8, 1], strides = [1, 1, 1]} : vector<8x8x8xf32> to vector<8x8x1xf32>
    %cst_10 = arith.constant 0.000000e+00 : f32
    %26 = vector.shape_cast %24 : vector<8x8xi1> to vector<1x8x8xi1>
    %27 = vector.broadcast %26 : vector<1x8x8xi1> to vector<8x8x8xi1>
    %28 = vector.shape_cast %25 : vector<8x8x1xf32> to vector<8x8x1xf32>
    %29 = vector.broadcast %28 : vector<8x8x1xf32> to vector<8x8x8xf32>
    %30 = vector.broadcast %cst_10 : f32 to vector<8x8x8xf32>
    %31 = arith.select %27, %29, %30 : vector<8x8x8xi1>, vector<8x8x8xf32>
    %32 = arith.addf %21, %31 : vector<8x8x8xf32>
    %33 = arith.subi %19, %20 : vector<8x8xi32>
    %c1_i32 = arith.constant 1 : i32
    %34 = vector.broadcast %c1_i32 : i32 to vector<8x8xi32>
    %35 = arith.cmpi eq, %33, %34 : vector<8x8xi32>
    %36 = vector.extract_strided_slice %18 {offsets = [0, 0, 6], sizes = [8, 8, 1], strides = [1, 1, 1]} : vector<8x8x8xf32> to vector<8x8x1xf32>
    %cst_11 = arith.constant 0.000000e+00 : f32
    %37 = vector.shape_cast %35 : vector<8x8xi1> to vector<1x8x8xi1>
    %38 = vector.broadcast %37 : vector<1x8x8xi1> to vector<8x8x8xi1>
    %39 = vector.shape_cast %36 : vector<8x8x1xf32> to vector<8x8x1xf32>
    %40 = vector.broadcast %39 : vector<8x8x1xf32> to vector<8x8x8xf32>
    %41 = vector.broadcast %cst_11 : f32 to vector<8x8x8xf32>
    %42 = arith.select %38, %40, %41 : vector<8x8x8xi1>, vector<8x8x8xf32>
    %43 = arith.addf %32, %42 : vector<8x8x8xf32>
    %44 = arith.subi %19, %20 : vector<8x8xi32>
    %c2_i32 = arith.constant 2 : i32
    %45 = vector.broadcast %c2_i32 : i32 to vector<8x8xi32>
    %46 = arith.cmpi eq, %44, %45 : vector<8x8xi32>
    %47 = vector.extract_strided_slice %18 {offsets = [0, 0, 5], sizes = [8, 8, 1], strides = [1, 1, 1]} : vector<8x8x8xf32> to vector<8x8x1xf32>
    %cst_12 = arith.constant 0.000000e+00 : f32
    %48 = vector.shape_cast %46 : vector<8x8xi1> to vector<1x8x8xi1>
    %49 = vector.broadcast %48 : vector<1x8x8xi1> to vector<8x8x8xi1>
    %50 = vector.shape_cast %47 : vector<8x8x1xf32> to vector<8x8x1xf32>
    %51 = vector.broadcast %50 : vector<8x8x1xf32> to vector<8x8x8xf32>
    %52 = vector.broadcast %cst_12 : f32 to vector<8x8x8xf32>
    %53 = arith.select %49, %51, %52 : vector<8x8x8xi1>, vector<8x8x8xf32>
    %54 = arith.addf %43, %53 : vector<8x8x8xf32>
    %55 = arith.subi %19, %20 : vector<8x8xi32>
    %c3_i32 = arith.constant 3 : i32
    %56 = vector.broadcast %c3_i32 : i32 to vector<8x8xi32>
    %57 = arith.cmpi eq, %55, %56 : vector<8x8xi32>
    %58 = vector.extract_strided_slice %18 {offsets = [0, 0, 4], sizes = [8, 8, 1], strides = [1, 1, 1]} : vector<8x8x8xf32> to vector<8x8x1xf32>
    %cst_13 = arith.constant 0.000000e+00 : f32
    %59 = vector.shape_cast %57 : vector<8x8xi1> to vector<1x8x8xi1>
    %60 = vector.broadcast %59 : vector<1x8x8xi1> to vector<8x8x8xi1>
    %61 = vector.shape_cast %58 : vector<8x8x1xf32> to vector<8x8x1xf32>
    %62 = vector.broadcast %61 : vector<8x8x1xf32> to vector<8x8x8xf32>
    %63 = vector.broadcast %cst_13 : f32 to vector<8x8x8xf32>
    %64 = arith.select %60, %62, %63 : vector<8x8x8xi1>, vector<8x8x8xf32>
    %65 = arith.addf %54, %64 : vector<8x8x8xf32>
    %66 = arith.subi %19, %20 : vector<8x8xi32>
    %c4_i32 = arith.constant 4 : i32
    %67 = vector.broadcast %c4_i32 : i32 to vector<8x8xi32>
    %68 = arith.cmpi eq, %66, %67 : vector<8x8xi32>
    %69 = vector.extract_strided_slice %18 {offsets = [0, 0, 3], sizes = [8, 8, 1], strides = [1, 1, 1]} : vector<8x8x8xf32> to vector<8x8x1xf32>
    %cst_14 = arith.constant 0.000000e+00 : f32
    %70 = vector.shape_cast %68 : vector<8x8xi1> to vector<1x8x8xi1>
    %71 = vector.broadcast %70 : vector<1x8x8xi1> to vector<8x8x8xi1>
    %72 = vector.shape_cast %69 : vector<8x8x1xf32> to vector<8x8x1xf32>
    %73 = vector.broadcast %72 : vector<8x8x1xf32> to vector<8x8x8xf32>
    %74 = vector.broadcast %cst_14 : f32 to vector<8x8x8xf32>
    %75 = arith.select %71, %73, %74 : vector<8x8x8xi1>, vector<8x8x8xf32>
    %76 = arith.addf %65, %75 : vector<8x8x8xf32>
    %77 = arith.subi %19, %20 : vector<8x8xi32>
    %c5_i32 = arith.constant 5 : i32
    %78 = vector.broadcast %c5_i32 : i32 to vector<8x8xi32>
    %79 = arith.cmpi eq, %77, %78 : vector<8x8xi32>
    %80 = vector.extract_strided_slice %18 {offsets = [0, 0, 2], sizes = [8, 8, 1], strides = [1, 1, 1]} : vector<8x8x8xf32> to vector<8x8x1xf32>
    %cst_15 = arith.constant 0.000000e+00 : f32
    %81 = vector.shape_cast %79 : vector<8x8xi1> to vector<1x8x8xi1>
    %82 = vector.broadcast %81 : vector<1x8x8xi1> to vector<8x8x8xi1>
    %83 = vector.shape_cast %80 : vector<8x8x1xf32> to vector<8x8x1xf32>
    %84 = vector.broadcast %83 : vector<8x8x1xf32> to vector<8x8x8xf32>
    %85 = vector.broadcast %cst_15 : f32 to vector<8x8x8xf32>
    %86 = arith.select %82, %84, %85 : vector<8x8x8xi1>, vector<8x8x8xf32>
    %87 = arith.addf %76, %86 : vector<8x8x8xf32>
    %88 = arith.subi %19, %20 : vector<8x8xi32>
    %c6_i32 = arith.constant 6 : i32
    %89 = vector.broadcast %c6_i32 : i32 to vector<8x8xi32>
    %90 = arith.cmpi eq, %88, %89 : vector<8x8xi32>
    %91 = vector.extract_strided_slice %18 {offsets = [0, 0, 1], sizes = [8, 8, 1], strides = [1, 1, 1]} : vector<8x8x8xf32> to vector<8x8x1xf32>
    %cst_16 = arith.constant 0.000000e+00 : f32
    %92 = vector.shape_cast %90 : vector<8x8xi1> to vector<1x8x8xi1>
    %93 = vector.broadcast %92 : vector<1x8x8xi1> to vector<8x8x8xi1>
    %94 = vector.shape_cast %91 : vector<8x8x1xf32> to vector<8x8x1xf32>
    %95 = vector.broadcast %94 : vector<8x8x1xf32> to vector<8x8x8xf32>
    %96 = vector.broadcast %cst_16 : f32 to vector<8x8x8xf32>
    %97 = arith.select %93, %95, %96 : vector<8x8x8xi1>, vector<8x8x8xf32>
    %98 = arith.addf %87, %97 : vector<8x8x8xf32>
    %99 = arith.subi %19, %20 : vector<8x8xi32>
    %c7_i32 = arith.constant 7 : i32
    %100 = vector.broadcast %c7_i32 : i32 to vector<8x8xi32>
    %101 = arith.cmpi eq, %99, %100 : vector<8x8xi32>
    %102 = vector.extract_strided_slice %18 {offsets = [0, 0, 0], sizes = [8, 8, 1], strides = [1, 1, 1]} : vector<8x8x8xf32> to vector<8x8x1xf32>
    %cst_17 = arith.constant 0.000000e+00 : f32
    %103 = vector.shape_cast %101 : vector<8x8xi1> to vector<1x8x8xi1>
    %104 = vector.broadcast %103 : vector<1x8x8xi1> to vector<8x8x8xi1>
    %105 = vector.shape_cast %102 : vector<8x8x1xf32> to vector<8x8x1xf32>
    %106 = vector.broadcast %105 : vector<8x8x1xf32> to vector<8x8x8xf32>
    %107 = vector.broadcast %cst_17 : f32 to vector<8x8x8xf32>
    %108 = arith.select %104, %106, %107 : vector<8x8x8xi1>, vector<8x8x8xf32>
    %109 = arith.addf %98, %108 : vector<8x8x8xf32>
    "tpu.trace_start"() <{level = 10 : i32, message = "bqe,bke->bqk"}> : () -> ()
    %cst_18 = arith.constant dense<0.000000e+00> : vector<8x8x8xf32>
    %110 = tpu.matmul %12, %14, %cst_18 {dimension_numbers = #tpu.dot_dimension_numbers<[2], [2], [1], [1], [0, 0, 0, 1, 1, 1], [0], [0]>, precision = #tpu.contract_precision<fp32>} : vector<8x8x32xf32>, vector<8x8x32xf32>, vector<8x8x8xf32> -> vector<8x8x8xf32>
    "tpu.trace_stop"() : () -> ()
    %111 = arith.cmpi sle, %20, %19 : vector<8x8xi32>
    %cst_19 = arith.constant -1.000000e+20 : f32
    %112 = vector.shape_cast %111 : vector<8x8xi1> to vector<1x8x8xi1>
    %113 = vector.broadcast %112 : vector<1x8x8xi1> to vector<8x8x8xi1>
    %114 = vector.broadcast %cst_19 : f32 to vector<8x8x8xf32>
    %115 = arith.select %113, %114, %110 : vector<8x8x8xi1>, vector<8x8x8xf32>
    %cst_20 = arith.constant 0.176776692 : f32
    %116 = vector.broadcast %cst_20 : f32 to vector<8x8x8xf32>
    %117 = arith.mulf %115, %116 : vector<8x8x8xf32>
    %cst_21 = arith.constant dense<0xFF800000> : vector<8x8xf32>
    %118 = vector.multi_reduction <maximumf>, %117, %cst_21 [2] : vector<8x8x8xf32> to vector<8x8xf32>
    %119 = vector.shape_cast %118 : vector<8x8xf32> to vector<8x8x1xf32>
    %120 = vector.broadcast %119 : vector<8x8x1xf32> to vector<8x8x8xf32>
    %121 = arith.subf %117, %120 : vector<8x8x8xf32>
    %122 = math.exp %121 : vector<8x8x8xf32>
    %cst_22 = arith.constant dense<0.000000e+00> : vector<8x8xf32>
    %123 = vector.multi_reduction <add>, %122, %cst_22 [2] : vector<8x8x8xf32> to vector<8x8xf32>
    %124 = vector.shape_cast %123 : vector<8x8xf32> to vector<8x8x1xf32>
    %125 = tpu.reciprocal %124 : vector<8x8x1xf32> -> vector<8x8x1xf32>
    %126 = vector.broadcast %125 : vector<8x8x1xf32> to vector<8x8x8xf32>
    %127 = arith.mulf %122, %126 : vector<8x8x8xf32>
    %128 = arith.addf %127, %109 : vector<8x8x8xf32>
    "tpu.trace_start"() <{level = 10 : i32, message = "bqk,bkd->bqd"}> : () -> ()
    %cst_23 = arith.constant dense<0.000000e+00> : vector<8x8x32xf32>
    %129 = tpu.matmul %128, %16, %cst_23 {dimension_numbers = #tpu.dot_dimension_numbers<[2], [1], [1], [2], [0, 0, 0, 1, 1, 2], [0], [0]>, precision = #tpu.contract_precision<fp32>} : vector<8x8x8xf32>, vector<8x8x32xf32>, vector<8x8x32xf32> -> vector<8x8x32xf32>
    "tpu.trace_stop"() : () -> ()
    %130 = vector.shape_cast %129 : vector<8x8x32xf32> to vector<64x32xf32>
    %c0_24 = arith.constant 0 : index
    %c0_25 = arith.constant 0 : index
    %131 = vector.load %arg5[%c0_24, %c0_25] : memref<32x32xf32, #tpu.memory_space<vmem>>, vector<32x32xf32>
    %cst_26 = arith.constant dense<0.000000e+00> : vector<64x32xf32>
    %132 = tpu.matmul %130, %131, %cst_26 {dimension_numbers = #tpu.dot_dimension_numbers<[1], [0], [0], [1], [0, 0, 1, 1], [], []>, precision = #tpu.contract_precision<fp32>} : vector<64x32xf32>, vector<32x32xf32>, vector<64x32xf32> -> vector<64x32xf32>
    %c0_27 = arith.constant 0 : index
    %c0_28 = arith.constant 0 : index
    %133 = vector.load %arg6[%c0_27, %c0_28] : memref<1x32xf32, #tpu.memory_space<vmem>>, vector<1x32xf32>
    %134 = vector.broadcast %133 : vector<1x32xf32> to vector<64x32xf32>
    %135 = arith.addf %132, %134 : vector<64x32xf32>
    %136 = arith.addf %135, %5 : vector<64x32xf32>
    %c0_29 = arith.constant 0 : index
    %c0_30 = arith.constant 0 : index
    %137 = vector.load %arg11[%c0_29, %c0_30] : memref<64x1xf32, #tpu.memory_space<vmem>>, vector<64x1xf32>
    %c0_31 = arith.constant 0 : index
    %c0_32 = arith.constant 0 : index
    %138 = vector.load %arg12[%c0_31, %c0_32] : memref<64x1xf32, #tpu.memory_space<vmem>>, vector<64x1xf32>
    %cst_33 = arith.constant dense<0.000000e+00> : vector<64xf32>
    %139 = vector.multi_reduction <add>, %136, %cst_33 [1] : vector<64x32xf32> to vector<64xf32>
    %140 = vector.shape_cast %139 : vector<64xf32> to vector<64x1xf32>
    %141 = arith.mulf %136, %136 : vector<64x32xf32>
    %cst_34 = arith.constant dense<0.000000e+00> : vector<64xf32>
    %142 = vector.multi_reduction <add>, %141, %cst_34 [1] : vector<64x32xf32> to vector<64xf32>
    %143 = vector.shape_cast %142 : vector<64xf32> to vector<64x1xf32>
    %144 = vector.shape_cast %140 : vector<64x1xf32> to vector<4x2x8x1xf32>
    %145 = vector.shape_cast %143 : vector<64x1xf32> to vector<4x2x8x1xf32>
    %146 = vector.extract_strided_slice %144 {offsets = [0, 0, 0, 0], sizes = [4, 1, 8, 1], strides = [1, 1, 1, 1]} : vector<4x2x8x1xf32> to vector<4x1x8x1xf32>
    %147 = vector.extract_strided_slice %145 {offsets = [0, 0, 0, 0], sizes = [4, 1, 8, 1], strides = [1, 1, 1, 1]} : vector<4x2x8x1xf32> to vector<4x1x8x1xf32>
    %148 = vector.extract_strided_slice %144 {offsets = [0, 1, 0, 0], sizes = [4, 1, 8, 1], strides = [1, 1, 1, 1]} : vector<4x2x8x1xf32> to vector<4x1x8x1xf32>
    %149 = arith.addf %146, %148 : vector<4x1x8x1xf32>
    %150 = vector.extract_strided_slice %145 {offsets = [0, 1, 0, 0], sizes = [4, 1, 8, 1], strides = [1, 1, 1, 1]} : vector<4x2x8x1xf32> to vector<4x1x8x1xf32>
    %151 = arith.addf %147, %150 : vector<4x1x8x1xf32>
    %cst_35 = arith.constant 1.562500e-02 : f32
    %152 = vector.broadcast %cst_35 : f32 to vector<4x1x8x1xf32>
    %153 = arith.mulf %149, %152 : vector<4x1x8x1xf32>
    %cst_36 = arith.constant 1.562500e-02 : f32
    %154 = vector.broadcast %cst_36 : f32 to vector<4x1x8x1xf32>
    %155 = arith.mulf %151, %154 : vector<4x1x8x1xf32>
    %156 = arith.mulf %153, %153 : vector<4x1x8x1xf32>
    %157 = arith.subf %155, %156 : vector<4x1x8x1xf32>
    %cst_37 = arith.constant 9.99999974E-6 : f32
    %158 = vector.broadcast %cst_37 : f32 to vector<4x1x8x1xf32>
    %159 = arith.addf %157, %158 : vector<4x1x8x1xf32>
    %160 = math.rsqrt %159 : vector<4x1x8x1xf32>
    %161 = tpu.concatenate %153, %153 in 1 : vector<4x1x8x1xf32>, vector<4x1x8x1xf32> -> vector<4x2x8x1xf32>
    %162 = vector.shape_cast %161 : vector<4x2x8x1xf32> to vector<64x1xf32>
    %163 = tpu.concatenate %160, %160 in 1 : vector<4x1x8x1xf32>, vector<4x1x8x1xf32> -> vector<4x2x8x1xf32>
    %164 = vector.shape_cast %163 : vector<4x2x8x1xf32> to vector<64x1xf32>
    %165 = vector.broadcast %162 : vector<64x1xf32> to vector<64x32xf32>
    %166 = arith.subf %136, %165 : vector<64x32xf32>
    %167 = vector.broadcast %164 : vector<64x1xf32> to vector<64x32xf32>
    %168 = arith.mulf %166, %167 : vector<64x32xf32>
    %169 = vector.broadcast %137 : vector<64x1xf32> to vector<64x32xf32>
    %170 = arith.mulf %168, %169 : vector<64x32xf32>
    %171 = vector.broadcast %138 : vector<64x1xf32> to vector<64x32xf32>
    %172 = arith.addf %170, %171 : vector<64x32xf32>
    %c0_38 = arith.constant 0 : index
    %c0_39 = arith.constant 0 : index
    %173 = vector.load %arg7[%c0_38, %c0_39] : memref<32x64xf32, #tpu.memory_space<vmem>>, vector<32x64xf32>
    %cst_40 = arith.constant dense<0.000000e+00> : vector<64x64xf32>
    %174 = tpu.matmul %172, %173, %cst_40 {dimension_numbers = #tpu.dot_dimension_numbers<[1], [0], [0], [1], [0, 0, 1, 1], [], []>, precision = #tpu.contract_precision<fp32>} : vector<64x32xf32>, vector<32x64xf32>, vector<64x64xf32> -> vector<64x64xf32>
    %c0_41 = arith.constant 0 : index
    %c0_42 = arith.constant 0 : index
    %175 = vector.load %arg8[%c0_41, %c0_42] : memref<1x64xf32, #tpu.memory_space<vmem>>, vector<1x64xf32>
    %176 = vector.broadcast %175 : vector<1x64xf32> to vector<64x64xf32>
    %177 = arith.addf %174, %176 : vector<64x64xf32>
    %cst_43 = arith.constant 0.000000e+00 : f32
    %178 = vector.broadcast %cst_43 : f32 to vector<64x64xf32>
    %179 = arith.cmpf oge, %177, %178 : vector<64x64xf32>
    %cst_44 = arith.constant 0.00999999977 : f32
    %180 = vector.broadcast %cst_44 : f32 to vector<64x64xf32>
    %181 = arith.mulf %180, %177 : vector<64x64xf32>
    %182 = arith.select %179, %177, %181 : vector<64x64xi1>, vector<64x64xf32>
    %c0_45 = arith.constant 0 : index
    %c0_46 = arith.constant 0 : index
    %183 = vector.load %arg9[%c0_45, %c0_46] : memref<64x32xf32, #tpu.memory_space<vmem>>, vector<64x32xf32>
    %cst_47 = arith.constant dense<0.000000e+00> : vector<64x32xf32>
    %184 = tpu.matmul %182, %183, %cst_47 {dimension_numbers = #tpu.dot_dimension_numbers<[1], [0], [0], [1], [0, 0, 1, 1], [], []>, precision = #tpu.contract_precision<fp32>} : vector<64x64xf32>, vector<64x32xf32>, vector<64x32xf32> -> vector<64x32xf32>
    %c0_48 = arith.constant 0 : index
    %c0_49 = arith.constant 0 : index
    %185 = vector.load %arg10[%c0_48, %c0_49] : memref<1x32xf32, #tpu.memory_space<vmem>>, vector<1x32xf32>
    %186 = vector.broadcast %185 : vector<1x32xf32> to vector<64x32xf32>
    %187 = arith.addf %184, %186 : vector<64x32xf32>
    %188 = arith.addf %187, %172 : vector<64x32xf32>
    %c0_50 = arith.constant 0 : index
    %c0_51 = arith.constant 0 : index
    %189 = vector.load %arg13[%c0_50, %c0_51] : memref<64x1xf32, #tpu.memory_space<vmem>>, vector<64x1xf32>
    %c0_52 = arith.constant 0 : index
    %c0_53 = arith.constant 0 : index
    %190 = vector.load %arg14[%c0_52, %c0_53] : memref<64x1xf32, #tpu.memory_space<vmem>>, vector<64x1xf32>
    %cst_54 = arith.constant dense<0.000000e+00> : vector<64xf32>
    %191 = vector.multi_reduction <add>, %188, %cst_54 [1] : vector<64x32xf32> to vector<64xf32>
    %192 = vector.shape_cast %191 : vector<64xf32> to vector<64x1xf32>
    %193 = arith.mulf %188, %188 : vector<64x32xf32>
    %cst_55 = arith.constant dense<0.000000e+00> : vector<64xf32>
    %194 = vector.multi_reduction <add>, %193, %cst_55 [1] : vector<64x32xf32> to vector<64xf32>
    %195 = vector.shape_cast %194 : vector<64xf32> to vector<64x1xf32>
    %196 = vector.shape_cast %192 : vector<64x1xf32> to vector<4x2x8x1xf32>
    %197 = vector.shape_cast %195 : vector<64x1xf32> to vector<4x2x8x1xf32>
    %198 = vector.extract_strided_slice %196 {offsets = [0, 0, 0, 0], sizes = [4, 1, 8, 1], strides = [1, 1, 1, 1]} : vector<4x2x8x1xf32> to vector<4x1x8x1xf32>
    %199 = vector.extract_strided_slice %197 {offsets = [0, 0, 0, 0], sizes = [4, 1, 8, 1], strides = [1, 1, 1, 1]} : vector<4x2x8x1xf32> to vector<4x1x8x1xf32>
    %200 = vector.extract_strided_slice %196 {offsets = [0, 1, 0, 0], sizes = [4, 1, 8, 1], strides = [1, 1, 1, 1]} : vector<4x2x8x1xf32> to vector<4x1x8x1xf32>
    %201 = arith.addf %198, %200 : vector<4x1x8x1xf32>
    %202 = vector.extract_strided_slice %197 {offsets = [0, 1, 0, 0], sizes = [4, 1, 8, 1], strides = [1, 1, 1, 1]} : vector<4x2x8x1xf32> to vector<4x1x8x1xf32>
    %203 = arith.addf %199, %202 : vector<4x1x8x1xf32>
    %cst_56 = arith.constant 1.562500e-02 : f32
    %204 = vector.broadcast %cst_56 : f32 to vector<4x1x8x1xf32>
    %205 = arith.mulf %201, %204 : vector<4x1x8x1xf32>
    %cst_57 = arith.constant 1.562500e-02 : f32
    %206 = vector.broadcast %cst_57 : f32 to vector<4x1x8x1xf32>
    %207 = arith.mulf %203, %206 : vector<4x1x8x1xf32>
    %208 = arith.mulf %205, %205 : vector<4x1x8x1xf32>
    %209 = arith.subf %207, %208 : vector<4x1x8x1xf32>
    %cst_58 = arith.constant 9.99999974E-6 : f32
    %210 = vector.broadcast %cst_58 : f32 to vector<4x1x8x1xf32>
    %211 = arith.addf %209, %210 : vector<4x1x8x1xf32>
    %212 = math.rsqrt %211 : vector<4x1x8x1xf32>
    %213 = tpu.concatenate %205, %205 in 1 : vector<4x1x8x1xf32>, vector<4x1x8x1xf32> -> vector<4x2x8x1xf32>
    %214 = vector.shape_cast %213 : vector<4x2x8x1xf32> to vector<64x1xf32>
    %215 = tpu.concatenate %212, %212 in 1 : vector<4x1x8x1xf32>, vector<4x1x8x1xf32> -> vector<4x2x8x1xf32>
    %216 = vector.shape_cast %215 : vector<4x2x8x1xf32> to vector<64x1xf32>
    %217 = vector.broadcast %214 : vector<64x1xf32> to vector<64x32xf32>
    %218 = arith.subf %188, %217 : vector<64x32xf32>
    %219 = vector.broadcast %216 : vector<64x1xf32> to vector<64x32xf32>
    %220 = arith.mulf %218, %219 : vector<64x32xf32>
    %221 = vector.broadcast %189 : vector<64x1xf32> to vector<64x32xf32>
    %222 = arith.mulf %220, %221 : vector<64x32xf32>
    %223 = vector.broadcast %190 : vector<64x1xf32> to vector<64x32xf32>
    %224 = arith.addf %222, %223 : vector<64x32xf32>
    %225 = vector.extract_strided_slice %224 {offsets = [0, 0], sizes = [16, 32], strides = [1, 1]} : vector<64x32xf32> to vector<16x32xf32>
    %226 = vector.extract_strided_slice %224 {offsets = [16, 0], sizes = [16, 32], strides = [1, 1]} : vector<64x32xf32> to vector<16x32xf32>
    %227 = vector.extract_strided_slice %224 {offsets = [32, 0], sizes = [16, 32], strides = [1, 1]} : vector<64x32xf32> to vector<16x32xf32>
    %228 = vector.extract_strided_slice %224 {offsets = [48, 0], sizes = [16, 32], strides = [1, 1]} : vector<64x32xf32> to vector<16x32xf32>
    %229 = tpu.concatenate %225, %226, %227, %228 in 1 : vector<16x32xf32>, vector<16x32xf32>, vector<16x32xf32>, vector<16x32xf32> -> vector<16x128xf32>
    %c0_59 = arith.constant 0 : index
    %c0_60 = arith.constant 0 : index
    %230 = vector.load %arg15[%c0_59, %c0_60] : memref<16x128xf32, #tpu.memory_space<vmem>>, vector<16x128xf32>
    tpu.vector_store %arg15[%c0_59, %c0_60], %229 {strides = array<i32>} : memref<16x128xf32, #tpu.memory_space<vmem>>, vector<16x128xf32>,
    return
  }
  func.func @transform_0(%arg0: i32) -> (i32, i32) {
    %c0_i32 = arith.constant 0 : i32
    %c0_i32_0 = arith.constant 0 : i32
    %c0_i32_1 = arith.constant 0 : i32
    return %c0_i32, %c0_i32_0 : i32, i32
  }
  func.func @transform_1(%arg0: i32) -> (i32, i32) {
    %c0_i32 = arith.constant 0 : i32
    %c0_i32_0 = arith.constant 0 : i32
    %c0_i32_1 = arith.constant 0 : i32
    return %c0_i32, %c0_i32_0 : i32, i32
  }
  func.func @transform_2(%arg0: i32) -> (i32, i32) {
    %c0_i32 = arith.constant 0 : i32
    %c0_i32_0 = arith.constant 0 : i32
    %c0_i32_1 = arith.constant 0 : i32
    return %c0_i32, %c0_i32_0 : i32, i32
  }
  func.func @transform_3(%arg0: i32) -> (i32, i32, i32) {
    %c0_i32 = arith.constant 0 : i32
    %c0_i32_0 = arith.constant 0 : i32
    %c0_i32_1 = arith.constant 0 : i32
    %c0_i32_2 = arith.constant 0 : i32
    return %c0_i32, %c0_i32_0, %c0_i32_1 : i32, i32, i32
  }
  func.func @transform_4(%arg0: i32) -> (i32, i32) {
    %c0_i32 = arith.constant 0 : i32
    %c0_i32_0 = arith.constant 0 : i32
    %c0_i32_1 = arith.constant 0 : i32
    return %c0_i32, %c0_i32_0 : i32, i32
  }
  func.func @transform_5(%arg0: i32) -> (i32, i32) {
    %c0_i32 = arith.constant 0 : i32
    %c0_i32_0 = arith.constant 0 : i32
    %c0_i32_1 = arith.constant 0 : i32
    return %c0_i32, %c0_i32_0 : i32, i32
  }
  func.func @transform_6(%arg0: i32) -> (i32, i32) {
    %c0_i32 = arith.constant 0 : i32
    %c0_i32_0 = arith.constant 0 : i32
    %c0_i32_1 = arith.constant 0 : i32
    return %c0_i32, %c0_i32_0 : i32, i32
  }
  func.func @transform_7(%arg0: i32) -> (i32, i32) {
    %c0_i32 = arith.constant 0 : i32
    %c0_i32_0 = arith.constant 0 : i32
    %c0_i32_1 = arith.constant 0 : i32
    return %c0_i32, %c0_i32_0 : i32, i32
  }
  func.func @transform_8(%arg0: i32) -> (i32, i32) {
    %c0_i32 = arith.constant 0 : i32
    %c0_i32_0 = arith.constant 0 : i32
    %c0_i32_1 = arith.constant 0 : i32
    return %c0_i32, %c0_i32_0 : i32, i32
  }
  func.func @transform_9(%arg0: i32) -> (i32, i32) {
    %c0_i32 = arith.constant 0 : i32
    %c0_i32_0 = arith.constant 0 : i32
    %c0_i32_1 = arith.constant 0 : i32
    return %c0_i32, %c0_i32_0 : i32, i32
  }
  func.func @transform_10(%arg0: i32) -> (i32, i32) {
    %c0_i32 = arith.constant 0 : i32
    %c0_i32_0 = arith.constant 0 : i32
    %c0_i32_1 = arith.constant 0 : i32
    return %c0_i32, %c0_i32_0 : i32, i32
  }
  func.func @transform_11(%arg0: i32) -> (i32, i32) {
    %c0_i32 = arith.constant 0 : i32
    %c0_i32_0 = arith.constant 0 : i32
    %c0_i32_1 = arith.constant 0 : i32
    return %c0_i32, %c0_i32_0 : i32, i32
  }
  func.func @transform_12(%arg0: i32) -> (i32, i32) {
    %c0_i32 = arith.constant 0 : i32
    %c0_i32_0 = arith.constant 0 : i32
    %c0_i32_1 = arith.constant 0 : i32
    return %c0_i32, %c0_i32_0 : i32, i32
  }
  func.func @transform_13(%arg0: i32) -> (i32, i32) {
    %c0_i32 = arith.constant 0 : i32
    %c0_i32_0 = arith.constant 0 : i32
    %c0_i32_1 = arith.constant 0 : i32
    return %c0_i32, %c0_i32_0 : i32, i32
  }
  func.func @transform_14(%arg0: i32) -> (i32, i32) {
    %c0_i32 = arith.constant 0 : i32
    %c0_i32_0 = arith.constant 0 : i32
    %c0_i32_1 = arith.constant 0 : i32
    return %c0_i32, %c0_i32_0 : i32, i32
  }
}

</mosaic_0001>

<bundles_post_ra>
// kernel: transformer_block_forward.1
= control target key start
LH: loop header
LB: loop body
LE: loop exit
PB: predicated region body
PF: predicated region fallthrough
CT: control target
= control target key end

     0   :  { %vm80_vm0 = vcmask 261120   ;;  %s18015_s19 = smov 64   ;;  %s18016_s20 = smov 96   ;;  %vm18019_vm1 = vmmov 0   ;;  %vm8547_vm3 = vcmask 64512   ;;  %vm14205_vm13 = vcmask 523264   ;;  %s20546_s0 = inlined_call_operand.vmem [shape: f32[16,128], index: 0, kind: input, shape index: {}]   ;;  %s20547_s1 = inlined_call_operand.vmem [shape: f32[32,96], index: 1, kind: input, shape index: {}]   ;;  %s20548_s3 = inlined_call_operand.vmem [shape: f32[8,8,32], index: 3, kind: input, shape index: {}]   ;;  %s20549_s2 = inlined_call_operand.vmem [shape: f32[1,96], index: 2, kind: input, shape index: {}]   ;;  %s20550_s4 = inlined_call_operand.vmem [shape: f32[32,32], index: 4, kind: input, shape index: {}]   ;;  %s20551_s5 = inlined_call_operand.vmem [shape: f32[1,32], index: 5, kind: input, shape index: {}]   ;;  %s20552_s10 = inlined_call_operand.vmem [shape: f32[64,1], index: 10, kind: input, shape index: {}]   ;;  %s20553_s11 = inlined_call_operand.vmem [shape: f32[64,1], index: 11, kind: input, shape index: {}]   ;;  %s20554_s6 = inlined_call_operand.vmem [shape: f32[32,64], index: 6, kind: input, shape index: {}]   ;;  %s20555_s8 = inlined_call_operand.vmem [shape: f32[64,32], index: 8, kind: input, shape index: {}]   ;;  %s20556_s7 = inlined_call_operand.vmem [shape: f32[1,64], index: 7, kind: input, shape index: {}]   ;;  %s20557_s9 = inlined_call_operand.vmem [shape: f32[1,32], index: 9, kind: input, shape index: {}]   ;;  %s20558_s12 = inlined_call_operand.vmem [shape: f32[64,1], index: 12, kind: input, shape index: {}]   ;;  %s20559_s13 = inlined_call_operand.vmem [shape: f32[64,1], index: 13, kind: input, shape index: {}]   ;;  %s20560_s14 = inlined_call_operand.vmem [shape: f32[16,128], index: 14, kind: output, shape index: {}]  }
   0x1   :  { %v47_v0 = vld [vmem:[%s20546_s0] sm:$0xff]  ;;  %v48_v1 = vld [vmem:[%s20546_s0 + $0x8] sm:$0xff]  ;;  %v71_v5 = vld [vmem:[%s20547_s1 + $0x10] sm:$0xff] }
   0x2   :  { %v69_v2 = vld [vmem:[%s20547_s1] sm:$0xff]  ;;  %57 = vrot.lane.b32.xlu1 %v47_v0, %s18015_s19  ;;  %51 = vrot.lane.b32.xlu0 %v47_v0, %s18016_s20  ;;  %v70_v3 = vld [vmem:[%s20547_s1 + $0x8] sm:$0xff]  ;;  %v81_v6 = vsel %vm80_vm0, %v47_v0, 0  ;;  %v83_v7 = vsel %vm80_vm0, %v48_v1, 0  ;;  %v104_v10 = vand.u32 4294901760, %v71_v5 }
   0x3   :  { %v98_v4 = vand.u32 4294901760, %v69_v2  ;;  %v101_v8 = vand.u32 4294901760, %v70_v3  ;;  %v72_v9 = vld [vmem:[%s20547_s1 + $0x18] sm:$0xff]  ;;  %v18125_v11 = vand.u32 4294901760, %v81_v6  ;;  %v18127_v12 = vand.u32 4294901760, %v83_v7  ;;  %s18017_s1 = smov 32  }
   0x4   :  { %v107_v13 = vand.u32 4294901760, %v72_v9  ;;  %v262_v21 = vsub.f32 %v71_v5, %v104_v10 }
   0x5   :  { %v248_v14 = vsub.f32 %v69_v2, %v98_v4  ;;  %v18129_v15 = vpack.c.bf16 %v101_v8, %v98_v4  ;;  %v18132_v16 = vsub.f32 %v81_v6, %v18125_v11  ;;  %v18135_v17 = vsub.f32 %v83_v7, %v18127_v12 }
   0x6   :  { %v255_v18 = vsub.f32 %v70_v3, %v101_v8  ;;  %59 = vrot.lane.b32.xlu1 %v48_v1, %s18015_s19  ;;  %53 = vrot.lane.b32.xlu0 %v48_v1, %s18016_s20  ;;  %v18139_v19 = vpack.c.bf16 %v107_v13, %v104_v10  ;;  %v269_v22 = vsub.f32 %v72_v9, %v107_v13  ;;  %v263_v27 = vand.u32 4294901760, %v262_v21 }
   0x7   :  { %v249_v20 = vand.u32 4294901760, %v248_v14  ;;  %17222 = vmatprep.subr.bf16.mxu0 %v18129_v15  ;;  %v168_v23 = vand.u32 4294901760, %v18132_v16  ;;  %v178_v24 = vand.u32 4294901760, %v18135_v17 }
   0x8   :  { %v256_v25 = vand.u32 4294901760, %v255_v18  ;;  %17224 = vmatpush3.bf16.msra.mxu0 %v18129_v15  ;;  %v270_v28 = vand.u32 4294901760, %v269_v22  ;;  %v264_v33 = vsub.f32 %v262_v21, %v263_v27  ;;  %v17237_v42 = vpack.c.bf16 %v255_v18, %v248_v14 }
   0x9   :  { %v250_v26 = vsub.f32 %v248_v14, %v249_v20  ;;  %17226 = vmatprep.subr.bf16.mxu0 %v18139_v19  ;;  %v169_v29 = vsub.f32 %v18132_v16, %v168_v23  ;;  %v179_v30 = vsub.f32 %v18135_v17, %v178_v24  ;;  %v17241_v43 = vpack.c.bf16 %v269_v22, %v262_v21 }
   0xa   :  { %v257_v31 = vsub.f32 %v255_v18, %v256_v25  ;;  %65 = vrot.lane.b32.xlu1 %v48_v1, %s18017_s1  ;;  %63 = vrot.lane.b32.xlu0 %v47_v0, %s18017_s1  ;;  %v271_v34 = vsub.f32 %v269_v22, %v270_v28  ;;  %v265_v38 = vand.u32 4294901760, %v264_v33  ;;  %v18155_v44 = vpack.c.bf16 %v256_v25, %v249_v20 }
   0xb   :  { %v251_v32 = vand.u32 4294901760, %v250_v26  ;;  %v170_v35 = vand.u32 4294901760, %v169_v29  ;;  %v180_v36 = vand.u32 4294901760, %v179_v30  ;;  %v18157_v45 = vpack.c.bf16 %v270_v28, %v263_v27 }
   0xc   :  { %v258_v37 = vand.u32 4294901760, %v257_v31  ;;  %17228 = vmatpush3.bf16.msra.mxu0 %v18139_v19  ;;  %v272_v39 = vand.u32 4294901760, %v271_v34 }
   0xd   :  { %15981 = vmatprep.mubr.f32.mxu0 %v170_v35 }
   0xe   :  { %v17229_v40 = vpack.c.bf16 %v258_v37, %v251_v32  ;;  %v17233_v41 = vpack.c.bf16 %v272_v39, %v265_v38 }
   0xf   :  { %15982 = vmatmul.mubr.f32.vlgmr.msra.gmra.mrb[0].mxu0 %v180_v36 }
  0x10   :  { %17230 = vmatprep.subr.bf16.mxu0 %v17229_v40 }
  0x11   :  { %17232 = vmatpush3.bf16.msra.mxu0 %v17229_v40 }
  0x12   :  { %17234 = vmatprep.subr.bf16.mxu0 %v17233_v41 }
  0x15   :  { %17236 = vmatpush3.bf16.msra.mxu0 %v17233_v41 }
  0x16   :  { %17238 = vmatprep.subr.bf16.mxu0 %v17237_v42 }
  0x74   :  { %v18159_v46 = vpop.permute.xlu1 %57  ;;  %v18161_v47 = vpop.permute.xlu0 %51 }
  0x75   :  { %20583 = vst [vmem:[#allocation2_spill] sm:$0xff] %v18159_v46  ;;  %20584 = vst [vmem:[#allocation3_spill] sm:$0xff] %v18161_v47  ;;  %v89_v48 = vsel %vm80_vm0, %v18159_v46, 0  ;;  %v85_v49 = vsel %vm80_vm0, %v18161_v47, 0 }
  0x76   :  { %v18167_v50 = vand.u32 4294901760, %v89_v48  ;;  %v18169_v51 = vand.u32 4294901760, %v85_v49 }
  0x78   :  { %v18172_v52 = vsub.f32 %v89_v48, %v18167_v50  ;;  %v18175_v53 = vsub.f32 %v85_v49, %v18169_v51  ;;  %v18177_v54 = vpop.permute.xlu1 %59  ;;  %v18179_v55 = vpop.permute.xlu0 %53 }
  0x79   :  { %20585 = vst [vmem:[#allocation4_spill] sm:$0xff] %v18177_v54  ;;  %20586 = vst [vmem:[#allocation5_spill] sm:$0xff] %v18179_v55  ;;  %v91_v56 = vsel %vm80_vm0, %v18177_v54, 0  ;;  %v87_v57 = vsel %vm80_vm0, %v18179_v55, 0 }
  0x7a   :  { %v18185_v58 = vand.u32 4294901760, %v91_v56  ;;  %v18187_v59 = vand.u32 4294901760, %v87_v57  ;;  %v188_v60 = vand.u32 4294901760, %v18175_v53  ;;  %v208_v61 = vand.u32 4294901760, %v18172_v52 }
  0x7c   :  { %v18192_v62 = vsub.f32 %v91_v56, %v18185_v58  ;;  %v197_v63 = vsub.f32 %v87_v57, %v18187_v59  ;;  %v18195_v0 = vpop.permute.xlu1 %65  ;;  %v18197_v1 = vpop.permute.xlu0 %63  ;;  %v189_v2 = vsub.f32 %v18175_v53, %v188_v60  ;;  %v209_v9 = vsub.f32 %v18172_v52, %v208_v61 }
  0x7d   :  { %20587 = vst [vmem:[#allocation6_spill] sm:$0xff] %v18195_v0  ;;  %20588 = vst [vmem:[#allocation7_spill] sm:$0xff] %v18197_v1  ;;  %v95_v3 = vsel %vm80_vm0, %v18195_v0, 0  ;;  %v93_v4 = vsel %vm80_vm0, %v18197_v1, 0  ;;  %v20601_v0 = vmov 7  }
  0x7e   :  { %v18204_v5 = vand.u32 4294901760, %v95_v3  ;;  %v18206_v6 = vand.u32 4294901760, %v93_v4  ;;  %v190_v7 = vand.u32 4294901760, %v189_v2  ;;  %v198_v8 = vand.u32 4294901760, %v197_v63 }
  0x7f   :  { %v218_v10 = vand.u32 4294901760, %v18192_v62  ;;  %v210_v26 = vand.u32 4294901760, %v209_v9 }
  0x80   :  { %v237_v13 = vsub.f32 %v95_v3, %v18204_v5  ;;  %v227_v14 = vsub.f32 %v93_v4, %v18206_v6  ;;  %15984 = vmatprep.mubr.f32.mxu0 %v190_v7  ;;  %v199_v18 = vsub.f32 %v197_v63, %v198_v8 }
  0x81   :  { %v219_v21 = vsub.f32 %v18192_v62, %v218_v10 }
  0x82   :  { %v200_v20 = vand.u32 4294901760, %v199_v18  ;;  %v228_v22 = vand.u32 4294901760, %v227_v14  ;;  %v238_v25 = vand.u32 4294901760, %v237_v13 }
  0x83   :  { %v220_v28 = vand.u32 4294901760, %v219_v21  ;;  %v890_v21 = vld [vmem:[%s20548_s3 + $0x38] sm:$0xff] }
  0x84   :  { %15985 = vmatmul.mubr.f32.gmra.mrb[2].mxu0 %v200_v20  ;;  %v229_v27 = vsub.f32 %v227_v14, %v228_v22  ;;  %v239_v30 = vsub.f32 %v237_v13, %v238_v25 }
  0x85   :  { %15987 = vmatprep.mubr.f32.mxu0 %v210_v26 }
  0x86   :  { %v230_v29 = vand.u32 4294901760, %v229_v27  ;;  %v240_v31 = vand.u32 4294901760, %v239_v30 }
  0x88   :  { %15988 = vmatmul.mubr.f32.gmra.mrb[4].mxu0 %v220_v28 }
  0x89   :  { %15990 = vmatprep.mubr.f32.mxu0 %v230_v29 }
  0x8c   :  { %15991 = vmatmul.mubr.f32.gmra.mrb[6].mxu0 %v240_v31 }
  0x8d   :  { %16001 = vmatprep.mubr.f32.mxu0 %v18125_v11 }
  0x90   :  { %16002 = vmatmul.mubr.f32.vlgmr.msra.gmra.mrb[0].mxu0 %v18127_v12 }
  0x91   :  { %17240 = vmatpush3.bf16.msra.mxu0 %v17237_v42  ;;  %16004 = vmatprep.mubr.f32.mxu0 %v18169_v51 }
  0x92   :  { %17242 = vmatprep.subr.bf16.mxu0 %v17241_v43 }
  0x94   :  { %16005 = vmatmul.mubr.f32.gmra.mrb[2].mxu0 %v18187_v59 }
  0x95   :  { %16007 = vmatprep.mubr.f32.mxu0 %v18167_v50  ;;  %17244 = vmatpush3.bf16.msra.mxu0 %v17241_v43 }
  0x96   :  { %17246 = vmatprep.subr.bf16.mxu0 %v18129_v15 }
  0x98   :  { %16008 = vmatmul.mubr.f32.gmra.mrb[4].mxu0 %v18185_v58 }
  0x99   :  { %16010 = vmatprep.mubr.f32.mxu0 %v18206_v6 }
  0x9c   :  { %16011 = vmatmul.mubr.f32.gmra.mrb[6].mxu0 %v18204_v5 }
  0x9d   :  { %16021 = vmatprep.mubr.f32.mxu0 %v18132_v16 }
  0xa0   :  { %16022 = vmatmul.mubr.f32.vlgmr.msra.gmra.mrb[0].mxu0 %v18135_v17  ;;  %v888_v17 = vld [vmem:[%s20548_s3 + $0x28] sm:$0xff] }
  0xa1   :  { %17248 = vmatpush3.bf16.msra.mxu0 %v18129_v15  ;;  %16024 = vmatprep.mubr.f32.mxu0 %v18175_v53 }
  0xa2   :  { %17250 = vmatprep.subr.bf16.mxu0 %v18139_v19 }
  0xa4   :  { %16025 = vmatmul.mubr.f32.gmra.mrb[2].mxu0 %v197_v63 }
  0xa5   :  { %16027 = vmatprep.mubr.f32.mxu0 %v18172_v52  ;;  %17252 = vmatpush3.bf16.msra.mxu0 %v18139_v19 }
  0xa6   :  { %17254 = vmatprep.subr.bf16.mxu0 %v18155_v44 }
  0xa8   :  { %16028 = vmatmul.mubr.f32.gmra.mrb[4].mxu0 %v18192_v62 }
  0xa9   :  { %16030 = vmatprep.mubr.f32.mxu0 %v227_v14 }
  0xac   :  { %16031 = vmatmul.mubr.f32.gmra.mrb[6].mxu0 %v237_v13 }
  0xad   :  { %16041 = vmatprep.mubr.f32.mxu0 %v168_v23 }
  0xb0   :  { %16042 = vmatmul.mubr.f32.vlgmr.msra.gmra.mrb[0].mxu0 %v178_v24  ;;  %v15369_v24 = vld [vmem:[%s20549_s2] ss:$0 sm:$0xff] }
  0xb1   :  { %17256 = vmatpush3.bf16.msra.mxu0 %v18155_v44  ;;  %16044 = vmatprep.mubr.f32.mxu0 %v188_v60 }
  0xb2   :  { %17258 = vmatprep.subr.bf16.mxu0 %v18157_v45 }
  0xb4   :  { %16045 = vmatmul.mubr.f32.gmra.mrb[2].mxu0 %v198_v8 }
  0xb5   :  { %16047 = vmatprep.mubr.f32.mxu0 %v208_v61  ;;  %17260 = vmatpush3.bf16.msra.mxu0 %v18157_v45 }
  0xb6   :  { %17262 = vmatprep.subr.bf16.mxu0 %v18129_v15 }
  0xb8   :  { %16048 = vmatmul.mubr.f32.gmra.mrb[4].mxu0 %v218_v10  ;;  %v884_v10 = vld [vmem:[%s20548_s3 + $0x8] sm:$0xff] }
  0xb9   :  { %16050 = vmatprep.mubr.f32.mxu0 %v228_v22  ;;  %v1347_v13 = vsel %vm80_vm0, %v884_v10, 0 }
  0xba   :  { %v18394_v18 = vand.u32 4294901760, %v1347_v13 }
  0xbc   :  { %16051 = vmatmul.mubr.f32.gmra.mrb[6].mxu0 %v238_v25  ;;  %v18406_v22 = vsub.f32 %v1347_v13, %v18394_v18  ;;  %v4059_v25 = vsel %vm80_vm0, %v890_v21, 0 }
  0xbd   :  { %16061 = vmatprep.mubr.f32.mxu0 %v18125_v11  ;;  %v18416_v28 = vand.u32 4294901760, %v4059_v25 }
  0xbe   :  { %v1428_v30 = vand.u32 4294901760, %v18406_v22 }
  0xc0   :  { %16062 = vmatmul.mubr.f32.vlgmr.msra.gmra.mrb[0].mxu0 %v18127_v12 }
  0xc1   :  { %17264 = vmatpush3.bf16.msra.mxu0 %v18129_v15  ;;  %16064 = vmatprep.mubr.f32.mxu0 %v18169_v51  ;;  %v883_v15 = vld [vmem:[%s20548_s3] sm:$0xff] }
  0xc2   :  { %17266 = vmatprep.subr.bf16.mxu0 %v18139_v19 }
  0xc4   :  { %16065 = vmatmul.mubr.f32.gmra.mrb[2].mxu0 %v18187_v59 }
  0xc5   :  { %16067 = vmatprep.mubr.f32.mxu0 %v18167_v50  ;;  %17268 = vmatpush3.bf16.msra.mxu0 %v18139_v19  ;;  %v3155_v19 = vsel %vm80_vm0, %v888_v17, 0 }
  0xc6   :  { %v18276_v23 = vand.u32 4294901760, %v3155_v19 }
  0xc8   :  { %16068 = vmatmul.mubr.f32.gmra.mrb[4].mxu0 %v18185_v58  ;;  %v18310_v49 = vsub.f32 %v3155_v19, %v18276_v23 }
  0xc9   :  { %16070 = vmatprep.mubr.f32.mxu0 %v18206_v6 }
  0xca   :  { %v3236_v61 = vand.u32 4294901760, %v18310_v49 }
  0xcc   :  { %16071 = vmatmul.mubr.f32.gmra.mrb[6].mxu0 %v18204_v5 }
  0xcd   :  { %16081 = vmatprep.mubr.f32.mxu0 %v18125_v11  ;;  %v895_v11 = vsel %vm80_vm0, %v883_v15, 0  ;;  %v4139_v15 = vsub.f32 %v4059_v25, %v18416_v28 }
  0xce   :  { %v18262_v16 = vand.u32 4294901760, %v895_v11 }
  0xcf   :  { %v4140_v19 = vand.u32 4294901760, %v4139_v15 }
  0xd0   :  { %16082 = vmatmul.mubr.f32.vlgmr.msra.gmra.mrb[0].mxu0 %v18127_v12  ;;  %v20570_v12 = vmov 0.0   ;;  %v18284_v33 = vsub.f32 %v895_v11, %v18262_v16 }
  0xd1   :  { %16084 = vmatprep.mubr.f32.mxu0 %v18169_v51  ;;  %16093 = vmatprep.subr.mxu1 %v20570_v12 }
  0xd2   :  { %16243 = vmatprep.subr.mxu0 %v20570_v12  ;;  %16094 = vmatpush3.xpose.msra.mxu1 %v18262_v16  ;;  %v976_v39 = vand.u32 4294901760, %v18284_v33 }
  0xd3   :  { %16098 = vmatprep.subr.mxu1 %v20570_v12  ;;  %16095 = vmatprep.mubr.msk.f32.mxu1 %vm18019_vm1, %v20570_v12 }
  0xd4   :  { %16085 = vmatmul.mubr.f32.gmra.mrb[2].mxu0 %v18187_v59  ;;  %v977_v48 = vsub.f32 %v18284_v33, %v976_v39 }
  0xd5   :  { %16087 = vmatprep.mubr.f32.mxu0 %v18167_v50  ;;  %16244 = vmatpush3.xpose.msra.mxu0 %v18276_v23 }
  0xd6   :  { %16248 = vmatprep.subr.mxu0 %v20570_v12  ;;  %v978_v60 = vand.u32 4294901760, %v977_v48 }
  0xd8   :  { %16088 = vmatmul.mubr.f32.gmra.mrb[4].mxu0 %v18185_v58 }
  0xd9   :  { %16090 = vmatprep.mubr.f32.mxu0 %v18206_v6 }
  0xdc   :  { %16091 = vmatmul.mubr.f32.gmra.mrb[6].mxu0 %v18204_v5  ;;  %v3237_v5 = vsub.f32 %v18310_v49, %v3236_v61 }
  0xdd   :  { %16245 = vmatprep.mubr.msk.f32.mxu0 %vm18019_vm1, %v20570_v12 }
  0xde   :  { %v3238_v9 = vand.u32 4294901760, %v3237_v5 }
 0x1a3   :  { %v16083_v32 = vpop.f32.mrb[0].mxu0 }
 0x1a4   :  { %v18286_v34 = vadd.f32 %v16083_v32, %v15369_v24  ;;  %v837_v35 = vpop.f32.mrb[1].mxu0 }
 0x1a5   :  { %v17462_v36 = vadd.f32 %v15369_v24, %v837_v35 }
 0x1a6   :  { %5378 = vrot.lane.b32.xlu1 %v18286_v34, %s18016_s20  ;;  %v1344_v14 = vsel %vm80_vm0, %v18286_v34, 0 }
 0x1a7   :  { %v892_v37 = vsel %vm80_vm0, %v17462_v36, 0  ;;  %v16086_v38 = vpop.f32.mrb[2].mxu0  ;;  %4928 = vrot.lane.b32.xlu0 %v17462_v36, %s18016_s20  ;;  %v18396_v20 = vand.u32 4294901760, %v1344_v14 }
 0x1a8   :  { %v18293_v40 = vand.u32 4294901760, %v892_v37  ;;  %v18295_v41 = vadd.f32 %v16086_v38, %v15369_v24  ;;  %v849_v42 = vpop.f32.mrb[3].mxu0 }
 0x1a9   :  { %v18297_v43 = vadd.f32 %v15369_v24, %v849_v42  ;;  %v18410_v26 = vsub.f32 %v1344_v14, %v18396_v20 }
 0x1aa   :  { %v18300_v44 = vsub.f32 %v892_v37, %v18293_v40  ;;  %6278 = vrot.lane.b32.xlu1 %v18295_v41, %s18016_s20  ;;  %v885_v37 = vld [vmem:[%s20548_s3 + $0x10] sm:$0xff] }
 0x1ab   :  { %v16089_v45 = vpop.f32.mrb[4].mxu0  ;;  %5828 = vrot.lane.b32.xlu0 %v18297_v43, %s18016_s20  ;;  %v18428_v31 = vand.u32 4294901760, %v18410_v26  ;;  %v1799_v38 = vsel %vm80_vm0, %v885_v37, 0 }
 0x1ac   :  { %v18312_v50 = vadd.f32 %v16089_v45, %v15369_v24  ;;  %v861_v51 = vpop.f32.mrb[5].mxu0  ;;  %v18315_v52 = vand.u32 4294901760, %v18300_v44  ;;  %v18495_v42 = vand.u32 4294901760, %v1799_v38 }
 0x1ad   :  { %v18317_v53 = vadd.f32 %v15369_v24, %v861_v51  ;;  %v1418_v17 = vsub.f32 %v18410_v26, %v18428_v31 }
 0x1ae   :  { %v3152_v56 = vsel %vm80_vm0, %v18312_v50, 0  ;;  %7178 = vrot.lane.b32.xlu1 %v18312_v50, %s18016_s20  ;;  %v966_v57 = vsub.f32 %v18300_v44, %v18315_v52 }
 0x1af   :  { %v18325_v58 = vand.u32 4294901760, %v3152_v56  ;;  %v16092_v59 = vpop.f32.mrb[6].mxu0  ;;  %6728 = vrot.lane.b32.xlu0 %v18317_v53, %s18016_s20 }
 0x1b0   :  { %v18330_v62 = vadd.f32 %v16092_v59, %v15369_v24  ;;  %v873_v63 = vpop.f32.mrb[7].mxu0  ;;  %v18332_v2 = vand.u32 4294901760, %v966_v57 }
 0x1b1   :  { %v18335_v3 = vsub.f32 %v3152_v56, %v18325_v58  ;;  %v18348_v6 = vadd.f32 %v15369_v24, %v873_v63 }
 0x1b2   :  { %8078 = vrot.lane.b32.xlu1 %v18330_v62, %s18016_s20  ;;  %16096 = vmatmul.mubr.f32.vlgmr.msra.gmra.mrb[0].mxu1 %v18332_v2  ;;  %v4056_v27 = vsel %vm80_vm0, %v18330_v62, 0 }
 0x1b3   :  { %v18341_v4 = vand.u32 4294901760, %v18335_v3  ;;  %16099 = vmatpush3.xpose.msra.mxu1 %v978_v60  ;;  %8644 = vrot.lane.b32.xlu0 %v17462_v36, %s18015_s19  ;;  %v18418_v29 = vand.u32 4294901760, %v4056_v27 }
 0x1b4   :  { %16100 = vmatprep.mubr.msk.f32.mxu1 %vm18019_vm1, %v20570_v12  ;;  %16103 = vmatprep.subr.mxu1 %v20570_v12 }
 0x1b5   :  { %v3226_v7 = vsub.f32 %v18335_v3, %v18341_v4  ;;  %v18433_v11 = vsub.f32 %v4056_v27, %v18418_v29 }
 0x1b6   :  { %9096 = vrot.lane.b32.xlu1 %v18286_v34, %s18015_s19 }
 0x1b7   :  { %7628 = vrot.lane.b32.xlu0 %v18348_v6, %s18016_s20  ;;  %v18356_v8 = vand.u32 4294901760, %v3226_v7  ;;  %v18445_v32 = vand.u32 4294901760, %v18433_v11 }
 0x1b9   :  { %16246 = vmatmul.mubr.f32.vlgmr.msra.gmra.mrb[8].mxu0 %v18356_v8  ;;  %v4130_v34 = vsub.f32 %v18433_v11, %v18445_v32 }
 0x1ba   :  { %9548 = vrot.lane.b32.xlu1 %v18297_v43, %s18015_s19  ;;  %16101 = vmatmul.mubr.f32.vlgmr.msra.gmra.mrb[0].mxu1 %v18293_v40 }
 0x1bb   :  { %16104 = vmatpush3.xpose.msra.mxu1 %v18284_v33  ;;  %16249 = vmatpush3.xpose.msra.mxu0 %v3238_v9  ;;  %v18448_v33 = vand.u32 4294901760, %v1418_v17  ;;  %v18463_v36 = vand.u32 4294901760, %v4130_v34  ;;  %v886_v9 = vld [vmem:[%s20548_s3 + $0x18] sm:$0xff] }
 0x1bc   :  { %16250 = vmatprep.mubr.msk.f32.mxu0 %vm18019_vm1, %v20570_v12  ;;  %16105 = vmatprep.mubr.msk.f32.mxu1 %vm18019_vm1, %v20570_v12  ;;  %v2251_v14 = vsel %vm80_vm0, %v886_v9, 0 }
 0x1bd   :  { %16108 = vmatprep.subr.mxu1 %v20570_v12  ;;  %16253 = vmatprep.subr.mxu0 %v20570_v12 }
 0x1be   :  { %10000 = vrot.lane.b32.xlu1 %v18295_v41, %s18015_s19 }
 0x1c1   :  { %16251 = vmatmul.mubr.f32.vlgmr.msra.gmra.mrb[8].mxu0 %v18325_v58 }
 0x1c2   :  { %16106 = vmatmul.mubr.f32.vlgmr.msra.gmra.mrb[0].mxu1 %v18300_v44  ;;  %16254 = vmatpush3.xpose.msra.mxu0 %v18310_v49 }
 0x1c3   :  { %16109 = vmatpush3.xpose.msra.mxu1 %v18262_v16  ;;  %16255 = vmatprep.mubr.msk.f32.mxu0 %vm18019_vm1, %v20570_v12 }
 0x1c4   :  { %16110 = vmatprep.mubr.msk.f32.mxu1 %vm18019_vm1, %v20570_v12  ;;  %16113 = vmatprep.subr.mxu1 %v20570_v12 }
 0x1c5   :  { %16258 = vmatprep.subr.mxu0 %v20570_v12 }
 0x1c9   :  { %16256 = vmatmul.mubr.f32.vlgmr.msra.gmra.mrb[8].mxu0 %v18335_v3 }
 0x1ca   :  { %16111 = vmatmul.mubr.f32.vlgmr.msra.gmra.mrb[0].mxu1 %v18315_v52  ;;  %16259 = vmatpush3.xpose.msra.mxu0 %v18276_v23 }
 0x1cb   :  { %16114 = vmatpush3.xpose.msra.mxu1 %v976_v39  ;;  %16260 = vmatprep.mubr.msk.f32.mxu0 %vm18019_vm1, %v20570_v12  ;;  %v1796_v39 = vsel %vm80_vm0, %v18297_v43, 0  ;;  %v1879_v43 = vsub.f32 %v1799_v38, %v18495_v42  ;;  %v887_v38 = vld [vmem:[%s20548_s3 + $0x20] sm:$0xff] }
 0x1cc   :  { %16115 = vmatprep.mubr.msk.f32.mxu1 %vm18019_vm1, %v20570_v12  ;;  %16118 = vmatprep.subr.mxu1 %v20570_v12  ;;  %v18497_v45 = vand.u32 4294901760, %v1796_v39 }
 0x1cd   :  { %16263 = vmatprep.subr.mxu0 %v20570_v12  ;;  %v1880_v49 = vand.u32 4294901760, %v1879_v43 }
 0x1ce   :  { %v18505_v48 = vsub.f32 %v1796_v39, %v18497_v45 }
 0x1cf   :  { %v1881_v56 = vsub.f32 %v1879_v43, %v1880_v49 }
 0x1d0   :  { %v18516_v51 = vand.u32 4294901760, %v18505_v48 }
 0x1d1   :  { %16261 = vmatmul.mubr.f32.vlgmr.msra.gmra.mrb[8].mxu0 %v18341_v4  ;;  %v1882_v59 = vand.u32 4294901760, %v1881_v56 }
 0x1d2   :  { %16116 = vmatmul.mubr.f32.vlgmr.msra.gmra.mrb[0].mxu1 %v18293_v40  ;;  %16264 = vmatpush3.xpose.msra.mxu0 %v3236_v61  ;;  %v1870_v57 = vsub.f32 %v18505_v48, %v18516_v51 }
 0x1d3   :  { %16119 = vmatpush3.xpose.msra.mxu1 %v18262_v16  ;;  %16265 = vmatprep.mubr.msk.f32.mxu0 %vm18019_vm1, %v20570_v12  ;;  %v1429_v16 = vsub.f32 %v18406_v22, %v1428_v30 }
 0x1d4   :  { %16120 = vmatprep.mubr.msk.f32.mxu1 %vm18019_vm1, %v20570_v12  ;;  %16123 = vmatprep.subr.mxu1 %v20570_v12  ;;  %v18528_v60 = vand.u32 4294901760, %v1870_v57 }
 0x1d5   :  { %16268 = vmatprep.subr.mxu0 %v20570_v12  ;;  %v1430_v24 = vand.u32 4294901760, %v1429_v16  ;;  %v20574_v16 = vmov 7  }
 0x1d6   :  { %17906 = vset.pattern.permute.xlu1 %v20574_v16 }
 0x1d9   :  { %16266 = vmatmul.mubr.f32.vlgmr.msra.gmra.mrb[8].mxu0 %v18325_v58 }
 0x1da   :  { %16121 = vmatmul.mubr.f32.vlgmr.msra.gmra.mrb[0].mxu1 %v18293_v40  ;;  %16269 = vmatpush3.xpose.msra.mxu0 %v18276_v23  ;;  %v4141_v23 = vsub.f32 %v4139_v15, %v4140_v19 }
 0x1db   :  { %16124 = vmatpush3.xpose.msra.mxu1 %v18394_v18  ;;  %16125 = vmatprep.mubr.msk.f32.mxu1 %vm18019_vm1, %v20570_v12 }
 0x1dc   :  { %16128 = vmatprep.subr.mxu1 %v20570_v12  ;;  %16270 = vmatprep.mubr.msk.f32.mxu0 %vm18019_vm1, %v20570_v12  ;;  %v4142_v35 = vand.u32 4294901760, %v4141_v23 }
 0x1dd   :  { %16303 = vmatprep.subr.mxu0 %v20570_v12 }
 0x1de   :  { %16126 = vmatmul.mubr.f32.vlgmr.msra.gmra.mrb[2].mxu1 %v18448_v33 }
 0x1df   :  { %16129 = vmatpush3.xpose.msra.mxu1 %v1430_v24  ;;  %16130 = vmatprep.mubr.msk.f32.mxu1 %vm18019_vm1, %v20570_v12 }
 0x1e0   :  { %16133 = vmatprep.subr.mxu1 %v20570_v12 }
 0x1e1   :  { %16271 = vmatmul.mubr.f32.vlgmr.msra.gmra.mrb[8].mxu0 %v18325_v58 }
 0x1e2   :  { %16304 = vmatpush3.xpose.msra.mxu0 %v18416_v28  ;;  %16305 = vmatprep.mubr.msk.f32.mxu0 %vm18019_vm1, %v20570_v12 }
 0x1e3   :  { %16308 = vmatprep.subr.mxu0 %v20570_v12 }
 0x1e5   :  { %16306 = vmatmul.mubr.f32.vlgmr.msra.gmra.mrb[10].mxu0 %v18463_v36 }
 0x1e6   :  { %16131 = vmatmul.mubr.f32.vlgmr.msra.gmra.mrb[2].mxu1 %v18396_v20  ;;  %16309 = vmatpush3.xpose.msra.mxu0 %v4142_v35 }
 0x1e7   :  { %16134 = vmatpush3.xpose.msra.mxu1 %v18406_v22  ;;  %16310 = vmatprep.mubr.msk.f32.mxu0 %vm18019_vm1, %v20570_v12  ;;  %v18567_v22 = vand.u32 4294901760, %v2251_v14 }
 0x1e8   :  { %16135 = vmatprep.mubr.msk.f32.mxu1 %vm18019_vm1, %v20570_v12  ;;  %16138 = vmatprep.subr.mxu1 %v20570_v12 }
 0x1e9   :  { %16313 = vmatprep.subr.mxu0 %v20570_v12 }
 0x1ed   :  { %16311 = vmatmul.mubr.f32.vlgmr.msra.gmra.mrb[10].mxu0 %v18418_v29 }
 0x1ee   :  { %16136 = vmatmul.mubr.f32.vlgmr.msra.gmra.mrb[2].mxu1 %v18410_v26  ;;  %16314 = vmatpush3.xpose.msra.mxu0 %v4139_v15  ;;  %v20572_v15 = vmov 6  }
 0x1ef   :  { %16139 = vmatpush3.xpose.msra.mxu1 %v18394_v18  ;;  %16315 = vmatprep.mubr.msk.f32.mxu0 %vm18019_vm1, %v20570_v12 }
 0x1f0   :  { %16140 = vmatprep.mubr.msk.f32.mxu1 %vm18019_vm1, %v20570_v12  ;;  %16143 = vmatprep.subr.mxu1 %v20570_v12 }
 0x1f1   :  { %16318 = vmatprep.subr.mxu0 %v20570_v12  ;;  %17907 = vset.pattern.permute.xlu0 %v20572_v15 }
 0x1f5   :  { %16316 = vmatmul.mubr.f32.vlgmr.msra.gmra.mrb[10].mxu0 %v18433_v11 }
 0x1f6   :  { %16141 = vmatmul.mubr.f32.vlgmr.msra.gmra.mrb[2].mxu1 %v18428_v31  ;;  %16319 = vmatpush3.xpose.msra.mxu0 %v18416_v28 }
 0x1f7   :  { %16144 = vmatpush3.xpose.msra.mxu1 %v1428_v30  ;;  %16320 = vmatprep.mubr.msk.f32.mxu0 %vm18019_vm1, %v20570_v12 }
 0x1f8   :  { %16145 = vmatprep.mubr.msk.f32.mxu1 %vm18019_vm1, %v20570_v12  ;;  %16148 = vmatprep.subr.mxu1 %v20570_v12 }
 0x1f9   :  { %16323 = vmatprep.subr.mxu0 %v20570_v12 }
 0x1fd   :  { %16321 = vmatmul.mubr.f32.vlgmr.msra.gmra.mrb[10].mxu0 %v18445_v32 }
 0x1fe   :  { %16146 = vmatmul.mubr.f32.vlgmr.msra.gmra.mrb[2].mxu1 %v18396_v20  ;;  %16324 = vmatpush3.xpose.msra.mxu0 %v4140_v19 }
 0x1ff   :  { %16149 = vmatpush3.xpose.msra.mxu1 %v18394_v18  ;;  %16325 = vmatprep.mubr.msk.f32.mxu0 %vm18019_vm1, %v20570_v12  ;;  %v2248_v18 = vsel %vm80_vm0, %v18295_v41, 0  ;;  %v18575_v41 = vsub.f32 %v2251_v14, %v18567_v22 }
 0x200   :  { %16150 = vmatprep.mubr.msk.f32.mxu1 %vm18019_vm1, %v20570_v12  ;;  %16153 = vmatprep.subr.mxu1 %v20570_v12  ;;  %v18569_v25 = vand.u32 4294901760, %v2248_v18 }
 0x201   :  { %16328 = vmatprep.subr.mxu0 %v20570_v12 }
 0x202   :  { %v18578_v27 = vsub.f32 %v2248_v18, %v18569_v25 }
 0x204   :  { %v18590_v30 = vand.u32 4294901760, %v18578_v27 }
 0x205   :  { %16326 = vmatmul.mubr.f32.vlgmr.msra.gmra.mrb[10].mxu0 %v18418_v29 }
 0x206   :  { %16151 = vmatmul.mubr.f32.vlgmr.msra.gmra.mrb[2].mxu1 %v18396_v20  ;;  %16329 = vmatpush3.xpose.msra.mxu0 %v18416_v28  ;;  %v2332_v28 = vand.u32 4294901760, %v18575_v41  ;;  %v2322_v19 = vsub.f32 %v18578_v27, %v18590_v30 }
 0x207   :  { %16154 = vmatpush3.xpose.msra.mxu1 %v18495_v42  ;;  %16155 = vmatprep.mubr.msk.f32.mxu1 %vm18019_vm1, %v20570_v12 }
 0x208   :  { %16158 = vmatprep.subr.mxu1 %v20570_v12  ;;  %16330 = vmatprep.mubr.msk.f32.mxu0 %vm18019_vm1, %v20570_v12  ;;  %v2333_v17 = vsub.f32 %v18575_v41, %v2332_v28 }
 0x209   :  { %16363 = vmatprep.subr.mxu0 %v20570_v12 }
 0x20a   :  { %16156 = vmatmul.mubr.f32.vlgmr.msra.gmra.mrb[4].mxu1 %v18528_v60 }
 0x20b   :  { %16159 = vmatpush3.xpose.msra.mxu1 %v1882_v59  ;;  %16160 = vmatprep.mubr.msk.f32.mxu1 %vm18019_vm1, %v20570_v12 }
 0x20c   :  { %16163 = vmatprep.subr.mxu1 %v20570_v12 }
 0x20d   :  { %16331 = vmatmul.mubr.f32.vlgmr.msra.gmra.mrb[10].mxu0 %v18418_v29 }
 0x20e   :  { %16365 = vmatprep.mubr.msk.f32.mxu0 %vm18019_vm1, %v20570_v12 }
 0x212   :  { %16161 = vmatmul.mubr.f32.vlgmr.msra.gmra.mrb[4].mxu1 %v18497_v45 }
 0x213   :  { %16164 = vmatpush3.xpose.msra.mxu1 %v1879_v43  ;;  %16165 = vmatprep.mubr.msk.f32.mxu1 %vm18019_vm1, %v20570_v12 }
 0x214   :  { %16168 = vmatprep.subr.mxu1 %v20570_v12 }
 0x218   :  { %v5379_v61 = vpop.permute.xlu1 %5378 }
 0x219   :  { %v5380_v63 = vsel %vm80_vm0, %v5379_v61, 0 }
 0x21a   :  { %v18545_v5 = vand.u32 4294901760, %v5380_v63  ;;  %16166 = vmatmul.mubr.f32.vlgmr.msra.gmra.mrb[4].mxu1 %v18505_v48 }
 0x21b   :  { %16169 = vmatpush3.xpose.msra.mxu1 %v18495_v42  ;;  %16170 = vmatprep.mubr.msk.f32.mxu1 %vm18019_vm1, %v20570_v12 }
 0x21c   :  { %v5460_v7 = vsub.f32 %v5380_v63, %v18545_v5  ;;  %16364 = vmatpush3.xpose.msra.mxu0 %v18545_v5  ;;  %16173 = vmatprep.subr.mxu1 %v20570_v12  ;;  %v6279_v24 = vpop.permute.xlu1 %6278 }
 0x21d   :  { %16368 = vmatprep.subr.mxu0 %v20570_v12  ;;  %v6280_v23 = vsel %vm80_vm0, %v6279_v24, 0 }
 0x21e   :  { %v5461_v10 = vand.u32 4294901760, %v5460_v7  ;;  %v18614_v34 = vand.u32 4294901760, %v6280_v23 }
 0x21f   :  { %16366 = vmatmul.mubr.f32.vlgmr.msra.gmra.mrb[12].mxu0 %v18448_v33  ;;  %v2323_v33 = vand.u32 4294901760, %v2322_v19 }
 0x220   :  { %v5462_v13 = vsub.f32 %v5460_v7, %v5461_v10  ;;  %16370 = vmatprep.mubr.msk.f32.mxu0 %vm18019_vm1, %v20570_v12  ;;  %v6360_v35 = vsub.f32 %v6280_v23, %v18614_v34  ;;  %v7179_v9 = vpop.permute.xlu1 %7178 }
 0x222   :  { %16171 = vmatmul.mubr.f32.vlgmr.msra.gmra.mrb[4].mxu1 %v18516_v51  ;;  %v5463_v21 = vand.u32 4294901760, %v5462_v13  ;;  %v7180_v13 = vsel %vm80_vm0, %v7179_v9, 0 }
 0x223   :  { %16174 = vmatpush3.xpose.msra.mxu1 %v1880_v49  ;;  %16175 = vmatprep.mubr.msk.f32.mxu1 %vm18019_vm1, %v20570_v12  ;;  %v18693_v14 = vand.u32 4294901760, %v7180_v13 }
 0x224   :  { %16369 = vmatpush3.xpose.msra.mxu0 %v5463_v21  ;;  %16178 = vmatprep.subr.mxu1 %v20570_v12 }
 0x225   :  { %16373 = vmatprep.subr.mxu0 %v20570_v12  ;;  %v7260_v18 = vsub.f32 %v7180_v13, %v18693_v14 }
 0x227   :  { %16371 = vmatmul.mubr.f32.vlgmr.msra.gmra.mrb[12].mxu0 %v18396_v20  ;;  %v7261_v21 = vand.u32 4294901760, %v7260_v18 }
 0x228   :  { %16374 = vmatpush3.xpose.msra.mxu0 %v5460_v7  ;;  %16375 = vmatprep.mubr.msk.f32.mxu0 %vm18019_vm1, %v20570_v12 }
 0x229   :  { %16378 = vmatprep.subr.mxu0 %v20570_v12 }
 0x22a   :  { %16176 = vmatmul.mubr.f32.vlgmr.msra.gmra.mrb[4].mxu1 %v18497_v45 }
 0x22b   :  { %16179 = vmatpush3.xpose.msra.mxu1 %v18495_v42  ;;  %16180 = vmatprep.mubr.msk.f32.mxu1 %vm18019_vm1, %v20570_v12  ;;  %v2700_v42 = vsel %vm80_vm0, %v18317_v53, 0 }
 0x22c   :  { %16183 = vmatprep.subr.mxu1 %v20570_v12  ;;  %v18652_v49 = vand.u32 4294901760, %v2700_v42 }
 0x22e   :  { %v18658_v57 = vsub.f32 %v2700_v42, %v18652_v49 }
 0x22f   :  { %16376 = vmatmul.mubr.f32.vlgmr.msra.gmra.mrb[12].mxu0 %v18410_v26  ;;  %v2334_v26 = vand.u32 4294901760, %v2333_v17 }
 0x230   :  { %16379 = vmatpush3.xpose.msra.mxu0 %v18545_v5  ;;  %16380 = vmatprep.mubr.msk.f32.mxu0 %vm18019_vm1, %v20570_v12  ;;  %v18669_v61 = vand.u32 4294901760, %v18658_v57 }
 0x231   :  { %16383 = vmatprep.subr.mxu0 %v20570_v12 }
 0x232   :  { %16181 = vmatmul.mubr.f32.vlgmr.msra.gmra.mrb[4].mxu1 %v18497_v45 }
 0x233   :  { %16184 = vmatpush3.xpose.msra.mxu1 %v18567_v22  ;;  %16185 = vmatprep.mubr.msk.f32.mxu1 %vm18019_vm1, %v20570_v12 }
 0x234   :  { %16188 = vmatprep.subr.mxu1 %v20570_v12 }
 0x236   :  { %16186 = vmatmul.mubr.f32.vlgmr.msra.gmra.mrb[6].mxu1 %v2323_v33 }
 0x237   :  { %16189 = vmatpush3.xpose.msra.mxu1 %v2334_v26  ;;  %16381 = vmatmul.mubr.f32.vlgmr.msra.gmra.mrb[12].mxu0 %v18428_v31  ;;  %v6361_v31 = vand.u32 4294901760, %v6360_v35 }
 0x238   :  { %16384 = vmatpush3.xpose.msra.mxu0 %v5461_v10  ;;  %16190 = vmatprep.mubr.msk.f32.mxu1 %vm18019_vm1, %v20570_v12 }
 0x239   :  { %16193 = vmatprep.subr.mxu1 %v20570_v12  ;;  %16385 = vmatprep.mubr.msk.f32.mxu0 %vm18019_vm1, %v20570_v12  ;;  %v6362_v37 = vsub.f32 %v6360_v35, %v6361_v31 }
 0x23a   :  { %16388 = vmatprep.subr.mxu0 %v20570_v12 }
 0x23b   :  { %v6363_v39 = vand.u32 4294901760, %v6362_v37 }
 0x23e   :  { %16191 = vmatmul.mubr.f32.vlgmr.msra.gmra.mrb[6].mxu1 %v18569_v25 }
 0x23f   :  { %16194 = vmatpush3.xpose.msra.mxu1 %v18575_v41  ;;  %16386 = vmatmul.mubr.f32.vlgmr.msra.gmra.mrb[12].mxu0 %v18396_v20  ;;  %v889_v41 = vld [vmem:[%s20548_s3 + $0x30] sm:$0xff] }
 0x240   :  { %16389 = vmatpush3.xpose.msra.mxu0 %v18545_v5  ;;  %16195 = vmatprep.mubr.msk.f32.mxu1 %vm18019_vm1, %v20570_v12  ;;  %v2774_v5 = vsub.f32 %v18658_v57, %v18669_v61 }
 0x241   :  { %16198 = vmatprep.subr.mxu1 %v20570_v12  ;;  %16390 = vmatprep.mubr.msk.f32.mxu0 %vm18019_vm1, %v20570_v12 }
 0x242   :  { %16423 = vmatprep.subr.mxu0 %v20570_v12  ;;  %v18683_v10 = vand.u32 4294901760, %v2774_v5 }
 0x246   :  { %16196 = vmatmul.mubr.f32.vlgmr.msra.gmra.mrb[6].mxu1 %v18578_v27 }
 0x247   :  { %16199 = vmatpush3.xpose.msra.mxu1 %v18567_v22  ;;  %16391 = vmatmul.mubr.f32.vlgmr.msra.gmra.mrb[12].mxu0 %v18396_v20  ;;  %v2703_v20 = vsel %vm80_vm0, %v887_v38, 0 }
 0x248   :  { %16424 = vmatpush3.xpose.msra.mxu0 %v18614_v34  ;;  %16425 = vmatprep.mubr.msk.f32.mxu0 %vm18019_vm1, %v20570_v12  ;;  %v18650_v43 = vand.u32 4294901760, %v2703_v20 }
 0x249   :  { %16428 = vmatprep.subr.mxu0 %v20570_v12  ;;  %16200 = vmatprep.mubr.msk.f32.mxu1 %vm18019_vm1, %v20570_v12 }
 0x24a   :  { %16203 = vmatprep.subr.mxu1 %v20570_v12  ;;  %v2783_v56 = vsub.f32 %v2703_v20, %v18650_v43 }
 0x24b   :  { %16426 = vmatmul.mubr.f32.vlgmr.msra.gmra.mrb[14].mxu0 %v2323_v33 }
 0x24c   :  { %16429 = vmatpush3.xpose.msra.mxu0 %v6363_v39  ;;  %16430 = vmatprep.mubr.msk.f32.mxu0 %vm18019_vm1, %v20570_v12  ;;  %v2784_v59 = vand.u32 4294901760, %v2783_v56 }
 0x24d   :  { %16433 = vmatprep.subr.mxu0 %v20570_v12 }
 0x24e   :  { %16201 = vmatmul.mubr.f32.vlgmr.msra.gmra.mrb[6].mxu1 %v18590_v30  ;;  %v2785_v63 = vsub.f32 %v2783_v56, %v2784_v59 }
 0x24f   :  { %16204 = vmatpush3.xpose.msra.mxu1 %v2332_v28  ;;  %16205 = vmatprep.mubr.msk.f32.mxu1 %vm18019_vm1, %v20570_v12  ;;  %v3604_v28 = vsel %vm80_vm0, %v18348_v6, 0 }
 0x250   :  { %16208 = vmatprep.subr.mxu1 %v20570_v12  ;;  %v2786_v7 = vand.u32 4294901760, %v2785_v63  ;;  %v4929_v63 = vpop.permute.xlu0 %4928 }
 0x253   :  { %16431 = vmatmul.mubr.f32.vlgmr.msra.gmra.mrb[14].mxu0 %v18569_v25 }
 0x254   :  { %16434 = vmatpush3.xpose.msra.mxu0 %v6360_v35  ;;  %16435 = vmatprep.mubr.msk.f32.mxu0 %vm18019_vm1, %v20570_v12 }
 0x255   :  { %16438 = vmatprep.subr.mxu0 %v20570_v12 }
 0x256   :  { %16206 = vmatmul.mubr.f32.vlgmr.msra.gmra.mrb[6].mxu1 %v18569_v25 }
 0x257   :  { %16209 = vmatpush3.xpose.msra.mxu1 %v18567_v22  ;;  %16210 = vmatprep.mubr.msk.f32.mxu1 %vm18019_vm1, %v20570_v12  ;;  %v7262_v22 = vsub.f32 %v7260_v18, %v7261_v21 }
 0x258   :  { %16213 = vmatprep.subr.mxu1 %v20570_v12 }
 0x25b   :  { %16436 = vmatmul.mubr.f32.vlgmr.msra.gmra.mrb[14].mxu0 %v18578_v27  ;;  %v7263_v27 = vand.u32 4294901760, %v7262_v22 }
 0x25c   :  { %16439 = vmatpush3.xpose.msra.mxu0 %v18614_v34  ;;  %16440 = vmatprep.mubr.msk.f32.mxu0 %vm18019_vm1, %v20570_v12 }
 0x25d   :  { %16443 = vmatprep.subr.mxu0 %v20570_v12 }
 0x25e   :  { %16211 = vmatmul.mubr.f32.vlgmr.msra.gmra.mrb[6].mxu1 %v18569_v25 }
 0x25f   :  { %16214 = vmatpush3.xpose.msra.mxu1 %v18650_v43  ;;  %16215 = vmatprep.mubr.msk.f32.mxu1 %vm18019_vm1, %v20570_v12 }
 0x260   :  { %16218 = vmatprep.subr.mxu1 %v20570_v12 }
 0x262   :  { %16216 = vmatmul.mubr.f32.vlgmr.msra.gmra.mrb[8].mxu1 %v18683_v10 }
 0x263   :  { %16219 = vmatpush3.xpose.msra.mxu1 %v2786_v7  ;;  %16441 = vmatmul.mubr.f32.vlgmr.msra.gmra.mrb[14].mxu0 %v18590_v30 }
 0x264   :  { %16444 = vmatpush3.xpose.msra.mxu0 %v6361_v31  ;;  %16220 = vmatprep.mubr.msk.f32.mxu1 %vm18019_vm1, %v20570_v12 }
 0x265   :  { %16223 = vmatprep.subr.mxu1 %v20570_v12  ;;  %16445 = vmatprep.mubr.msk.f32.mxu0 %vm18019_vm1, %v20570_v12 }
 0x266   :  { %16448 = vmatprep.subr.mxu0 %v20570_v12 }
 0x26a   :  { %16221 = vmatmul.mubr.f32.vlgmr.msra.gmra.mrb[8].mxu1 %v18652_v49 }
 0x26b   :  { %16224 = vmatpush3.xpose.msra.mxu1 %v2783_v56  ;;  %16446 = vmatmul.mubr.f32.vlgmr.msra.gmra.mrb[14].mxu0 %v18569_v25 }
 0x26c   :  { %16449 = vmatpush3.xpose.msra.mxu0 %v18614_v34  ;;  %16225 = vmatprep.mubr.msk.f32.mxu1 %vm18019_vm1, %v20570_v12  ;;  %v8079_v34 = vpop.permute.xlu1 %8078 }
 0x26d   :  { %16228 = vmatprep.subr.mxu1 %v20570_v12  ;;  %16450 = vmatprep.mubr.msk.f32.mxu0 %vm18019_vm1, %v20570_v12  ;;  %v8080_v31 = vsel %vm80_vm0, %v8079_v34, 0 }
 0x26e   :  { %16483 = vmatprep.subr.mxu0 %v20570_v12  ;;  %v18776_v37 = vand.u32 4294901760, %v8080_v31 }
 0x270   :  { %v18780_v38 = vsub.f32 %v8080_v31, %v18776_v37 }
 0x272   :  { %16226 = vmatmul.mubr.f32.vlgmr.msra.gmra.mrb[8].mxu1 %v18658_v57  ;;  %v8161_v39 = vand.u32 4294901760, %v18780_v38 }
 0x273   :  { %16229 = vmatpush3.xpose.msra.mxu1 %v18650_v43  ;;  %16451 = vmatmul.mubr.f32.vlgmr.msra.gmra.mrb[14].mxu0 %v18569_v25  ;;  %v3607_v25 = vsel %vm80_vm0, %v889_v41, 0 }
 0x274   :  { %16484 = vmatpush3.xpose.msra.mxu0 %v18693_v14  ;;  %16485 = vmatprep.mubr.msk.f32.mxu0 %vm18019_vm1, %v20570_v12  ;;  %v18729_v30 = vand.u32 4294901760, %v3607_v25  ;;  %v8162_v56 = vsub.f32 %v18780_v38, %v8161_v39 }
 0x275   :  { %16488 = vmatprep.subr.mxu0 %v20570_v12  ;;  %16230 = vmatprep.mubr.msk.f32.mxu1 %vm18019_vm1, %v20570_v12 }
 0x276   :  { %16233 = vmatprep.subr.mxu1 %v20570_v12  ;;  %v18736_v17 = vsub.f32 %v3607_v25, %v18729_v30  ;;  %v20566_v25 = vmov 3  }
 0x277   :  { %16486 = vmatmul.mubr.f32.vlgmr.msra.gmra.mrb[16].mxu0 %v18356_v8  ;;  %v18731_v8 = vand.u32 4294901760, %v3604_v28 }
 0x278   :  { %16489 = vmatpush3.xpose.msra.mxu0 %v7263_v27  ;;  %16490 = vmatprep.mubr.msk.f32.mxu0 %vm18019_vm1, %v20570_v12  ;;  %v3688_v26 = vand.u32 4294901760, %v18736_v17 }
 0x279   :  { %16493 = vmatprep.subr.mxu0 %v20570_v12  ;;  %v18739_v19 = vsub.f32 %v3604_v28, %v18731_v8  ;;  %v20561_v28 = vmov 0  }
 0x27a   :  { %16231 = vmatmul.mubr.f32.vlgmr.msra.gmra.mrb[8].mxu1 %v18669_v61  ;;  %v3689_v33 = vsub.f32 %v18736_v17, %v3688_v26 }
 0x27b   :  { %16234 = vmatpush3.xpose.msra.mxu1 %v2784_v59  ;;  %16235 = vmatprep.mubr.msk.f32.mxu1 %vm18019_vm1, %v20570_v12  ;;  %v18751_v24 = vand.u32 4294901760, %v18739_v19  ;;  %v8163_v59 = vand.u32 4294901760, %v8162_v56 }
 0x27c   :  { %16238 = vmatprep.subr.mxu1 %v20570_v12 }
 0x27d   :  { %v3678_v23 = vsub.f32 %v18739_v19, %v18751_v24 }
 0x27f   :  { %16491 = vmatmul.mubr.f32.vlgmr.msra.gmra.mrb[16].mxu0 %v18325_v58  ;;  %v18766_v35 = vand.u32 4294901760, %v3678_v23 }
 0x280   :  { %16494 = vmatpush3.xpose.msra.mxu0 %v7260_v18  ;;  %16495 = vmatprep.mubr.msk.f32.mxu0 %vm18019_vm1, %v20570_v12  ;;  %v20569_v18 = vmov 5  }
 0x281   :  { %16498 = vmatprep.subr.mxu0 %v20570_v12 }
 0x282   :  { %16236 = vmatmul.mubr.f32.vlgmr.msra.gmra.mrb[8].mxu1 %v18652_v49 }
 0x283   :  { %16239 = vmatpush3.xpose.msra.mxu1 %v18650_v43  ;;  %16240 = vmatprep.mubr.msk.f32.mxu1 %vm18019_vm1, %v20570_v12 }
 0x284   :  { %16273 = vmatprep.subr.mxu1 %v20570_v12 }
 0x287   :  { %16496 = vmatmul.mubr.f32.vlgmr.msra.gmra.mrb[16].mxu0 %v18335_v3  ;;  %v3690_v3 = vand.u32 4294901760, %v3689_v33 }
 0x288   :  { %16499 = vmatpush3.xpose.msra.mxu0 %v18693_v14  ;;  %16500 = vmatprep.mubr.msk.f32.mxu0 %vm18019_vm1, %v20570_v12 }
 0x289   :  { %16503 = vmatprep.subr.mxu0 %v20570_v12 }
 0x28a   :  { %16241 = vmatmul.mubr.f32.vlgmr.msra.gmra.mrb[8].mxu1 %v18652_v49 }
 0x28b   :  { %16274 = vmatpush3.xpose.msra.mxu1 %v18729_v30  ;;  %16275 = vmatprep.mubr.msk.f32.mxu1 %vm18019_vm1, %v20570_v12 }
 0x28c   :  { %16278 = vmatprep.subr.mxu1 %v20570_v12 }
 0x28e   :  { %16276 = vmatmul.mubr.f32.vlgmr.msra.gmra.mrb[10].mxu1 %v18766_v35 }
 0x28f   :  { %16279 = vmatpush3.xpose.msra.mxu1 %v3690_v3  ;;  %16501 = vmatmul.mubr.f32.vlgmr.msra.gmra.mrb[16].mxu0 %v18341_v4  ;;  %v4507_v4 = vlaneseq }
 0x290   :  { %16504 = vmatpush3.xpose.msra.mxu0 %v7261_v21  ;;  %16280 = vmatprep.mubr.msk.f32.mxu1 %vm18019_vm1, %v20570_v12 }
 0x291   :  { %16283 = vmatprep.subr.mxu1 %v20570_v12  ;;  %16505 = vmatprep.mubr.msk.f32.mxu0 %vm18019_vm1, %v20570_v12  ;;  %v18793_v20 = vshrl.u32 %v4507_v4, 7  ;;  %v18795_v42 = vand.u32 127, %v4507_v4 }
 0x292   :  { %16508 = vmatprep.subr.mxu0 %v20570_v12 }
 0x293   :  { %v18799_v43 = vsub.s32 %v18793_v20, %v18795_v42  ;;  %vm19028_vm2 = vcmp.le.s32.totalorder %v18795_v42, %v18793_v20 }
 0x295   :  { %vm4571_vm4 = vcmp.eq.s32.totalorder %v18799_v43, 1  ;;  %vm4512_vm5 = vcmp.eq.s32.totalorder %v18799_v43, 0  ;;  %vm4622_vm6 = vcmp.eq.s32.totalorder %v18799_v43, 2  ;;  %vm4673_vm7 = vcmp.eq.s32.totalorder %v18799_v43, 3 }
 0x296   :  { %16281 = vmatmul.mubr.f32.vlgmr.msra.gmra.mrb[10].mxu1 %v18731_v8  ;;  %vm4724_vm8 = vcmp.eq.s32.totalorder %v18799_v43, 4  ;;  %vm4775_vm9 = vcmp.eq.s32.totalorder %v18799_v43, 5  ;;  %vm4826_vm10 = vcmp.eq.s32.totalorder %v18799_v43, 6  ;;  %vm4877_vm11 = vcmp.eq.s32.totalorder %v18799_v43, 7 }
 0x297   :  { %16284 = vmatpush3.xpose.msra.mxu1 %v18736_v17  ;;  %16506 = vmatmul.mubr.f32.vlgmr.msra.gmra.mrb[16].mxu0 %v18325_v58 }
 0x298   :  { %16509 = vmatpush3.xpose.msra.mxu0 %v18693_v14  ;;  %16285 = vmatprep.mubr.msk.f32.mxu1 %vm18019_vm1, %v20570_v12  ;;  %v20564_v14 = vmov 2  }
 0x299   :  { %16288 = vmatprep.subr.mxu1 %v20570_v12  ;;  %16510 = vmatprep.mubr.msk.f32.mxu0 %vm18019_vm1, %v20570_v12 }
 0x29a   :  { %16543 = vmatprep.subr.mxu0 %v20570_v12 }
 0x29e   :  { %16286 = vmatmul.mubr.f32.vlgmr.msra.gmra.mrb[10].mxu1 %v18739_v19 }
 0x29f   :  { %16289 = vmatpush3.xpose.msra.mxu1 %v18729_v30  ;;  %16511 = vmatmul.mubr.f32.vlgmr.msra.gmra.mrb[16].mxu0 %v18325_v58  ;;  %v4930_v58 = vsel %vm80_vm0, %v4929_v63, 0 }
 0x2a0   :  { %16544 = vmatpush3.xpose.msra.mxu0 %v18776_v37  ;;  %16545 = vmatprep.mubr.msk.f32.mxu0 %vm18019_vm1, %v20570_v12  ;;  %v18823_v5 = vand.u32 4294901760, %v4930_v58 }
 0x2a1   :  { %16548 = vmatprep.subr.mxu0 %v20570_v12  ;;  %16290 = vmatprep.mubr.msk.f32.mxu1 %vm18019_vm1, %v20570_v12 }
 0x2a2   :  { %16293 = vmatprep.subr.mxu1 %v20570_v12 }
 0x2a3   :  { %16546 = vmatmul.mubr.f32.vlgmr.msra.gmra.mrb[18].mxu0 %v18463_v36  ;;  %v18830_v36 = vsub.f32 %v4930_v58, %v18823_v5 }
 0x2a4   :  { %16549 = vmatpush3.xpose.msra.mxu0 %v8163_v59  ;;  %16550 = vmatprep.mubr.msk.f32.mxu0 %vm18019_vm1, %v20570_v12 }
 0x2a5   :  { %16553 = vmatprep.subr.mxu0 %v20570_v12  ;;  %v5011_v13 = vand.u32 4294901760, %v18830_v36 }
 0x2a6   :  { %16291 = vmatmul.mubr.f32.vlgmr.msra.gmra.mrb[10].mxu1 %v18751_v24 }
 0x2a7   :  { %16294 = vmatpush3.xpose.msra.mxu1 %v3688_v26  ;;  %16295 = vmatprep.mubr.msk.f32.mxu1 %vm18019_vm1, %v20570_v12  ;;  %v5012_v22 = vsub.f32 %v18830_v36, %v5011_v13 }
 0x2a8   :  { %16298 = vmatprep.subr.mxu1 %v20570_v12 }
 0x2a9   :  { %v5013_v27 = vand.u32 4294901760, %v5012_v22 }
 0x2ab   :  { %16551 = vmatmul.mubr.f32.vlgmr.msra.gmra.mrb[18].mxu0 %v18418_v29 }
 0x2ac   :  { %16554 = vmatpush3.xpose.msra.mxu0 %v18780_v38  ;;  %16555 = vmatprep.mubr.msk.f32.mxu0 %vm18019_vm1, %v20570_v12 }
 0x2ad   :  { %v1339_v7 = vpop.f32.mrb[0].mxu1  ;;  %16558 = vmatprep.subr.mxu0 %v20570_v12 }
 0x2ae   :  { %16296 = vmatmul.mubr.f32.vlgmr.msra.gmra.mrb[10].mxu1 %v18731_v8  ;;  %4575 = vperm.xlu0 %17907, %v1339_v7   ;;  %v16122_v9 = vpop.f32.mrb[1].mxu1 }
 0x2af   :  { %16299 = vmatpush3.xpose.msra.mxu1 %v18729_v30  ;;  %4517 = vperm.xlu1 %17906, %v1339_v7  }
 0x2b0   :  { %16300 = vmatprep.mubr.msk.f32.mxu1 %vm18019_vm1, %v20570_v12  ;;  %16333 = vmatprep.subr.mxu1 %v20570_v12 }
 0x2b2   :  { %17911 = vset.pattern.permute.xlu0 %v20564_v14 }
 0x2b3   :  { %17908 = vset.pattern.permute.xlu1 %v20569_v18  ;;  %16556 = vmatmul.mubr.f32.vlgmr.msra.gmra.mrb[18].mxu0 %v18433_v11  ;;  %v20568_v11 = vmov 4  }
 0x2b4   :  { %16559 = vmatpush3.xpose.msra.mxu0 %v18776_v37  ;;  %4779 = vperm.xlu0 %17911, %v1339_v7   ;;  %v18843_v21 = vpop.f32.mrb[8].mxu0 }
 0x2b5   :  { %4626 = vperm.xlu1 %17908, %v1339_v7   ;;  %v16272_v41 = vpop.f32.mrb[9].mxu0  ;;  %16560 = vmatprep.mubr.msk.f32.mxu0 %vm18019_vm1, %v20570_v12 }
 0x2b6   :  { %16301 = vmatmul.mubr.f32.vlgmr.msra.gmra.mrb[10].mxu1 %v18731_v8  ;;  %16563 = vmatprep.subr.mxu0 %v20570_v12 }
 0x2b7   :  { %16334 = vmatpush3.xpose.msra.mxu1 %v18823_v5  ;;  %16335 = vmatprep.mubr.msk.f32.mxu1 %vm18019_vm1, %v20570_v12 }
 0x2b8   :  { %4799 = vperm.xlu0 %17911, %v18843_v21   ;;  %16338 = vmatprep.subr.mxu1 %v20570_v12 }
 0x2b9   :  { %17909 = vset.pattern.permute.xlu1 %v20568_v11 }
 0x2ba   :  { %4677 = vperm.xlu1 %17909, %v1339_v7   ;;  %16336 = vmatmul.mubr.f32.vlgmr.msra.gmra.mrb[12].mxu1 %v18332_v2  ;;  %v20563_v2 = vmov 1  }
 0x2bb   :  { %16339 = vmatpush3.xpose.msra.mxu1 %v5013_v27  ;;  %16561 = vmatmul.mubr.f32.vlgmr.msra.gmra.mrb[18].mxu0 %v18445_v32  ;;  %v18881_v32 = vpop.permute.xlu1 %9096 }
 0x2bc   :  { %16564 = vmatpush3.xpose.msra.mxu0 %v8161_v39  ;;  %16340 = vmatprep.mubr.msk.f32.mxu1 %vm18019_vm1, %v20570_v12  ;;  %v18886_v30 = vand.u32 4294901760, %v18881_v32 }
 0x2bd   :  { %16343 = vmatprep.subr.mxu1 %v20570_v12  ;;  %16565 = vmatprep.mubr.msk.f32.mxu0 %vm18019_vm1, %v20570_v12 }
 0x2be   :  { %17910 = vset.pattern.permute.xlu1 %v20566_v25  ;;  %16568 = vmatprep.subr.mxu0 %v20570_v12 }
 0x2bf   :  { %4728 = vperm.xlu1 %17910, %v1339_v7   ;;  %17926 = vset.pattern.permute.xlu0 %v20563_v2  ;;  %v19014_v22 = vpop.permute.xlu1 %9548 }
 0x2c0   :  { %20589 = vst [vmem:[#allocation8_spill] sm:$0xff] %v19014_v22 }
 0x2c2   :  { %16341 = vmatmul.mubr.f32.vlgmr.msra.gmra.mrb[12].mxu1 %v18293_v40 }
 0x2c3   :  { %17912 = vset.pattern.permute.xlu1 %v20563_v2  ;;  %16344 = vmatpush3.xpose.msra.mxu1 %v18830_v36 }
 0x2c4   :  { %4830 = vperm.xlu1 %17912, %v1339_v7   ;;  %16566 = vmatmul.mubr.f32.vlgmr.msra.gmra.mrb[18].mxu0 %v18418_v29 }
 0x2c5   :  { %16569 = vmatpush3.xpose.msra.mxu0 %v18776_v37  ;;  %16345 = vmatprep.mubr.msk.f32.mxu1 %vm18019_vm1, %v20570_v12 }
 0x2c6   :  { %16348 = vmatprep.subr.mxu1 %v20570_v12  ;;  %16570 = vmatprep.mubr.msk.f32.mxu0 %vm18019_vm1, %v20570_v12 }
 0x2c7   :  { %16603 = vmatprep.subr.mxu0 %v20570_v12 }
 0x2c8   :  { %17913 = vset.pattern.permute.xlu1 %v20561_v28 }
 0x2c9   :  { %4881 = vperm.xlu1 %17913, %v1339_v7  }
 0x2ca   :  { %16346 = vmatmul.mubr.f32.vlgmr.msra.gmra.mrb[12].mxu1 %v18300_v44  ;;  %v5829_v44 = vpop.permute.xlu0 %5828 }
 0x2cb   :  { %16349 = vmatpush3.xpose.msra.mxu1 %v18823_v5  ;;  %16350 = vmatprep.mubr.msk.f32.mxu1 %vm18019_vm1, %v20570_v12  ;;  %v5830_v17 = vsel %vm80_vm0, %v5829_v44, 0 }
 0x2cc   :  { %16571 = vmatmul.mubr.f32.vlgmr.msra.gmra.mrb[18].mxu0 %v18418_v29  ;;  %16353 = vmatprep.subr.mxu1 %v20570_v12  ;;  %v5833_v29 = vand.u32 4294901760, %v5830_v17 }
 0x2cd   :  { %16604 = vmatpush3.msra.mxu0 %v18886_v30  ;;  %17914 = vset.pattern.permute.xlu1 %v20574_v16 }
 0x2ce   :  { %4542 = vperm.xlu1 %17914, %v18843_v21   ;;  %16605 = vmatprep.mubr.msk.f32.mxu0 %vm18019_vm1, %v20570_v12  ;;  %v5910_v26 = vsub.f32 %v5830_v17, %v5833_v29 }
 0x2cf   :  { %16608 = vmatprep.subr.mxu0 %v20570_v12 }
 0x2d0   :  { %v5911_v23 = vand.u32 4294901760, %v5910_v26 }
 0x2d2   :  { %17915 = vset.pattern.permute.xlu1 %v20572_v15  ;;  %16351 = vmatmul.mubr.f32.vlgmr.msra.gmra.mrb[12].mxu1 %v18315_v52  ;;  %v5912_v34 = vsub.f32 %v5910_v26, %v5911_v23 }
 0x2d3   :  { %4595 = vperm.xlu1 %17915, %v18843_v21   ;;  %16354 = vmatpush3.xpose.msra.mxu1 %v5011_v13 }
 0x2d4   :  { %16355 = vmatprep.mubr.msk.f32.mxu1 %vm18019_vm1, %v20570_v12  ;;  %16358 = vmatprep.subr.mxu1 %v20570_v12  ;;  %v5913_v37 = vand.u32 4294901760, %v5912_v34 }
 0x2d7   :  { %17916 = vset.pattern.permute.xlu1 %v20569_v18 }
 0x2d8   :  { %4646 = vperm.xlu1 %17916, %v18843_v21  }
 0x2d9   :  { %v18910_v33 = vpop.f32.mrb[2].mxu1 }
 0x2da   :  { %16356 = vmatmul.mubr.f32.vlgmr.msra.gmra.mrb[12].mxu1 %v18293_v40  ;;  %4834 = vperm.xlu0 %17926, %v18910_v33   ;;  %v16152_v52 = vpop.f32.mrb[3].mxu1 }
 0x2db   :  { %16359 = vmatpush3.xpose.msra.mxu1 %v18823_v5  ;;  %16360 = vmatprep.mubr.msk.f32.mxu1 %vm18019_vm1, %v20570_v12 }
 0x2dc   :  { %17917 = vset.pattern.permute.xlu1 %v20568_v11  ;;  %16393 = vmatprep.subr.mxu1 %v20570_v12 }
 0x2dd   :  { %4697 = vperm.xlu1 %17917, %v18843_v21  }
 0x2de   :  { %17929 = vset.pattern.permute.xlu0 %v20572_v15 }
 0x2e0   :  { %v18921_v3 = vpop.f32.mrb[10].mxu0 }
 0x2e1   :  { %17918 = vset.pattern.permute.xlu1 %v20566_v25  ;;  %v16332_v31 = vpop.f32.mrb[11].mxu0 }
 0x2e2   :  { %4748 = vperm.xlu1 %17918, %v18843_v21   ;;  %16361 = vmatmul.mubr.f32.vlgmr.msra.gmra.mrb[12].mxu1 %v18293_v40  ;;  %v6729_v40 = vpop.permute.xlu0 %6728 }
 0x2e3   :  { %16394 = vmatpush3.xpose.msra.mxu1 %v5833_v29  ;;  %16395 = vmatprep.mubr.msk.f32.mxu1 %vm18019_vm1, %v20570_v12 }
 0x2e4   :  { %16398 = vmatprep.subr.mxu1 %v20570_v12 }
 0x2e6   :  { %17919 = vset.pattern.permute.xlu1 %v20563_v2  ;;  %16396 = vmatmul.mubr.f32.vlgmr.msra.gmra.mrb[14].mxu1 %v18528_v60  ;;  %v6730_v60 = vsel %vm80_vm0, %v6729_v40, 0 }
 0x2e7   :  { %4850 = vperm.xlu1 %17919, %v18843_v21   ;;  %16399 = vmatpush3.xpose.msra.mxu1 %v5913_v37 }
 0x2e8   :  { %16400 = vmatprep.mubr.msk.f32.mxu1 %vm18019_vm1, %v20570_v12  ;;  %16403 = vmatprep.subr.mxu1 %v20570_v12 }
 0x2eb   :  { %17920 = vset.pattern.permute.xlu1 %v20574_v16 }
 0x2ec   :  { %4522 = vperm.xlu1 %17920, %v18910_v33  }
 0x2ee   :  { %16401 = vmatmul.mubr.f32.vlgmr.msra.gmra.mrb[14].mxu1 %v18497_v45 }
 0x2ef   :  { %16404 = vmatpush3.xpose.msra.mxu1 %v5910_v26  ;;  %16405 = vmatprep.mubr.msk.f32.mxu1 %vm18019_vm1, %v20570_v12 }
 0x2f0   :  { %17921 = vset.pattern.permute.xlu1 %v20572_v15  ;;  %16408 = vmatprep.subr.mxu1 %v20570_v12 }
 0x2f1   :  { %4579 = vperm.xlu1 %17921, %v18910_v33  }
 0x2f5   :  { %17922 = vset.pattern.permute.xlu1 %v20569_v18 }
 0x2f6   :  { %4630 = vperm.xlu1 %17922, %v18910_v33   ;;  %16406 = vmatmul.mubr.f32.vlgmr.msra.gmra.mrb[14].mxu1 %v18505_v48  ;;  %v18957_v48 = vand.u32 4294901760, %v6730_v60 }
 0x2f7   :  { %16409 = vmatpush3.xpose.msra.mxu1 %v5833_v29  ;;  %16410 = vmatprep.mubr.msk.f32.mxu1 %vm18019_vm1, %v20570_v12 }
 0x2f8   :  { %16413 = vmatprep.subr.mxu1 %v20570_v12  ;;  %v6810_v38 = vsub.f32 %v6730_v60, %v18957_v48 }
 0x2fa   :  { %17923 = vset.pattern.permute.xlu1 %v20568_v11  ;;  %v6811_v39 = vand.u32 4294901760, %v6810_v38 }
 0x2fb   :  { %4681 = vperm.xlu1 %17923, %v18910_v33  }
 0x2fc   :  { %v6812_v56 = vsub.f32 %v6810_v38, %v6811_v39 }
 0x2fe   :  { %16411 = vmatmul.mubr.f32.vlgmr.msra.gmra.mrb[14].mxu1 %v18516_v51  ;;  %v6813_v59 = vand.u32 4294901760, %v6812_v56 }
 0x2ff   :  { %17924 = vset.pattern.permute.xlu1 %v20566_v25  ;;  %16414 = vmatpush3.xpose.msra.mxu1 %v5911_v23 }
 0x300   :  { %4732 = vperm.xlu1 %17924, %v18910_v33   ;;  %16415 = vmatprep.mubr.msk.f32.mxu1 %vm18019_vm1, %v20570_v12 }
 0x301   :  { %16418 = vmatprep.subr.mxu1 %v20570_v12 }
 0x304   :  { %17925 = vset.pattern.permute.xlu1 %v20564_v14 }
 0x305   :  { %4783 = vperm.xlu1 %17925, %v18910_v33   ;;  %v2243_v4 = vpop.f32.mrb[4].mxu1 }
 0x306   :  { %16416 = vmatmul.mubr.f32.vlgmr.msra.gmra.mrb[14].mxu1 %v18497_v45  ;;  %4583 = vperm.xlu0 %17929, %v2243_v4   ;;  %v16182_v51 = vpop.f32.mrb[5].mxu1 }
 0x307   :  { %16419 = vmatpush3.xpose.msra.mxu1 %v5833_v29  ;;  %16420 = vmatprep.mubr.msk.f32.mxu1 %vm18019_vm1, %v20570_v12 }
 0x308   :  { %16453 = vmatprep.subr.mxu1 %v20570_v12 }
 0x309   :  { %17927 = vset.pattern.permute.xlu1 %v20561_v28 }
 0x30a   :  { %4885 = vperm.xlu1 %17927, %v18910_v33   ;;  %17934 = vset.pattern.permute.xlu0 %v20563_v2 }
 0x30b   :  { %4838 = vperm.xlu0 %17934, %v2243_v4  }
 0x30e   :  { %17928 = vset.pattern.permute.xlu1 %v20574_v16  ;;  %16421 = vmatmul.mubr.f32.vlgmr.msra.gmra.mrb[14].mxu1 %v18497_v45 }
 0x30f   :  { %4527 = vperm.xlu1 %17928, %v2243_v4   ;;  %16454 = vmatpush3.xpose.msra.mxu1 %v18957_v48 }
 0x310   :  { %16455 = vmatprep.mubr.msk.f32.mxu1 %vm18019_vm1, %v20570_v12  ;;  %16458 = vmatprep.subr.mxu1 %v20570_v12 }
 0x311   :  { %17940 = vset.pattern.permute.xlu0 %v20566_v25 }
 0x312   :  { %16456 = vmatmul.mubr.f32.vlgmr.msra.gmra.mrb[16].mxu1 %v18683_v10  ;;  %v18988_v10 = vpop.permute.xlu0 %8644 }
 0x313   :  { %17930 = vset.pattern.permute.xlu1 %v20569_v18  ;;  %16459 = vmatpush3.xpose.msra.mxu1 %v6813_v59  ;;  %v19078_v60 = vand.u32 4294901760, %v18988_v10 }
 0x314   :  { %4634 = vperm.xlu1 %17930, %v2243_v4   ;;  %16460 = vmatprep.mubr.msk.f32.mxu1 %vm18019_vm1, %v20570_v12 }
 0x315   :  { %16463 = vmatprep.subr.mxu1 %v20570_v12 }
 0x316   :  { %v7629_v58 = vpop.permute.xlu0 %7628 }
 0x317   :  { %v7630_v5 = vsel %vm80_vm0, %v7629_v58, 0 }
 0x318   :  { %17931 = vset.pattern.permute.xlu1 %v20568_v11 }
 0x319   :  { %4685 = vperm.xlu1 %17931, %v2243_v4  }
 0x31a   :  { %v5824_v45 = vpop.f32.mrb[12].mxu0  ;;  %16461 = vmatmul.mubr.f32.vlgmr.msra.gmra.mrb[16].mxu1 %v18652_v49 }
 0x31b   :  { %16464 = vmatpush3.xpose.msra.mxu1 %v6810_v38  ;;  %v16392_v63 = vpop.f32.mrb[13].mxu0  ;;  %16465 = vmatprep.mubr.msk.f32.mxu1 %vm18019_vm1, %v20570_v12  ;;  %v8532_v44 = vsel %vm19028_vm2, -1e+20, %v5824_v45 }
 0x31c   :  { %16468 = vmatprep.subr.mxu1 %v20570_v12  ;;  %v19037_v29 = vmul.f32 0.17677669, %v8532_v44 }
 0x31d   :  { %17932 = vset.pattern.permute.xlu1 %v20566_v25 }
 0x31e   :  { %4736 = vperm.xlu1 %17932, %v2243_v4   ;;  %v8551_v42 = vsel %vm8547_vm3, %v19037_v29, -inf }
 0x322   :  { %17933 = vset.pattern.permute.xlu1 %v20564_v14  ;;  %16466 = vmatmul.mubr.f32.vlgmr.msra.gmra.mrb[16].mxu1 %v18658_v57  ;;  %v7633_v57 = vand.u32 4294901760, %v7630_v5 }
 0x323   :  { %4787 = vperm.xlu1 %17933, %v2243_v4   ;;  %16469 = vmatpush3.xpose.msra.mxu1 %v18957_v48 }
 0x324   :  { %16470 = vmatprep.mubr.msk.f32.mxu1 %vm18019_vm1, %v20570_v12  ;;  %16473 = vmatprep.subr.mxu1 %v20570_v12  ;;  %v7710_v36 = vsub.f32 %v7630_v5, %v7633_v57 }
 0x327   :  { %17935 = vset.pattern.permute.xlu1 %v20561_v28 }
 0x328   :  { %4889 = vperm.xlu1 %17935, %v2243_v4  }
 0x32a   :  { %16471 = vmatmul.mubr.f32.vlgmr.msra.gmra.mrb[16].mxu1 %v18669_v61  ;;  %v7711_v61 = vand.u32 4294901760, %v7710_v36 }
 0x32b   :  { %16474 = vmatpush3.xpose.msra.mxu1 %v6811_v39  ;;  %16475 = vmatprep.mubr.msk.f32.mxu1 %vm18019_vm1, %v20570_v12 }
 0x32c   :  { %16478 = vmatprep.subr.mxu1 %v20570_v12  ;;  %17936 = vset.pattern.permute.xlu1 %v20574_v16  ;;  %v7712_v13 = vsub.f32 %v7710_v36, %v7711_v61 }
 0x32e   :  { %v7713_v41 = vand.u32 4294901760, %v7712_v13 }
 0x331   :  { %v19003_v7 = vpop.f32.mrb[6].mxu1 }
 0x332   :  { %16476 = vmatmul.mubr.f32.vlgmr.msra.gmra.mrb[16].mxu1 %v18652_v49  ;;  %4740 = vperm.xlu0 %17940, %v19003_v7   ;;  %v16212_v9 = vpop.f32.mrb[7].mxu1 }
 0x333   :  { %16479 = vmatpush3.xpose.msra.mxu1 %v18957_v48  ;;  %16480 = vmatprep.mubr.msk.f32.mxu1 %vm18019_vm1, %v20570_v12 }
 0x334   :  { %16513 = vmatprep.subr.mxu1 %v20570_v12 }
 0x336   :  { %17943 = vset.pattern.permute.xlu0 %v20561_v28 }
 0x337   :  { %4893 = vperm.xlu0 %17943, %v19003_v7  }
 0x33a   :  { %16481 = vmatmul.mubr.f32.vlgmr.msra.gmra.mrb[16].mxu1 %v18652_v49  ;;  %v19024_v49 = vpop.permute.xlu1 %10000 }
 0x33b   :  { %16514 = vmatpush3.xpose.msra.mxu1 %v7633_v57  ;;  %16515 = vmatprep.mubr.msk.f32.mxu1 %vm18019_vm1, %v20570_v12 }
 0x33c   :  { %16518 = vmatprep.subr.mxu1 %v20570_v12  ;;  %17947 = vset.pattern.permute.xlu0 %v20566_v25 }
 0x33e   :  { %16516 = vmatmul.mubr.f32.vlgmr.msra.gmra.mrb[18].mxu1 %v18766_v35  ;;  %v19034_v17 = vpop.permute.xlu1 %4517 }
 0x33f   :  { %16519 = vmatpush3.xpose.msra.mxu1 %v7713_v41  ;;  %16520 = vmatprep.mubr.msk.f32.mxu1 %vm18019_vm1, %v20570_v12 }
 0x340   :  { %16523 = vmatprep.subr.mxu1 %v20570_v12 }
 0x342   :  { %v19042_v20 = vpop.permute.xlu1 %4626 }
 0x346   :  { %v6724_v35 = vpop.f32.mrb[14].mxu0  ;;  %16521 = vmatmul.mubr.f32.vlgmr.msra.gmra.mrb[18].mxu1 %v18731_v8  ;;  %v19052_v52 = vpop.permute.xlu1 %4677 }
 0x347   :  { %16524 = vmatpush3.xpose.msra.mxu1 %v7710_v36  ;;  %v16452_v26 = vpop.f32.mrb[15].mxu0  ;;  %16525 = vmatprep.mubr.msk.f32.mxu1 %vm18019_vm1, %v20570_v12  ;;  %v8534_v33 = vsel %vm19028_vm2, -1e+20, %v6724_v35 }
 0x348   :  { %16528 = vmatprep.subr.mxu1 %v20570_v12  ;;  %v19054_v23 = vmul.f32 0.17677669, %v8534_v33 }
 0x34a   :  { %v8557_v34 = vsel %vm8547_vm3, %v19054_v23, -inf  ;;  %v19059_v31 = vpop.permute.xlu1 %4728 }
 0x34c   :  { %8552 = vmax.xlane.f32.xlu1 %v8551_v42 }
 0x34e   :  { %16526 = vmatmul.mubr.f32.vlgmr.msra.gmra.mrb[18].mxu1 %v18739_v19  ;;  %v19064_v19 = vpop.permute.xlu1 %4830 }
 0x34f   :  { %16529 = vmatpush3.xpose.msra.mxu1 %v7633_v57  ;;  %16530 = vmatprep.mubr.msk.f32.mxu1 %vm18019_vm1, %v20570_v12 }
 0x350   :  { %16533 = vmatprep.subr.mxu1 %v20570_v12 }
 0x356   :  { %16531 = vmatmul.mubr.f32.vlgmr.msra.gmra.mrb[18].mxu1 %v18751_v24  ;;  %8558 = vmax.xlane.f32.xlu0 %v8557_v34  ;;  %v19075_v24 = vpop.permute.xlu1 %4881 }
 0x357   :  { %16534 = vmatpush3.xpose.msra.mxu1 %v7711_v61  ;;  %16535 = vmatprep.mubr.msk.f32.mxu1 %vm18019_vm1, %v20570_v12 }
 0x358   :  { %16538 = vmatprep.subr.mxu1 %v20570_v12 }
 0x35a   :  { %v19087_v48 = vpop.permute.xlu1 %4542 }
 0x35b   :  { %20592 = vst [vmem:[#allocation9_spill] sm:$0xff] %v19087_v48 }
 0x35d   :  { %4532 = vperm.xlu1 %17936, %v19003_v7   ;;  %v19067_v37 = vpop.f32.mrb[8].mxu1 }
 0x35e   :  { %v16242_v40 = vpop.f32.mrb[9].mxu1  ;;  %16536 = vmatmul.mubr.f32.vlgmr.msra.gmra.mrb[18].mxu1 %v18731_v8  ;;  %v19092_v38 = vpop.permute.xlu1 %4595 }
 0x35f   :  { %16539 = vmatpush3.xpose.msra.mxu1 %v7633_v57  ;;  %16540 = vmatprep.mubr.msk.f32.mxu1 %vm18019_vm1, %v20570_v12 }
 0x360   :  { %16573 = vmatprep.subr.mxu1 %v20570_v12 }
 0x361   :  { %17937 = vset.pattern.permute.xlu1 %v20572_v15 }
 0x362   :  { %4587 = vperm.xlu1 %17937, %v19003_v7   ;;  %v19097_v51 = vpop.permute.xlu1 %4646 }
 0x363   :  { %20593 = vst [vmem:[#allocation10_spill] sm:$0xff] %v19097_v51 }
 0x366   :  { %17938 = vset.pattern.permute.xlu1 %v20569_v18  ;;  %16541 = vmatmul.mubr.f32.vlgmr.msra.gmra.mrb[18].mxu1 %v18731_v8  ;;  %v19102_v39 = vpop.permute.xlu1 %4697 }
 0x367   :  { %4638 = vperm.xlu1 %17938, %v19003_v7   ;;  %16574 = vmatpush3.msra.mxu1 %v19078_v60  ;;  %20594 = vst [vmem:[#allocation11_spill] sm:$0xff] %v19102_v39 }
 0x368   :  { %16575 = vmatprep.mubr.msk.f32.mxu1 %vm18019_vm1, %v20570_v12  ;;  %16578 = vmatprep.subr.mxu1 %v20570_v12 }
 0x36a   :  { %v19107_v56 = vpop.permute.xlu1 %4748 }
 0x36b   :  { %17939 = vset.pattern.permute.xlu1 %v20568_v11  ;;  %20595 = vst [vmem:[#allocation12_spill] sm:$0xff] %v19107_v56 }
 0x36c   :  { %4689 = vperm.xlu1 %17939, %v19003_v7   ;;  %4744 = vperm.xlu0 %17947, %v19067_v37  }
 0x36e   :  { %v19111_v59 = vpop.permute.xlu1 %4850 }
 0x36f   :  { %20596 = vst [vmem:[#allocation13_spill] sm:$0xff] %v19111_v59 }
 0x370   :  { %17941 = vset.pattern.permute.xlu1 %v20564_v14  ;;  %17950 = vset.pattern.permute.xlu0 %v20561_v28 }
 0x371   :  { %4791 = vperm.xlu1 %17941, %v19003_v7  }
 0x372   :  { %v7624_v8 = vpop.f32.mrb[16].mxu0  ;;  %v19117_v58 = vpop.permute.xlu1 %4522 }
 0x373   :  { %v16512_v4 = vpop.f32.mrb[17].mxu0  ;;  %v8536_v35 = vsel %vm19028_vm2, -1e+20, %v7624_v8 }
 0x374   :  { %v19140_v42 = vmul.f32 0.17677669, %v8536_v35 }
 0x375   :  { %17942 = vset.pattern.permute.xlu1 %v20563_v2 }
 0x376   :  { %4842 = vperm.xlu1 %17942, %v19003_v7   ;;  %v19121_v5 = vpop.permute.xlu1 %4579  ;;  %v8563_v34 = vsel %vm8547_vm3, %v19140_v42, -inf }
 0x37a   :  { %17944 = vset.pattern.permute.xlu1 %v20572_v15  ;;  %v19124_v57 = vpop.permute.xlu1 %4630 }
 0x37b   :  { %4591 = vperm.xlu1 %17944, %v19067_v37  }
 0x37e   :  { %v19126_v36 = vpop.permute.xlu1 %4681 }
 0x37f   :  { %17945 = vset.pattern.permute.xlu1 %v20569_v18 }
 0x380   :  { %4642 = vperm.xlu1 %17945, %v19067_v37  }
 0x382   :  { %v19134_v44 = vpop.permute.xlu1 %4732 }
 0x384   :  { %17946 = vset.pattern.permute.xlu1 %v20568_v11 }
 0x385   :  { %4693 = vperm.xlu1 %17946, %v19067_v37  }
 0x386   :  { %v19138_v26 = vpop.permute.xlu1 %4783 }
 0x389   :  { %17948 = vset.pattern.permute.xlu1 %v20564_v14  ;;  %v19114_v45 = vpop.f32.mrb[10].mxu1  ;;  %v19165_v14 = vpop.permute.xlu0 %4575 }
 0x38a   :  { %4795 = vperm.xlu1 %17948, %v19067_v37   ;;  %v16302_v63 = vpop.f32.mrb[11].mxu1  ;;  %v19142_v33 = vpop.permute.xlu1 %4885 }
 0x38d   :  { %v19171_v18 = vpop.permute.xlu0 %4779 }
 0x38e   :  { %17949 = vset.pattern.permute.xlu1 %v20563_v2 }
 0x38f   :  { %4846 = vperm.xlu1 %17949, %v19067_v37  }
 0x393   :  { %17952 = vset.pattern.permute.xlu1 %v20561_v28 }
 0x39f   :  { %v8524_v7 = vpop.f32.mrb[18].mxu0 }
 0x3a0   :  { %v8538_v9 = vsel %vm19028_vm2, -1e+20, %v8524_v7  ;;  %v16572_v61 = vpop.f32.mrb[19].mxu0  ;;  %v19148_v7 = vpop.permute.xlu1 %4527 }
 0x3a1   :  { %v19130_v13 = vmul.f32 0.17677669, %v8538_v9 }
 0x3a3   :  { %v8569_v41 = vsel %vm8547_vm3, %v19130_v13, -inf }
 0x3a4   :  { %8570 = vmax.xlane.f32.xlu0 %v8569_v41  ;;  %v19154_v61 = vpop.permute.xlu1 %4634 }
 0x3a8   :  { %v19156_v41 = vpop.permute.xlu1 %4685 }
 0x3ac   :  { %v19158_v35 = vpop.permute.xlu1 %4736 }
 0x3b3   :  { %8564 = vmax.xlane.f32.xlu1 %v8563_v34  ;;  %v19160_v34 = vpop.permute.xlu1 %4787 }
 0x3b4   :  { %20597 = vst [vmem:[#allocation14_spill] sm:$0xff] %v19160_v34 }
 0x3b5   :  { %v5374_v40 = vpop.f32.mrb[12].mxu1 }
 0x3b6   :  { %v8531_v4 = vsel %vm19028_vm2, -1e+20, %v5374_v40  ;;  %v16362_v63 = vpop.f32.mrb[13].mxu1 }
 0x3b7   :  { %v19150_v9 = vmul.f32 0.17677669, %v8531_v4  ;;  %v19162_v28 = vpop.permute.xlu1 %4889 }
 0x3b8   :  { %20598 = vst [vmem:[#allocation15_spill] sm:$0xff] %v19162_v28 }
 0x3b9   :  { %v8548_v8 = vsel %vm8547_vm3, %v19150_v9, -inf }
 0x3ba   :  { %8549 = vmax.xlane.f32.xlu0 %v8548_v8 }
 0x3d9   :  { %v8553_v40 = vpop.xlane.xlu1 %8552 }
 0x3da   :  { %v8573_v63 = vsub.f32 %v19037_v29, %v8553_v40  ;;  %v19179_v29 = vpop.permute.xlu0 %4799 }
 0x3db   :  { %20599 = vst [vmem:[#allocation16_spill] sm:$0xff] %v19179_v29 }
 0x3dc   :  { %v8582_v2 = vmul.f32 1.442695, %v8573_v63 }
 0x3de   :  { %17965 = vpow2.f32 %v8582_v2 }
 0x3e1   :  { %v6274_v4 = vpop.f32.mrb[14].mxu1 }
 0x3e2   :  { %v16422_v25 = vpop.f32.mrb[15].mxu1  ;;  %v8533_v8 = vsel %vm19028_vm2, -1e+20, %v6274_v4 }
 0x3e3   :  { %v19173_v12 = vmul.f32 0.17677669, %v8533_v8  ;;  %v19181_v25 = vpop.permute.xlu0 %4834  ;;  %v19189_v8 = vpop.permute.xlu1 %4532 }
 0x3e5   :  { %v8554_v2 = vsel %vm8547_vm3, %v19173_v12, -inf }
 0x3e7   :  { %v19183_v40 = vpop.permute.xlu0 %4583 }
 0x3e8   :  { %v19169_v11 = vpop.eup %17965 }
 0x3e9   :  { %v8599_v15 = vsel %vm8547_vm3, %v19169_v11, 0.0 }
 0x3ea   :  { %8600 = vadd.xlane.f32.xlu0 %v8599_v15  ;;  %v19194_v15 = vpop.permute.xlu1 %4587 }
 0x3eb   :  { %v19185_v63 = vpop.permute.xlu0 %4838 }
 0x3ec   :  { %20600 = vst [vmem:[#allocation17_spill] sm:$0xff] %v19185_v63 }
 0x3ee   :  { %8555 = vmax.xlane.f32.xlu0 %v8554_v2  ;;  %v19197_v2 = vpop.permute.xlu1 %4638 }
 0x3ef   :  { %v19187_v4 = vpop.permute.xlu0 %4740 }
 0x3f2   :  { %v19206_v28 = vpop.permute.xlu1 %4689 }
 0x3f3   :  { %v19192_v16 = vpop.permute.xlu0 %4893 }
 0x3f6   :  { %v19208_v63 = vpop.permute.xlu1 %4791 }
 0x3f7   :  { %v8559_v1 = vpop.xlane.xlu0 %8558 }
 0x3f8   :  { %v8575_v54 = vsub.f32 %v19054_v23, %v8559_v1 }
 0x3fa   :  { %v8586_v29 = vmul.f32 1.442695, %v8575_v54  ;;  %v19210_v56 = vpop.permute.xlu1 %4842 }
 0x3fc   :  { %17967 = vpow2.f32 %v8586_v29 }
 0x404   :  { %4897 = vperm.xlu0 %17950, %v19067_v37  }
 0x406   :  { %v19212_v1 = vpop.eup %17967 }
 0x408   :  { %17951 = vset.pattern.permute.xlu0 %v20601_v0 }
 0x40d   :  { %v7174_v46 = vpop.f32.mrb[16].mxu1 }
 0x40e   :  { %v8535_v55 = vsel %vm19028_vm2, -1e+20, %v7174_v46  ;;  %v16482_v47 = vpop.f32.mrb[17].mxu1  ;;  %v8605_v46 = vsel %vm8547_vm3, %v19212_v1, 0.0 }
 0x40f   :  { %v19202_v59 = vmul.f32 0.17677669, %v8535_v55  ;;  %v19216_v47 = vpop.permute.xlu1 %4591 }
 0x410   :  { %20602 = vst [vmem:[#allocation18_spill] sm:$0xff] %v19216_v47  ;;  %v19232_v47 = vpop.permute.xlu0 %4744 }
 0x411   :  { %v8560_v22 = vsel %vm8547_vm3, %v19202_v59, -inf }
 0x412   :  { %8561 = vmax.xlane.f32.xlu1 %v8560_v22 }
 0x413   :  { %v19218_v54 = vpop.permute.xlu1 %4642 }
 0x414   :  { %20603 = vst [vmem:[#allocation19_spill] sm:$0xff] %v19218_v54 }
 0x417   :  { %v19220_v55 = vpop.permute.xlu1 %4693 }
 0x418   :  { %20604 = vst [vmem:[#allocation20_spill] sm:$0xff] %v19220_v55 }
 0x41b   :  { %v19222_v23 = vpop.permute.xlu1 %4795 }
 0x41c   :  { %20605 = vst [vmem:[#allocation21_spill] sm:$0xff] %v19222_v23 }
 0x41f   :  { %v19228_v51 = vpop.permute.xlu1 %4846 }
 0x420   :  { %20606 = vst [vmem:[#allocation22_spill] sm:$0xff] %v19228_v51 }
 0x423   :  { %8606 = vadd.xlane.f32.xlu0 %v8605_v46 }
 0x431   :  { %v19235_v48 = vpop.xlane.xlu0 %8570 }
 0x439   :  { %v8074_v22 = vpop.f32.mrb[18].mxu1 }
 0x43a   :  { %v8537_v29 = vsel %vm19028_vm2, -1e+20, %v8074_v22  ;;  %v16542_v39 = vpop.f32.mrb[19].mxu1 }
 0x43b   :  { %v19226_v34 = vmul.f32 0.17677669, %v8537_v29 }
 0x43d   :  { %v8566_v46 = vsel %vm8547_vm3, %v19226_v34, -inf }
 0x43e   :  { %8567 = vmax.xlane.f32.xlu0 %v8566_v46 }
 0x440   :  { %v8565_v54 = vpop.xlane.xlu1 %8564 }
 0x441   :  { %v8577_v55 = vsub.f32 %v19140_v42, %v8565_v54  ;;  %v4709_v54 = vsel %vm4673_vm7, %v19126_v36, 0.0 }
 0x443   :  { %v8590_v23 = vmul.f32 1.442695, %v8577_v55  ;;  %v4760_v55 = vsel %vm4724_vm8, %v19134_v44, 0.0  ;;  %v4862_v44 = vsel %vm4826_vm10, %v19181_v25, 0.0 }
 0x445   :  { %17969 = vpow2.f32 %v8590_v23 }
 0x447   :  { %v8550_v27 = vpop.xlane.xlu0 %8549 }
 0x448   :  { %v8572_v39 = vsub.f32 %v19150_v9, %v8550_v27  ;;  %v20607_v9 = vmov 6  }
 0x44a   :  { %v8580_v22 = vmul.f32 1.442695, %v8572_v39 }
 0x44c   :  { %17971 = vpow2.f32 %v8580_v22 }
 0x44f   :  { %v19238_v29 = vpop.eup %17969 }
 0x450   :  { %v8611_v51 = vsel %vm8547_vm3, %v19238_v29, 0.0 }
 0x451   :  { %8612 = vadd.xlane.f32.xlu1 %v8611_v51  ;;  %v4607_v51 = vsel %vm4571_vm4, %v19121_v5, 0.0 }
 0x456   :  { %v19242_v46 = vpop.eup %17971 }
 0x457   :  { %v8596_v42 = vsel %vm8547_vm3, %v19242_v46, 0.0 }
 0x458   :  { %8597 = vadd.xlane.f32.xlu0 %v8596_v42 }
 0x462   :  { %4901 = vperm.xlu1 %17952, %v18843_v21   ;;  %v4556_v21 = vsel %vm4512_vm5, %v19117_v58, 0.0 }
 0x466   :  { %10452 = vrot.lane.b32.xlu1 %v18317_v53, %s18015_s19  ;;  %v4658_v53 = vsel %vm4622_vm6, %v19124_v57, 0.0  ;;  %v4811_v57 = vsel %vm4775_vm9, %v19138_v26, 0.0  ;;  %v4913_v26 = vsel %vm4877_vm11, %v19142_v33, 0.0 }
 0x467   :  { %17953 = vset.pattern.permute.xlu1 %v20607_v9 }
 0x46e   :  { %4537 = vperm.xlu0 %17951, %v19067_v37   ;;  %v4615_v37 = vadd.f32 %v4607_v51, %v4556_v21 }
 0x470   :  { %v4666_v5 = vadd.f32 %v4658_v53, %v4615_v37 }
 0x472   :  { %v4717_v58 = vadd.f32 %v4709_v54, %v4666_v5 }
 0x474   :  { %v4768_v27 = vadd.f32 %v4760_v55, %v4717_v58 }
 0x476   :  { %v4819_v39 = vadd.f32 %v4811_v57, %v4768_v27 }
 0x477   :  { %v8601_v23 = vpop.xlane.xlu0 %8600 }
 0x478   :  { %17973 = vrcp.f32 %v8601_v23  ;;  %v4870_v51 = vadd.f32 %v4862_v44, %v4819_v39 }
 0x47a   :  { %v4921_v53 = vadd.f32 %v4913_v26, %v4870_v51  ;;  %v4660_v51 = vsel %vm4622_vm6, %v19197_v2, 0.0 }
 0x47b   :  { %v8556_v22 = vpop.xlane.xlu0 %8555 }
 0x47c   :  { %v8574_v36 = vsub.f32 %v19173_v12, %v8556_v22  ;;  %v9180_v12 = vsub.f32 %v18881_v32, %v18886_v30  ;;  %v20608_v32 = vmov 0.0  }
 0x47e   :  { %v8584_v42 = vmul.f32 1.442695, %v8574_v36  ;;  %v9181_v55 = vand.u32 4294901760, %v9180_v12 }
 0x480   :  { %17975 = vpow2.f32 %v8584_v42  ;;  %v9182_v27 = vsub.f32 %v9180_v12, %v9181_v55 }
 0x482   :  { %v17974_v21 = vpop.eup %17973  ;;  %v9183_v22 = vand.u32 4294901760, %v9182_v27 }
 0x483   :  { %v8629_v37 = vmul.f32 %v17974_v21, %v19169_v11  ;;  %v20609_v21 = vmov 5  }
 0x485   :  { %v8637_v54 = vadd.f32 %v8629_v37, %v4921_v53  ;;  %v19325_v53 = vpop.permute.xlu0 %4897 }
 0x487   :  { %v9100_v5 = vsel %vm8547_vm3, %v8637_v54, 0 }
 0x488   :  { %v19288_v25 = vand.u32 4294901760, %v9100_v5 }
 0x48a   :  { %v19290_v58 = vpop.eup %17975  ;;  %v9169_v23 = vsub.f32 %v9100_v5, %v19288_v25  ;;  %v4813_v5 = vsel %vm4775_vm9, %v19208_v63, 0.0  ;;  %v4915_v63 = vsel %vm4877_vm11, %v19192_v16, 0.0 }
 0x48b   :  { %v8602_v33 = vsel %vm8547_vm3, %v19290_v58, 0.0 }
 0x48c   :  { %8603 = vadd.xlane.f32.xlu1 %v8602_v33  ;;  %v9170_v57 = vand.u32 4294901760, %v9169_v23 }
 0x48e   :  { %v9171_v11 = vsub.f32 %v9169_v23, %v9170_v57 }
 0x490   :  { %v9172_v39 = vand.u32 4294901760, %v9171_v11  ;;  %v20611_v11 = vmov 3  }
 0x492   :  { %16606 = vmatmul.mubr.f32.vlgmr.msra.gmra.mrb[20].mxu0 %v9172_v39 }
 0x493   :  { %16609 = vmatpush3.msra.mxu0 %v9183_v22  ;;  %16610 = vmatprep.mubr.msk.f32.mxu0 %vm18019_vm1, %v20608_v32 }
 0x494   :  { %16613 = vmatprep.subr.mxu0 %v20608_v32 }
 0x49a   :  { %16611 = vmatmul.mubr.f32.vlgmr.msra.gmra.mrb[20].mxu0 %v19288_v25 }
 0x49b   :  { %16614 = vmatpush3.msra.mxu0 %v9180_v12  ;;  %16615 = vmatprep.mubr.msk.f32.mxu0 %vm18019_vm1, %v20608_v32  ;;  %v4762_v12 = vsel %vm4724_vm8, %v19187_v4, 0.0  ;;  %v4864_v4 = vsel %vm4826_vm10, %v19210_v56, 0.0 }
 0x49c   :  { %16618 = vmatprep.subr.mxu0 %v20608_v32 }
 0x49d   :  { %4599 = vperm.xlu1 %17953, %v19114_v45  }
 0x49f   :  { %v8562_v36 = vpop.xlane.xlu1 %8561 }
 0x4a0   :  { %v8576_v44 = vsub.f32 %v19202_v59, %v8562_v36  ;;  %v4609_v59 = vsel %vm4571_vm4, %v19194_v15, 0.0 }
 0x4a1   :  { %17954 = vset.pattern.permute.xlu1 %v20601_v0  ;;  %v4558_v0 = vsel %vm4512_vm5, %v19189_v8, 0.0 }
 0x4a2   :  { %v8588_v42 = vmul.f32 1.442695, %v8576_v44  ;;  %16616 = vmatmul.mubr.f32.vlgmr.msra.gmra.mrb[20].mxu0 %v9169_v23  ;;  %4552 = vperm.xlu1 %17954, %v18921_v3   ;;  %v4617_v26 = vadd.f32 %v4609_v59, %v4558_v0  ;;  %v20612_v44 = vmov 2  }
 0x4a3   :  { %16619 = vmatpush3.msra.mxu0 %v18886_v30  ;;  %16620 = vmatprep.mubr.msk.f32.mxu0 %vm18019_vm1, %v20608_v32 }
 0x4a4   :  { %17977 = vpow2.f32 %v8588_v42  ;;  %16623 = vmatprep.subr.mxu0 %v20608_v32  ;;  %v4668_v15 = vadd.f32 %v4660_v51, %v4617_v26 }
 0x4a6   :  { %17955 = vset.pattern.permute.xlu1 %v20607_v9  ;;  %v4711_v9 = vsel %vm4673_vm7, %v19206_v28, 0.0 }
 0x4a7   :  { %4603 = vperm.xlu1 %17955, %v18921_v3   ;;  %v4719_v2 = vadd.f32 %v4711_v9, %v4668_v15  ;;  %v20614_v9 = vmov 0  }
 0x4a9   :  { %v4770_v54 = vadd.f32 %v4762_v12, %v4719_v2 }
 0x4aa   :  { %16621 = vmatmul.mubr.f32.vlgmr.msra.gmra.mrb[20].mxu0 %v9170_v57  ;;  %v19353_v57 = vand.u32 4294901760, %v19024_v49 }
 0x4ab   :  { %16624 = vmatpush3.msra.mxu0 %v9181_v55  ;;  %17956 = vset.pattern.permute.xlu1 %v20609_v21  ;;  %v20610_v55 = vmov 4   ;;  %v4821_v23 = vadd.f32 %v4813_v5, %v4770_v54  ;;  %v4708_v54 = vsel %vm4673_vm7, %v19052_v52, 0.0 }
 0x4ac   :  { %4650 = vperm.xlu1 %17956, %v19114_v45   ;;  %16625 = vmatprep.mubr.msk.f32.mxu0 %vm18019_vm1, %v20608_v32 }
 0x4ad   :  { %16628 = vmatprep.subr.mxu0 %v20608_v32  ;;  %v4872_v33 = vadd.f32 %v4864_v4, %v4821_v23  ;;  %v4810_v4 = vsel %vm4775_vm9, %v19171_v18, 0.0  ;;  %v4912_v18 = vsel %vm4877_vm11, %v19075_v24, 0.0 }
 0x4ae   :  { %v19331_v8 = vpop.eup %17977 }
 0x4af   :  { %v8608_v37 = vsel %vm8547_vm3, %v19331_v8, 0.0  ;;  %v4923_v56 = vadd.f32 %v4915_v63, %v4872_v33  ;;  %v4861_v33 = vsel %vm4826_vm10, %v19064_v19, 0.0 }
 0x4b0   :  { %v8607_v28 = vpop.xlane.xlu0 %8606  ;;  %4654 = vperm.xlu1 %17956, %v18921_v3   ;;  %8609 = vadd.xlane.f32.xlu0 %v8608_v37 }
 0x4b1   :  { %17979 = vrcp.f32 %v8607_v28 }
 0x4b2   :  { %16626 = vmatmul.mubr.f32.vlgmr.msra.gmra.mrb[20].mxu0 %v19288_v25 }
 0x4b3   :  { %16629 = vmatpush3.msra.mxu0 %v18886_v30  ;;  %16630 = vmatprep.mubr.msk.f32.mxu0 %vm18019_vm1, %v20608_v32 }
 0x4b4   :  { %17957 = vset.pattern.permute.xlu1 %v20610_v55  ;;  %16663 = vmatprep.subr.mxu0 %v20608_v32 }
 0x4b5   :  { %4701 = vperm.xlu1 %17957, %v19114_v45  }
 0x4b9   :  { %4705 = vperm.xlu1 %17957, %v18921_v3  }
 0x4ba   :  { %16631 = vmatmul.mubr.f32.vlgmr.msra.gmra.mrb[20].mxu0 %v19288_v25  ;;  %v10084_v25 = vsub.f32 %v19024_v49, %v19353_v57  ;;  %v20613_v49 = vmov 1  }
 0x4bb   :  { %v17980_v30 = vpop.eup %17979  ;;  %16664 = vmatpush3.msra.mxu0 %v19353_v57  ;;  %16665 = vmatprep.mubr.msk.f32.mxu0 %vm18019_vm1, %v20608_v32 }
 0x4bc   :  { %v8631_v27 = vmul.f32 %v17980_v30, %v19212_v1  ;;  %16668 = vmatprep.subr.mxu0 %v20608_v32  ;;  %v10085_v36 = vand.u32 4294901760, %v10084_v25 }
 0x4bd   :  { %17959 = vset.pattern.permute.xlu1 %v20611_v11 }
 0x4be   :  { %v8639_v39 = vadd.f32 %v8631_v27, %v4923_v56  ;;  %4756 = vperm.xlu1 %17959, %v18921_v3   ;;  %v10086_v59 = vsub.f32 %v10084_v25, %v10085_v36 }
 0x4c0   :  { %v10004_v16 = vsel %vm8547_vm3, %v8639_v39, 0  ;;  %v10087_v26 = vand.u32 4294901760, %v10086_v59 }
 0x4c1   :  { %v19370_v22 = vand.u32 4294901760, %v10004_v16 }
 0x4c2   :  { %17960 = vset.pattern.permute.xlu1 %v20612_v44 }
 0x4c3   :  { %4803 = vperm.xlu1 %17960, %v19114_v45   ;;  %v10073_v1 = vsub.f32 %v10004_v16, %v19370_v22 }
 0x4c5   :  { %v10074_v42 = vand.u32 4294901760, %v10073_v1 }
 0x4c6   :  { %10904 = vrot.lane.b32.xlu0 %v18312_v50, %s18015_s19  ;;  %v8579_v50 = vsub.f32 %v19130_v13, %v19235_v48  ;;  %v4606_v48 = vsel %vm4571_vm4, %v19165_v14, 0.0  ;;  %v4555_v13 = vsel %vm4512_vm5, %v19034_v17, 0.0  ;;  %v4759_v14 = vsel %vm4724_vm8, %v19059_v31, 0.0 }
 0x4c7   :  { %17962 = vset.pattern.permute.xlu1 %v20613_v49  ;;  %v10075_v0 = vsub.f32 %v10073_v1, %v10074_v42  ;;  %v4614_v12 = vadd.f32 %v4606_v48, %v4555_v13  ;;  %v4710_v49 = vsel %vm4673_vm7, %v19156_v41, 0.0 }
 0x4c8   :  { %4854 = vperm.xlu1 %17962, %v19114_v45   ;;  %v8594_v21 = vmul.f32 1.442695, %v8579_v50 }
 0x4c9   :  { %v10076_v51 = vand.u32 4294901760, %v10075_v0 }
 0x4ca   :  { %17981 = vpow2.f32 %v8594_v21  ;;  %v20617_v21 = vld [vmem:[#allocation14_spill] sm:$0xff] }
 0x4cb   :  { %16666 = vmatmul.mubr.f32.vlgmr.msra.gmra.mrb[22].mxu0 %v10076_v51  ;;  %v8568_v15 = vpop.xlane.xlu0 %8567  ;;  %v20615_v51 = vld [vmem:[#allocation9_spill] sm:$0xff] }
 0x4cc   :  { %16669 = vmatpush3.msra.mxu0 %v10087_v26  ;;  %4858 = vperm.xlu1 %17962, %v18921_v3   ;;  %v8578_v2 = vsub.f32 %v19226_v34, %v8568_v15  ;;  %v4657_v34 = vsel %vm4622_vm6, %v19042_v20, 0.0  ;;  %v20616_v26 = vld [vmem:[#allocation10_spill] sm:$0xff]  ;;  %v20618_v15 = vld [vmem:[#allocation11_spill] sm:$0xff] }
 0x4cd   :  { %16670 = vmatprep.mubr.msk.f32.mxu0 %vm18019_vm1, %v20608_v32  ;;  %16673 = vmatprep.subr.mxu0 %v20608_v32  ;;  %v4665_v5 = vadd.f32 %v4657_v34, %v4614_v12  ;;  %v4662_v50 = vsel %vm4622_vm6, %v20616_v26, 0.0 }
 0x4ce   :  { %v8592_v37 = vmul.f32 1.442695, %v8578_v2  ;;  %v4713_v2 = vsel %vm4673_vm7, %v20618_v15, 0.0  ;;  %v4763_v15 = vsel %vm4724_vm8, %v19232_v47, 0.0 }
 0x4cf   :  { %v4716_v20 = vadd.f32 %v4708_v54, %v4665_v5 }
 0x4d0   :  { %17964 = vset.pattern.permute.xlu1 %v20614_v9  ;;  %17983 = vpow2.f32 %v8592_v37  ;;  %v20619_v37 = vld [vmem:[#allocation12_spill] sm:$0xff] }
 0x4d1   :  { %v4767_v52 = vadd.f32 %v4759_v14, %v4716_v20  ;;  %v4764_v34 = vsel %vm4724_vm8, %v20619_v37, 0.0  ;;  %v20620_v14 = vld [vmem:[#allocation17_spill] sm:$0xff] }
 0x4d3   :  { %16671 = vmatmul.mubr.f32.vlgmr.msra.gmra.mrb[22].mxu0 %v19370_v22  ;;  %v4818_v23 = vadd.f32 %v4810_v4, %v4767_v52  ;;  %v20622_v4 = vld [vmem:[#allocation8_spill] sm:$0xff] }
 0x4d4   :  { %16674 = vmatpush3.msra.mxu0 %v10084_v25  ;;  %16675 = vmatprep.mubr.msk.f32.mxu0 %vm18019_vm1, %v20608_v32  ;;  %v19404_v28 = vpop.eup %17981 }
 0x4d5   :  { %16678 = vmatprep.subr.mxu0 %v20608_v32  ;;  %v8617_v17 = vsel %vm8547_vm3, %v19404_v28, 0.0  ;;  %v4869_v30 = vadd.f32 %v4861_v33, %v4818_v23  ;;  %v19518_v23 = vand.u32 4294901760, %v20622_v4  ;;  %v20623_v33 = vld [vmem:[#allocation16_spill] sm:$0xff] }
 0x4d7   :  { %v4920_v27 = vadd.f32 %v4912_v18, %v4869_v30  ;;  %v4815_v18 = vsel %vm4775_vm9, %v20623_v33, 0.0 }
 0x4da   :  { %v19421_v31 = vpop.eup %17983 }
 0x4db   :  { %16676 = vmatmul.mubr.f32.vlgmr.msra.gmra.mrb[22].mxu0 %v10073_v1  ;;  %v8614_v63 = vsel %vm8547_vm3, %v19421_v31, 0.0 }
 0x4dc   :  { %16679 = vmatpush3.msra.mxu0 %v19353_v57  ;;  %16680 = vmatprep.mubr.msk.f32.mxu0 %vm18019_vm1, %v20608_v32 }
 0x4dd   :  { %16683 = vmatprep.subr.mxu0 %v20608_v32 }
 0x4e3   :  { %16681 = vmatmul.mubr.f32.vlgmr.msra.gmra.mrb[22].mxu0 %v10074_v42 }
 0x4e4   :  { %16684 = vmatpush3.msra.mxu0 %v10085_v36  ;;  %16685 = vmatprep.mubr.msk.f32.mxu0 %vm18019_vm1, %v20608_v32 }
 0x4e5   :  { %8618 = vadd.xlane.f32.xlu0 %v8617_v17  ;;  %v8598_v55 = vpop.xlane.xlu0 %8597  ;;  %16688 = vmatprep.subr.mxu0 %v20608_v32  ;;  %v4863_v17 = vsel %vm4826_vm10, %v20620_v14, 0.0 }
 0x4e6   :  { %17985 = vrcp.f32 %v8598_v55  ;;  %v20621_v55 = vld [vmem:[#allocation15_spill] sm:$0xff] }
 0x4e7   :  { %v4914_v52 = vsel %vm4877_vm11, %v20621_v55, 0.0 }
 0x4eb   :  { %16686 = vmatmul.mubr.f32.vlgmr.msra.gmra.mrb[22].mxu0 %v19370_v22 }
 0x4ec   :  { %16689 = vmatpush3.msra.mxu0 %v19353_v57  ;;  %16690 = vmatprep.mubr.msk.f32.mxu0 %vm18019_vm1, %v20608_v32  ;;  %v8728_v57 = vsub.f32 %v18988_v10, %v19078_v60 }
 0x4ed   :  { %16723 = vmatprep.subr.mxu0 %v20608_v32 }
 0x4ee   :  { %v8729_v16 = vand.u32 4294901760, %v8728_v57 }
 0x4f0   :  { %v17986_v56 = vpop.eup %17985  ;;  %8615 = vadd.xlane.f32.xlu1 %v8614_v63 }
 0x4f1   :  { %v8628_v19 = vmul.f32 %v17986_v56, %v19242_v46  ;;  %v8730_v46 = vsub.f32 %v8728_v57, %v8729_v16 }
 0x4f3   :  { %v8636_v25 = vadd.f32 %v8628_v19, %v4920_v27  ;;  %16691 = vmatmul.mubr.f32.vlgmr.msra.gmra.mrb[22].mxu0 %v19370_v22  ;;  %v8731_v10 = vand.u32 4294901760, %v8730_v46 }
 0x4f4   :  { %16725 = vmatprep.mubr.msk.f32.mxu0 %vm18019_vm1, %v20608_v32 }
 0x4f5   :  { %v8648_v24 = vsel %vm8547_vm3, %v8636_v25, 0  ;;  %v19529_v25 = vsub.f32 %v20622_v4, %v19518_v23 }
 0x4f6   :  { %v19442_v39 = vand.u32 4294901760, %v8648_v24 }
 0x4f8   :  { %v8717_v36 = vsub.f32 %v8648_v24, %v19442_v39 }
 0x4fa   :  { %v8718_v1 = vand.u32 4294901760, %v8717_v36 }
 0x4fb   :  { %4547 = vperm.xlu0 %17951, %v19114_v45  }
 0x4fc   :  { %v8719_v42 = vsub.f32 %v8717_v36, %v8718_v1 }
 0x4fe   :  { %v8720_v59 = vand.u32 4294901760, %v8719_v42 }
 0x4ff   :  { %17958 = vset.pattern.permute.xlu0 %v20611_v11  ;;  %v8613_v11 = vpop.xlane.xlu1 %8612 }
 0x500   :  { %4752 = vperm.xlu0 %17958, %v19114_v45   ;;  %16576 = vmatmul.mubr.f32.vlgmr.msra.gmra.mrb[20].mxu1 %v8720_v59  ;;  %v9633_v59 = vand.u32 4294901760, %v19529_v25 }
 0x501   :  { %4909 = vperm.xlu1 %17964, %v18921_v3   ;;  %16579 = vmatpush3.msra.mxu1 %v8731_v10  ;;  %v4538_v10 = vpop.permute.xlu0 %4537 }
 0x502   :  { %16580 = vmatprep.mubr.msk.f32.mxu1 %vm18019_vm1, %v20608_v32  ;;  %16583 = vmatprep.subr.mxu1 %v20608_v32 }
 0x503   :  { %v4902_v22 = vpop.permute.xlu1 %4901 }
 0x504   :  { %17961 = vset.pattern.permute.xlu0 %v20612_v44  ;;  %v4917_v24 = vsel %vm4877_vm11, %v4902_v22, 0.0 }
 0x505   :  { %11356 = vrot.lane.b32.xlu1 %v18348_v6, %s18015_s19  ;;  %4807 = vperm.xlu0 %17961, %v18921_v3   ;;  %v4557_v6 = vsel %vm4512_vm5, %v19148_v7, 0.0  ;;  %v4608_v3 = vsel %vm4571_vm4, %v19183_v40, 0.0  ;;  %v4611_v7 = vsel %vm4571_vm4, %v19092_v38, 0.0  ;;  %v4761_v40 = vsel %vm4724_vm8, %v19158_v35, 0.0 }
 0x506   :  { %v4812_v35 = vsel %vm4775_vm9, %v20617_v21, 0.0 }
 0x507   :  { %v19477_v44 = vpop.permute.xlu1 %10452 }
 0x508   :  { %16581 = vmatmul.mubr.f32.vlgmr.msra.gmra.mrb[20].mxu1 %v19442_v39 }
 0x509   :  { %16584 = vmatpush3.msra.mxu1 %v8728_v57  ;;  %17963 = vset.pattern.permute.xlu0 %v20614_v9 }
 0x50a   :  { %4905 = vperm.xlu0 %17963, %v19114_v45   ;;  %16585 = vmatprep.mubr.msk.f32.mxu1 %vm18019_vm1, %v20608_v32  ;;  %v4616_v45 = vadd.f32 %v4608_v3, %v4557_v6  ;;  %v9634_v6 = vsub.f32 %v19529_v25, %v9633_v59  ;;  %v20625_v3 = vld [vmem:[#allocation18_spill] sm:$0xff] }
 0x50b   :  { %16588 = vmatprep.subr.mxu1 %v20608_v32 }
 0x50e   :  { %11808 = vrot.lane.b32.xlu0 %v18330_v62, %s18015_s19  ;;  %v4659_v62 = vsel %vm4622_vm6, %v19154_v61, 0.0  ;;  %v4560_v61 = vsel %vm4512_vm5, %v20615_v51, 0.0  ;;  %v9635_v51 = vand.u32 4294901760, %v9634_v6 }
 0x50f   :  { %v4667_v0 = vadd.f32 %v4659_v62, %v4616_v45  ;;  %v4619_v38 = vadd.f32 %v4611_v7, %v4560_v61  ;;  %v4610_v62 = vsel %vm4571_vm4, %v20625_v3, 0.0  ;;  %v20626_v61 = vld [vmem:[#allocation19_spill] sm:$0xff] }
 0x510   :  { %16586 = vmatmul.mubr.f32.vlgmr.msra.gmra.mrb[20].mxu1 %v8717_v36  ;;  %v4661_v26 = vsel %vm4622_vm6, %v20626_v61, 0.0 }
 0x511   :  { %16589 = vmatpush3.msra.mxu1 %v19078_v60  ;;  %16590 = vmatprep.mubr.msk.f32.mxu1 %vm18019_vm1, %v20608_v32  ;;  %v4718_v9 = vadd.f32 %v4710_v49, %v4667_v0  ;;  %v4670_v13 = vadd.f32 %v4662_v50, %v4619_v38 }
 0x512   :  { %16593 = vmatprep.subr.mxu1 %v20608_v32 }
 0x513   :  { %v4769_v48 = vadd.f32 %v4761_v40, %v4718_v9  ;;  %v4721_v54 = vadd.f32 %v4713_v2, %v4670_v13 }
 0x515   :  { %v4820_v12 = vadd.f32 %v4812_v35, %v4769_v48  ;;  %v4772_v5 = vadd.f32 %v4764_v34, %v4721_v54  ;;  %v20628_v34 = vld [vmem:[#allocation21_spill] sm:$0xff] }
 0x516   :  { %v4814_v47 = vsel %vm4775_vm9, %v20628_v34, 0.0 }
 0x517   :  { %v4871_v20 = vadd.f32 %v4863_v17, %v4820_v12  ;;  %v4823_v63 = vadd.f32 %v4815_v18, %v4772_v5 }
 0x518   :  { %16591 = vmatmul.mubr.f32.vlgmr.msra.gmra.mrb[20].mxu1 %v8718_v1 }
 0x519   :  { %v8604_v41 = vpop.xlane.xlu1 %8603  ;;  %16594 = vmatpush3.msra.mxu1 %v8729_v16  ;;  %16595 = vmatprep.mubr.msk.f32.mxu1 %vm18019_vm1, %v20608_v32  ;;  %v4922_v19 = vadd.f32 %v4914_v52, %v4871_v20  ;;  %v20629_v20 = vld [vmem:[#allocation22_spill] sm:$0xff] }
 0x51a   :  { %17987 = vrcp.f32 %v8604_v41  ;;  %16598 = vmatprep.subr.mxu1 %v20608_v32  ;;  %v20627_v41 = vld [vmem:[#allocation20_spill] sm:$0xff]  ;;  %v4865_v55 = vsel %vm4826_vm10, %v20629_v20, 0.0 }
 0x51b   :  { %17989 = vrcp.f32 %v8613_v11  ;;  %v4712_v38 = vsel %vm4673_vm7, %v20627_v41, 0.0 }
 0x51d   :  { %v19570_v48 = vpop.permute.xlu1 %4599 }
 0x520   :  { %16596 = vmatmul.mubr.f32.vlgmr.msra.gmra.mrb[20].mxu1 %v19442_v39 }
 0x521   :  { %16599 = vmatpush3.msra.mxu1 %v19078_v60  ;;  %16600 = vmatprep.mubr.msk.f32.mxu1 %vm18019_vm1, %v20608_v32  ;;  %v20624_v60 = vld [vmem:[#allocation13_spill] sm:$0xff]  ;;  %v19584_v14 = vpop.permute.xlu1 %4552 }
 0x522   :  { %16633 = vmatprep.subr.mxu1 %v20608_v32  ;;  %v4866_v27 = vsel %vm4826_vm10, %v20624_v60, 0.0 }
 0x523   :  { %v4874_v36 = vadd.f32 %v4866_v27, %v4823_v63 }
 0x524   :  { %v17988_v30 = vpop.eup %17987 }
 0x525   :  { %v17990_v56 = vpop.eup %17989  ;;  %v8630_v57 = vmul.f32 %v17988_v30, %v19290_v58  ;;  %v4925_v46 = vadd.f32 %v4917_v24, %v4874_v36  ;;  %v4916_v30 = vsel %vm4877_vm11, %v19325_v53, 0.0  ;;  %v19612_v24 = vand.u32 4294901760, %v19477_v44 }
 0x526   :  { %v8633_v1 = vmul.f32 %v17990_v56, %v19238_v29  ;;  %v19601_v60 = vpop.permute.xlu1 %4603 }
 0x527   :  { %v8638_v16 = vadd.f32 %v8630_v57, %v4922_v19  ;;  %v10536_v36 = vsub.f32 %v19477_v44, %v19612_v24 }
 0x528   :  { %16601 = vmatmul.mubr.f32.vlgmr.msra.gmra.mrb[20].mxu1 %v19442_v39  ;;  %v8641_v11 = vadd.f32 %v8633_v1, %v4925_v46  ;;  %v4559_v39 = vsel %vm4512_vm5, %v4538_v10, 0.0 }
 0x529   :  { %16634 = vmatpush3.msra.mxu1 %v19518_v23  ;;  %16635 = vmatprep.mubr.msk.f32.mxu1 %vm18019_vm1, %v20608_v32  ;;  %v9552_v58 = vsel %vm8547_vm3, %v8638_v16, 0  ;;  %v4618_v7 = vadd.f32 %v4610_v62, %v4559_v39  ;;  %v10537_v46 = vand.u32 4294901760, %v10536_v36 }
 0x52a   :  { %16638 = vmatprep.subr.mxu1 %v20608_v32  ;;  %v19540_v42 = vand.u32 4294901760, %v9552_v58  ;;  %v10908_v45 = vsel %vm8547_vm3, %v8641_v11, 0 }
 0x52b   :  { %v19551_v40 = vand.u32 4294901760, %v10908_v45  ;;  %v4669_v50 = vadd.f32 %v4661_v26, %v4618_v7  ;;  %v10538_v10 = vsub.f32 %v10536_v36, %v10537_v46 }
 0x52c   :  { %v9621_v29 = vsub.f32 %v9552_v58, %v19540_v42 }
 0x52d   :  { %v19560_v9 = vsub.f32 %v10908_v45, %v19551_v40  ;;  %v4720_v21 = vadd.f32 %v4712_v38, %v4669_v50  ;;  %v10539_v11 = vand.u32 4294901760, %v10538_v10  ;;  %v4612_v45 = vsel %vm4571_vm4, %v19570_v48, 0.0 }
 0x52e   :  { %v9622_v22 = vand.u32 4294901760, %v9621_v29 }
 0x52f   :  { %v10978_v35 = vand.u32 4294901760, %v19560_v9  ;;  %v4771_v2 = vadd.f32 %v4763_v15, %v4720_v21 }
 0x530   :  { %v9623_v49 = vsub.f32 %v9621_v29, %v9622_v22 }
 0x531   :  { %v10979_v37 = vsub.f32 %v19560_v9, %v10978_v35  ;;  %v4822_v12 = vadd.f32 %v4814_v47, %v4771_v2 }
 0x532   :  { %v9624_v0 = vand.u32 4294901760, %v9623_v49  ;;  %v4613_v49 = vsel %vm4571_vm4, %v19601_v60, 0.0 }
 0x533   :  { %v10980_v17 = vand.u32 4294901760, %v10979_v37  ;;  %v4873_v4 = vadd.f32 %v4865_v55, %v4822_v12 }
 0x534   :  { %16636 = vmatmul.mubr.f32.vlgmr.msra.gmra.mrb[22].mxu1 %v9624_v0 }
 0x535   :  { %16639 = vmatpush3.msra.mxu1 %v9635_v51  ;;  %16640 = vmatprep.mubr.msk.f32.mxu1 %vm18019_vm1, %v20608_v32  ;;  %v4924_v56 = vadd.f32 %v4916_v30, %v4873_v4 }
 0x536   :  { %16643 = vmatprep.subr.mxu1 %v20608_v32 }
 0x53c   :  { %16641 = vmatmul.mubr.f32.vlgmr.msra.gmra.mrb[22].mxu1 %v19540_v42 }
 0x53d   :  { %16644 = vmatpush3.msra.mxu1 %v19529_v25  ;;  %v8610_v13 = vpop.xlane.xlu0 %8609  ;;  %16645 = vmatprep.mubr.msk.f32.mxu1 %vm18019_vm1, %v20608_v32 }
 0x53e   :  { %17991 = vrcp.f32 %v8610_v13  ;;  %16648 = vmatprep.subr.mxu1 %v20608_v32 }
 0x541   :  { %v10905_v54 = vpop.permute.xlu0 %10904 }
 0x542   :  { %v19582_v5 = vand.u32 4294901760, %v10905_v54 }
 0x544   :  { %v10988_v52 = vsub.f32 %v10905_v54, %v19582_v5  ;;  %16646 = vmatmul.mubr.f32.vlgmr.msra.gmra.mrb[22].mxu1 %v9621_v29  ;;  %16724 = vmatpush3.msra.mxu0 %v19582_v5 }
 0x545   :  { %16649 = vmatpush3.msra.mxu1 %v19518_v23  ;;  %16726 = vmatmul.mubr.f32.vlgmr.msra.gmra.mrb[24].mxu0 %v10980_v17 }
 0x546   :  { %v10989_v33 = vand.u32 4294901760, %v10988_v52  ;;  %16650 = vmatprep.mubr.msk.f32.mxu1 %vm18019_vm1, %v20608_v32  ;;  %16653 = vmatprep.subr.mxu1 %v20608_v32 }
 0x547   :  { %16728 = vmatprep.subr.mxu0 %v20608_v32  ;;  %16730 = vmatprep.mubr.msk.f32.mxu0 %vm18019_vm1, %v20608_v32 }
 0x548   :  { %v17992_v18 = vpop.eup %17991  ;;  %v10990_v63 = vsub.f32 %v10988_v52, %v10989_v33 }
 0x549   :  { %v8632_v27 = vmul.f32 %v17992_v18, %v19331_v8  ;;  %v19614_v8 = vpop.permute.xlu1 %4650 }
 0x54a   :  { %v10991_v19 = vand.u32 4294901760, %v10990_v63  ;;  %v4663_v51 = vsel %vm4622_vm6, %v19614_v8, 0.0 }
 0x54b   :  { %v8640_v57 = vadd.f32 %v8632_v27, %v4924_v56 }
 0x54c   :  { %16651 = vmatmul.mubr.f32.vlgmr.msra.gmra.mrb[22].mxu1 %v9622_v22  ;;  %16729 = vmatpush3.msra.mxu0 %v10991_v19 }
 0x54d   :  { %16654 = vmatpush3.msra.mxu1 %v9633_v59  ;;  %16731 = vmatmul.mubr.f32.vlgmr.msra.gmra.mrb[24].mxu0 %v19551_v40  ;;  %v10456_v25 = vsel %vm8547_vm3, %v8640_v57, 0  ;;  %v4655_v1 = vpop.permute.xlu1 %4654 }
 0x54e   :  { %16733 = vmatprep.subr.mxu0 %v20608_v32  ;;  %16655 = vmatprep.mubr.msk.f32.mxu1 %vm18019_vm1, %v20608_v32  ;;  %v19609_v53 = vand.u32 4294901760, %v10456_v25  ;;  %v4664_v61 = vsel %vm4622_vm6, %v4655_v1, 0.0  ;;  %vm15360_vm6 = vcmask 785408  }
 0x54f   :  { %16734 = vmatpush3.msra.mxu0 %v10988_v52  ;;  %16658 = vmatprep.subr.mxu1 %v20608_v32 }
 0x550   :  { %16735 = vmatprep.mubr.msk.f32.mxu0 %vm18019_vm1, %v20608_v32  ;;  %16738 = vmatprep.subr.mxu0 %v20608_v32  ;;  %v10525_v16 = vsub.f32 %v10456_v25, %v19609_v53 }
 0x551   :  { %v4702_v59 = vpop.permute.xlu1 %4701 }
 0x552   :  { %v10526_v58 = vand.u32 4294901760, %v10525_v16  ;;  %v4714_v41 = vsel %vm4673_vm7, %v4702_v59, 0.0 }
 0x554   :  { %16656 = vmatmul.mubr.f32.vlgmr.msra.gmra.mrb[22].mxu1 %v19540_v42  ;;  %v10527_v44 = vsub.f32 %v10525_v16, %v10526_v58 }
 0x555   :  { %16659 = vmatpush3.msra.mxu1 %v19518_v23  ;;  %16736 = vmatmul.mubr.f32.vlgmr.msra.gmra.mrb[24].mxu0 %v19560_v9 }
 0x556   :  { %16739 = vmatpush3.msra.mxu0 %v19582_v5  ;;  %16660 = vmatprep.mubr.msk.f32.mxu1 %vm18019_vm1, %v20608_v32  ;;  %v10528_v23 = vand.u32 4294901760, %v10527_v44 }
 0x557   :  { %16693 = vmatprep.subr.mxu1 %v20608_v32  ;;  %16740 = vmatprep.mubr.msk.f32.mxu0 %vm18019_vm1, %v20608_v32 }
 0x558   :  { %16743 = vmatprep.subr.mxu0 %v20608_v32 }
 0x55c   :  { %16661 = vmatmul.mubr.f32.vlgmr.msra.gmra.mrb[22].mxu1 %v19540_v42  ;;  %v4706_v42 = vpop.permute.xlu1 %4705 }
 0x55d   :  { %16694 = vmatpush3.msra.mxu1 %v19612_v24  ;;  %16695 = vmatprep.mubr.msk.f32.mxu1 %vm18019_vm1, %v20608_v32  ;;  %v4715_v38 = vsel %vm4673_vm7, %v4706_v42, 0.0 }
 0x55e   :  { %16698 = vmatprep.subr.mxu1 %v20608_v32  ;;  %16741 = vmatmul.mubr.f32.vlgmr.msra.gmra.mrb[24].mxu0 %v10978_v35 }
 0x55f   :  { %16744 = vmatpush3.msra.mxu0 %v10989_v33  ;;  %16745 = vmatprep.mubr.msk.f32.mxu0 %vm18019_vm1, %v20608_v32 }
 0x560   :  { %16696 = vmatmul.mubr.f32.vlgmr.msra.gmra.mrb[24].mxu1 %v10528_v23  ;;  %16748 = vmatprep.subr.mxu0 %v20608_v32  ;;  %v4757_v29 = vpop.permute.xlu1 %4756 }
 0x561   :  { %16699 = vmatpush3.msra.mxu1 %v10539_v11  ;;  %16700 = vmatprep.mubr.msk.f32.mxu1 %vm18019_vm1, %v20608_v32  ;;  %v4766_v48 = vsel %vm4724_vm8, %v4757_v29, 0.0 }
 0x562   :  { %16703 = vmatprep.subr.mxu1 %v20608_v32 }
 0x564   :  { %v4804_v39 = vpop.permute.xlu1 %4803 }
 0x565   :  { %v4816_v12 = vsel %vm4775_vm9, %v4804_v39, 0.0 }
 0x566   :  { %16746 = vmatmul.mubr.f32.vlgmr.msra.gmra.mrb[24].mxu0 %v19551_v40 }
 0x567   :  { %16749 = vmatpush3.msra.mxu0 %v19582_v5  ;;  %16750 = vmatprep.mubr.msk.f32.mxu0 %vm18019_vm1, %v20608_v32 }
 0x568   :  { %16701 = vmatmul.mubr.f32.vlgmr.msra.gmra.mrb[24].mxu1 %v19609_v53  ;;  %16783 = vmatprep.subr.mxu0 %v20608_v32  ;;  %v4855_v22 = vpop.permute.xlu1 %4854 }
 0x569   :  { %16704 = vmatpush3.msra.mxu1 %v10536_v36  ;;  %16705 = vmatprep.mubr.msk.f32.mxu1 %vm18019_vm1, %v20608_v32  ;;  %v4867_v18 = vsel %vm4826_vm10, %v4855_v22, 0.0 }
 0x56a   :  { %16708 = vmatprep.subr.mxu1 %v20608_v32 }
 0x56c   :  { %v4859_v3 = vpop.permute.xlu1 %4858 }
 0x56d   :  { %v4868_v4 = vsel %vm4826_vm10, %v4859_v3, 0.0 }
 0x56e   :  { %16751 = vmatmul.mubr.f32.vlgmr.msra.gmra.mrb[24].mxu0 %v19551_v40  ;;  %v4562_v40 = vsel %vm4512_vm5, %v19584_v14, 0.0 }
 0x56f   :  { %16785 = vmatprep.mubr.msk.f32.mxu0 %vm18019_vm1, %v20608_v32  ;;  %v4621_v50 = vadd.f32 %v4613_v49, %v4562_v40  ;;  %v12260_v40 = vld [vmem:[%s20550_s4] sm:$0xff] }
 0x570   :  { %16706 = vmatmul.mubr.f32.vlgmr.msra.gmra.mrb[24].mxu1 %v10525_v16 }
 0x571   :  { %16709 = vmatpush3.msra.mxu1 %v19612_v24  ;;  %16710 = vmatprep.mubr.msk.f32.mxu1 %vm18019_vm1, %v20608_v32  ;;  %v4672_v35 = vadd.f32 %v4664_v61, %v4621_v50  ;;  %v12296_v61 = vand.u32 4294901760, %v12260_v40 }
 0x572   :  { %16713 = vmatprep.subr.mxu1 %v20608_v32  ;;  %v8619_v6 = vpop.xlane.xlu0 %8618 }
 0x573   :  { %17993 = vrcp.f32 %v8619_v6  ;;  %v4723_v37 = vadd.f32 %v4715_v38, %v4672_v35 }
 0x575   :  { %v4774_v47 = vadd.f32 %v4766_v48, %v4723_v37 }
 0x578   :  { %16711 = vmatmul.mubr.f32.vlgmr.msra.gmra.mrb[24].mxu1 %v10526_v58 }
 0x579   :  { %16714 = vmatpush3.msra.mxu1 %v10537_v46  ;;  %16715 = vmatprep.mubr.msk.f32.mxu1 %vm18019_vm1, %v20608_v32 }
 0x57a   :  { %v4548_v62 = vpop.permute.xlu0 %4547  ;;  %16718 = vmatprep.subr.mxu1 %v20608_v32 }
 0x57b   :  { %v4561_v7 = vsel %vm4512_vm5, %v4548_v62, 0.0 }
 0x57c   :  { %v4620_v0 = vadd.f32 %v4612_v45, %v4561_v7 }
 0x57d   :  { %v8616_v26 = vpop.xlane.xlu1 %8615  ;;  %v17994_v52 = vpop.eup %17993 }
 0x57e   :  { %v4671_v9 = vadd.f32 %v4663_v51, %v4620_v0  ;;  %17995 = vrcp.f32 %v8616_v26  ;;  %v8635_v27 = vmul.f32 %v17994_v52, %v19404_v28  ;;  %v12261_v51 = vld [vmem:[%s20550_s4 + $0x8] sm:$0xff] }
 0x57f   :  { %v4753_v21 = vpop.permute.xlu0 %4752  ;;  %v12299_v26 = vand.u32 4294901760, %v12261_v51 }
 0x580   :  { %16716 = vmatmul.mubr.f32.vlgmr.msra.gmra.mrb[24].mxu1 %v19609_v53  ;;  %v4722_v15 = vadd.f32 %v4714_v41, %v4671_v9  ;;  %v4765_v2 = vsel %vm4724_vm8, %v4753_v21, 0.0  ;;  %v12262_v9 = vld [vmem:[%s20550_s4 + $0x10] sm:$0xff]  ;;  %v12263_v41 = vld [vmem:[%s20550_s4 + $0x18] sm:$0xff] }
 0x581   :  { %16719 = vmatpush3.msra.mxu1 %v19612_v24  ;;  %v4910_v13 = vpop.permute.xlu1 %4909  ;;  %16720 = vmatprep.mubr.msk.f32.mxu1 %vm18019_vm1, %v20608_v32  ;;  %v19760_v50 = vpack.c.bf16 %v12299_v26, %v12296_v61  ;;  %v12302_v38 = vand.u32 4294901760, %v12262_v9  ;;  %v12305_v21 = vand.u32 4294901760, %v12263_v41 }
 0x582   :  { %v4773_v34 = vadd.f32 %v4765_v2, %v4722_v15  ;;  %16753 = vmatprep.subr.mxu1 %v20608_v32  ;;  %v4919_v63 = vsel %vm4877_vm11, %v4910_v13, 0.0 }
 0x583   :  { %v19777_v35 = vpack.c.bf16 %v12305_v21, %v12302_v38 }
 0x584   :  { %v4808_v54 = vpop.permute.xlu0 %4807  ;;  %v4824_v5 = vadd.f32 %v4816_v12, %v4773_v34 }
 0x585   :  { %v11357_v14 = vpop.permute.xlu1 %11356  ;;  %v4817_v17 = vsel %vm4775_vm9, %v4808_v54, 0.0 }
 0x586   :  { %v19698_v20 = vand.u32 4294901760, %v11357_v14  ;;  %v4825_v55 = vadd.f32 %v4817_v17, %v4774_v47  ;;  %v4875_v56 = vadd.f32 %v4867_v18, %v4824_v5 }
 0x588   :  { %v17996_v33 = vpop.eup %17995  ;;  %v4876_v30 = vadd.f32 %v4868_v4, %v4825_v55  ;;  %16721 = vmatmul.mubr.f32.vlgmr.msra.gmra.mrb[24].mxu1 %v19609_v53  ;;  %v11440_v8 = vsub.f32 %v11357_v14, %v19698_v20  ;;  %v12446_v4 = vsub.f32 %v12260_v40, %v12296_v61 }
 0x589   :  { %16754 = vmatpush3.msra.mxu1 %v19698_v20  ;;  %v4906_v60 = vpop.permute.xlu0 %4905  ;;  %16755 = vmatprep.mubr.msk.f32.mxu1 %vm18019_vm1, %v20608_v32  ;;  %v8634_v25 = vmul.f32 %v17996_v33, %v19421_v31  ;;  %v12453_v33 = vsub.f32 %v12261_v51, %v12299_v26 }
 0x58a   :  { %v4927_v19 = vadd.f32 %v4919_v63, %v4876_v30  ;;  %v4918_v57 = vsel %vm4877_vm11, %v4906_v60, 0.0  ;;  %16758 = vmatprep.subr.mxu1 %v20608_v32  ;;  %v11441_v31 = vand.u32 4294901760, %v11440_v8  ;;  %v12447_v18 = vand.u32 4294901760, %v12446_v4 }
 0x58b   :  { %v4926_v53 = vadd.f32 %v4918_v57, %v4875_v56  ;;  %v12454_v30 = vand.u32 4294901760, %v12453_v33  ;;  %v12460_v63 = vsub.f32 %v12262_v9, %v12302_v38  ;;  %v12467_v56 = vsub.f32 %v12263_v41, %v12305_v21 }
 0x58c   :  { %v8643_v24 = vadd.f32 %v8635_v27, %v4927_v19  ;;  %v11442_v6 = vsub.f32 %v11440_v8, %v11441_v31  ;;  %v12448_v60 = vsub.f32 %v12446_v4, %v12447_v18 }
 0x58d   :  { %v8642_v16 = vadd.f32 %v8634_v25, %v4926_v53  ;;  %v19716_v36 = vpop.f32.mrb[20].mxu0  ;;  %v11809_v1 = vpop.permute.xlu0 %11808  ;;  %v12455_v27 = vsub.f32 %v12453_v33, %v12454_v30  ;;  %v17301_v19 = vpack.c.bf16 %v12454_v30, %v12447_v18  ;;  %v12461_v57 = vand.u32 4294901760, %v12460_v63 }
 0x58e   :  { %v11812_v58 = vsel %vm8547_vm3, %v8643_v24, 0  ;;  %v16632_v46 = vpop.f32.mrb[21].mxu0  ;;  %v11815_v28 = vand.u32 4294901760, %v11809_v1  ;;  %v11443_v0 = vand.u32 4294901760, %v11442_v6  ;;  %v12275_v2 = vsel %vm80_vm0, %v19716_v36, 0 }
 0x58f   :  { %v19719_v44 = vand.u32 4294901760, %v11812_v58  ;;  %v11360_v43 = vsel %vm8547_vm3, %v8642_v16, 0  ;;  %v19789_v48 = vand.u32 4294901760, %v12275_v2  ;;  %v12468_v25 = vand.u32 4294901760, %v12467_v56 }
 0x590   :  { %v19722_v59 = vand.u32 4294901760, %v11360_v43  ;;  %v11892_v10 = vsub.f32 %v11809_v1, %v11815_v28  ;;  %16784 = vmatpush3.msra.mxu0 %v11815_v28  ;;  %v12449_v53 = vand.u32 4294901760, %v12448_v60  ;;  %v12456_v24 = vand.u32 4294901760, %v12455_v27 }
 0x591   :  { %v11881_v23 = vsub.f32 %v11812_v58, %v19719_v44  ;;  %16788 = vmatprep.subr.mxu0 %v20608_v32  ;;  %v19792_v13 = vsub.f32 %v12275_v2, %v19789_v48  ;;  %v12469_v16 = vsub.f32 %v12467_v56, %v12468_v25  ;;  %v17305_v36 = vpack.c.bf16 %v12468_v25, %v12461_v57 }
 0x592   :  { %v11429_v11 = vsub.f32 %v11360_v43, %v19722_v59  ;;  %v11893_v42 = vand.u32 4294901760, %v11892_v10  ;;  %v17277_v1 = vpack.c.bf16 %v12456_v24, %v12449_v53 }
 0x593   :  { %v11882_v29 = vand.u32 4294901760, %v11881_v23  ;;  %v12376_v54 = vand.u32 4294901760, %v19792_v13  ;;  %v12470_v46 = vand.u32 4294901760, %v12469_v16 }
 0x594   :  { %v11894_v39 = vsub.f32 %v11892_v10, %v11893_v42  ;;  %v11430_v22 = vand.u32 4294901760, %v11429_v11 }
 0x595   :  { %v11883_v3 = vsub.f32 %v11881_v23, %v11882_v29  ;;  %v12377_v17 = vsub.f32 %v19792_v13, %v12376_v54 }
 0x596   :  { %v11895_v62 = vand.u32 4294901760, %v11894_v39  ;;  %v11431_v45 = vsub.f32 %v11429_v11, %v11430_v22 }
 0x597   :  { %v11884_v49 = vand.u32 4294901760, %v11883_v3  ;;  %v12378_v52 = vand.u32 4294901760, %v12377_v17 }
 0x598   :  { %v11432_v7 = vand.u32 4294901760, %v11431_v45 }
 0x599   :  { %16786 = vmatmul.mubr.f32.vlgmr.msra.gmra.mrb[26].mxu0 %v11884_v49 }
 0x59a   :  { %16789 = vmatpush3.msra.mxu0 %v11895_v62  ;;  %16756 = vmatmul.mubr.f32.vlgmr.msra.gmra.mrb[26].mxu1 %v11432_v7 }
 0x59b   :  { %16759 = vmatpush3.msra.mxu1 %v11443_v0  ;;  %16790 = vmatprep.mubr.msk.f32.mxu0 %vm18019_vm1, %v20608_v32 }
 0x59c   :  { %16793 = vmatprep.subr.mxu0 %v20608_v32  ;;  %16760 = vmatprep.mubr.msk.f32.mxu1 %vm18019_vm1, %v20608_v32 }
 0x59d   :  { %16763 = vmatprep.subr.mxu1 %v20608_v32 }
 0x5a1   :  { %16791 = vmatmul.mubr.f32.vlgmr.msra.gmra.mrb[26].mxu0 %v19719_v44 }
 0x5a2   :  { %16794 = vmatpush3.msra.mxu0 %v11892_v10  ;;  %16761 = vmatmul.mubr.f32.vlgmr.msra.gmra.mrb[26].mxu1 %v19722_v59  ;;  %v19811_v10 = vpack.c.bf16 %v12467_v56, %v12460_v63 }
 0x5a3   :  { %16764 = vmatpush3.msra.mxu1 %v11440_v8  ;;  %16795 = vmatprep.mubr.msk.f32.mxu0 %vm18019_vm1, %v20608_v32  ;;  %v12462_v8 = vsub.f32 %v12460_v63, %v12461_v57 }
 0x5a4   :  { %16798 = vmatprep.subr.mxu0 %v20608_v32  ;;  %16765 = vmatprep.mubr.msk.f32.mxu1 %vm18019_vm1, %v20608_v32 }
 0x5a5   :  { %16768 = vmatprep.subr.mxu1 %v20608_v32  ;;  %v12463_v58 = vand.u32 4294901760, %v12462_v8 }
 0x5a9   :  { %16796 = vmatmul.mubr.f32.vlgmr.msra.gmra.mrb[26].mxu0 %v11881_v23 }
 0x5aa   :  { %16799 = vmatpush3.msra.mxu0 %v11815_v28  ;;  %16766 = vmatmul.mubr.f32.vlgmr.msra.gmra.mrb[26].mxu1 %v11429_v11 }
 0x5ab   :  { %16769 = vmatpush3.msra.mxu1 %v19698_v20  ;;  %16800 = vmatprep.mubr.msk.f32.mxu0 %vm18019_vm1, %v20608_v32 }
 0x5ac   :  { %16803 = vmatprep.subr.mxu0 %v20608_v32  ;;  %16770 = vmatprep.mubr.msk.f32.mxu1 %vm18019_vm1, %v20608_v32 }
 0x5ad   :  { %16773 = vmatprep.subr.mxu1 %v20608_v32 }
 0x5b1   :  { %16801 = vmatmul.mubr.f32.vlgmr.msra.gmra.mrb[26].mxu0 %v11882_v29 }
 0x5b2   :  { %16804 = vmatpush3.msra.mxu0 %v11893_v42  ;;  %16771 = vmatmul.mubr.f32.vlgmr.msra.gmra.mrb[26].mxu1 %v11430_v22 }
 0x5b3   :  { %16774 = vmatpush3.msra.mxu1 %v11441_v31  ;;  %16805 = vmatprep.mubr.msk.f32.mxu0 %vm18019_vm1, %v20608_v32 }
 0x5b4   :  { %16808 = vmatprep.subr.mxu0 %v20608_v32  ;;  %16775 = vmatprep.mubr.msk.f32.mxu1 %vm18019_vm1, %v20608_v32 }
 0x5b5   :  { %16778 = vmatprep.subr.mxu1 %v20608_v32 }
 0x5b9   :  { %16806 = vmatmul.mubr.f32.vlgmr.msra.gmra.mrb[26].mxu0 %v19719_v44 }
 0x5ba   :  { %16809 = vmatpush3.msra.mxu0 %v11815_v28  ;;  %16776 = vmatmul.mubr.f32.vlgmr.msra.gmra.mrb[26].mxu1 %v19722_v59  ;;  %v17281_v28 = vpack.c.bf16 %v12470_v46, %v12463_v58  ;;  %v18013_v58 = vld [vmem:[%s20546_s0 + $0x8] sm:$0xff] }
 0x5bb   :  { %16779 = vmatpush3.msra.mxu1 %v19698_v20  ;;  %16810 = vmatprep.mubr.msk.f32.mxu0 %vm18019_vm1, %v20608_v32 }
 0x5bc   :  { %16780 = vmatprep.mubr.msk.f32.mxu1 %vm18019_vm1, %v20608_v32  ;;  %17294 = vmatprep.subr.bf16.mxu1 %v19760_v50 }
 0x5bd   :  { %17270 = vmatprep.subr.bf16.mxu0 %v19760_v50 }
 0x5c1   :  { %16811 = vmatmul.mubr.f32.vlgmr.msra.gmra.mrb[26].mxu0 %v19719_v44  ;;  %v19804_v44 = vpack.c.bf16 %v12453_v33, %v12446_v4 }
 0x5c2   :  { %16781 = vmatmul.mubr.f32.vlgmr.msra.gmra.mrb[26].mxu1 %v19722_v59  ;;  %17272 = vmatpush3.bf16.msra.mxu0 %v19760_v50 }
 0x5c3   :  { %17296 = vmatpush3.bf16.msra.mxu1 %v19760_v50  ;;  %17274 = vmatprep.subr.bf16.mxu0 %v19777_v35 }
 0x5c4   :  { %17298 = vmatprep.subr.bf16.mxu1 %v19777_v35 }
 0x5c6   :  { %v10448_v32 = vpop.f32.mrb[22].mxu0  ;;  %17276 = vmatpush3.bf16.msra.mxu0 %v19777_v35 }
 0x5c7   :  { %v16692_v15 = vpop.f32.mrb[23].mxu0  ;;  %17300 = vmatpush3.bf16.msra.mxu1 %v19777_v35  ;;  %17278 = vmatprep.subr.bf16.mxu0 %v17277_v1  ;;  %v12281_v43 = vsel %vm80_vm0, %v10448_v32, 0 }
 0x5c8   :  { %17302 = vmatprep.subr.bf16.mxu1 %v17301_v19  ;;  %v19809_v59 = vand.u32 4294901760, %v12281_v43 }
 0x5ca   :  { %v19814_v31 = vsub.f32 %v12281_v43, %v19809_v59 }
 0x5cc   :  { %v12396_v39 = vand.u32 4294901760, %v19814_v31 }
 0x5ce   :  { %v12397_v3 = vsub.f32 %v19814_v31, %v12396_v39 }
 0x5d0   :  { %v12398_v49 = vand.u32 4294901760, %v12397_v3 }
 0x5fb   :  { %v9092_v37 = vpop.f32.mrb[20].mxu1 }
 0x5fc   :  { %v12272_v34 = vsel %vm80_vm0, %v9092_v37, 0  ;;  %v16602_v47 = vpop.f32.mrb[21].mxu1 }
 0x5fd   :  { %v19795_v12 = vand.u32 4294901760, %v12272_v34 }
 0x5ff   :  { %v19799_v5 = vsub.f32 %v12272_v34, %v19795_v12 }
 0x601   :  { %v12366_v14 = vand.u32 4294901760, %v19799_v5 }
 0x603   :  { %16881 = vmatprep.mubr.f32.mxu1 %v12366_v14  ;;  %v12367_v20 = vsub.f32 %v19799_v5, %v12366_v14 }
 0x604   :  { %16882 = vmatmul.mubr.f32.vlgmr.msra.gmra.mrb[28].mxu1 %v12376_v54 }
 0x605   :  { %v12368_v55 = vand.u32 4294901760, %v12367_v20  ;;  %17304 = vmatpush3.bf16.msra.mxu1 %v17301_v19 }
 0x606   :  { %17306 = vmatprep.subr.bf16.mxu1 %v17305_v36 }
 0x607   :  { %16821 = vmatprep.mubr.f32.mxu0 %v12368_v55 }
 0x608   :  { %16822 = vmatmul.mubr.f32.vlgmr.msra.gmra.mrb[28].mxu0 %v12378_v52 }
 0x609   :  { %17280 = vmatpush3.bf16.msra.mxu0 %v17277_v1  ;;  %17308 = vmatpush3.bf16.msra.mxu1 %v17305_v36 }
 0x60a   :  { %17310 = vmatprep.subr.bf16.mxu1 %v19760_v50  ;;  %17282 = vmatprep.subr.bf16.mxu0 %v17281_v28 }
 0x60d   :  { %17284 = vmatpush3.bf16.msra.mxu0 %v17281_v28 }
 0x60e   :  { %17286 = vmatprep.subr.bf16.mxu0 %v19804_v44 }
 0x62f   :  { %v9996_v23 = vpop.f32.mrb[22].mxu1 }
 0x630   :  { %v12278_v11 = vsel %vm80_vm0, %v9996_v23, 0  ;;  %v16662_v42 = vpop.f32.mrb[23].mxu1 }
 0x631   :  { %v19817_v29 = vand.u32 4294901760, %v12278_v11 }
 0x633   :  { %v19821_v22 = vsub.f32 %v12278_v11, %v19817_v29 }
 0x635   :  { %v12386_v6 = vand.u32 4294901760, %v19821_v22 }
 0x637   :  { %16884 = vmatprep.mubr.f32.mxu1 %v12386_v6  ;;  %v12387_v62 = vsub.f32 %v19821_v22, %v12386_v6 }
 0x638   :  { %16885 = vmatmul.mubr.f32.gmra.mrb[30].mxu1 %v12396_v39 }
 0x639   :  { %v12388_v45 = vand.u32 4294901760, %v12387_v62 }
 0x63b   :  { %16824 = vmatprep.mubr.f32.mxu0 %v12388_v45 }
 0x63c   :  { %16825 = vmatmul.mubr.f32.gmra.mrb[30].mxu0 %v12398_v49 }
 0x641   :  { %v11352_v7 = vpop.f32.mrb[24].mxu0 }
 0x642   :  { %v16752_v0 = vpop.f32.mrb[25].mxu0  ;;  %v12287_v40 = vsel %vm80_vm0, %v11352_v7, 0 }
 0x643   :  { %v19827_v51 = vand.u32 4294901760, %v12287_v40 }
 0x645   :  { %v19830_v61 = vsub.f32 %v12287_v40, %v19827_v51  ;;  %v20630_v40 = vld [vmem:[#allocation3_spill] sm:$0xff] }
 0x647   :  { %v12416_v21 = vand.u32 4294901760, %v19830_v61 }
 0x649   :  { %v12417_v2 = vsub.f32 %v19830_v61, %v12416_v21 }
 0x64b   :  { %v12418_v47 = vand.u32 4294901760, %v12417_v2 }
 0x65b   :  { %v10900_v26 = vpop.f32.mrb[24].mxu1 }
 0x65c   :  { %v12284_v9 = vsel %vm80_vm0, %v10900_v26, 0  ;;  %v16722_v41 = vpop.f32.mrb[25].mxu1  ;;  %v20631_v26 = vld [vmem:[#allocation5_spill] sm:$0xff] }
 0x65d   :  { %v12404_v38 = vand.u32 4294901760, %v12284_v9 }
 0x65f   :  { %v12405_v32 = vsub.f32 %v12284_v9, %v12404_v38 }
 0x661   :  { %v12406_v15 = vand.u32 4294901760, %v12405_v32 }
 0x663   :  { %16887 = vmatprep.mubr.f32.mxu1 %v12406_v15  ;;  %v12407_v37 = vsub.f32 %v12405_v32, %v12406_v15 }
 0x664   :  { %16888 = vmatmul.mubr.f32.gmra.mrb[32].mxu1 %v12416_v21 }
 0x665   :  { %v12408_v34 = vand.u32 4294901760, %v12407_v37 }
 0x667   :  { %16827 = vmatprep.mubr.f32.mxu0 %v12408_v34 }
 0x668   :  { %16828 = vmatmul.mubr.f32.gmra.mrb[32].mxu0 %v12418_v47 }
 0x694   :  { %v12256_v54 = vpop.f32.mrb[26].mxu0 }
 0x695   :  { %v12293_v14 = vsel %vm80_vm0, %v12256_v54, 0  ;;  %v11804_v17 = vpop.f32.mrb[26].mxu1  ;;  %v16812_v20 = vpop.f32.mrb[27].mxu0 }
 0x696   :  { %v12434_v55 = vand.u32 4294901760, %v12293_v14  ;;  %v12290_v52 = vsel %vm80_vm0, %v11804_v17, 0  ;;  %v16782_v4 = vpop.f32.mrb[27].mxu1  ;;  %v20632_v20 = vld [vmem:[#allocation2_spill] sm:$0xff] }
 0x697   :  { %v12424_v33 = vand.u32 4294901760, %v12290_v52  ;;  %v20633_v4 = vld [vmem:[#allocation4_spill] sm:$0xff] }
 0x698   :  { %v12435_v18 = vsub.f32 %v12293_v14, %v12434_v55 }
 0x699   :  { %v12425_v30 = vsub.f32 %v12290_v52, %v12424_v33 }
 0x69a   :  { %v12436_v63 = vand.u32 4294901760, %v12435_v18 }
 0x69b   :  { %v12426_v56 = vand.u32 4294901760, %v12425_v30 }
 0x69c   :  { %v12437_v60 = vsub.f32 %v12435_v18, %v12436_v63 }
 0x69d   :  { %16890 = vmatprep.mubr.f32.mxu1 %v12426_v56  ;;  %v12427_v27 = vsub.f32 %v12425_v30, %v12426_v56 }
 0x69e   :  { %16891 = vmatmul.mubr.f32.gmra.mrb[34].mxu1 %v12436_v63  ;;  %v12438_v57 = vand.u32 4294901760, %v12437_v60 }
 0x69f   :  { %16901 = vmatprep.mubr.f32.mxu1 %v19795_v12  ;;  %v12428_v19 = vand.u32 4294901760, %v12427_v27  ;;  %v20634_v27 = vld [vmem:[#allocation7_spill] sm:$0xff] }
 0x6a1   :  { %16830 = vmatprep.mubr.f32.mxu0 %v12428_v19 }
 0x6a2   :  { %16831 = vmatmul.mubr.f32.gmra.mrb[34].mxu0 %v12438_v57  ;;  %16902 = vmatmul.mubr.f32.vlgmr.msra.gmra.mrb[28].mxu1 %v19789_v48 }
 0x6a3   :  { %16841 = vmatprep.mubr.f32.mxu0 %v19795_v12  ;;  %16904 = vmatprep.mubr.f32.mxu1 %v19817_v29 }
 0x6a4   :  { %17312 = vmatpush3.bf16.msra.mxu1 %v19760_v50 }
 0x6a5   :  { %17314 = vmatprep.subr.bf16.mxu1 %v19777_v35 }
 0x6a6   :  { %16842 = vmatmul.mubr.f32.vlgmr.msra.gmra.mrb[28].mxu0 %v19789_v48  ;;  %16905 = vmatmul.mubr.f32.gmra.mrb[30].mxu1 %v19809_v59 }
 0x6a7   :  { %17288 = vmatpush3.bf16.msra.mxu0 %v19804_v44  ;;  %16844 = vmatprep.mubr.f32.mxu0 %v19817_v29 }
 0x6a8   :  { %16907 = vmatprep.mubr.f32.mxu1 %v12404_v38  ;;  %17290 = vmatprep.subr.bf16.mxu0 %v19811_v10 }
 0x6a9   :  { %17316 = vmatpush3.bf16.msra.mxu1 %v19777_v35 }
 0x6aa   :  { %16845 = vmatmul.mubr.f32.gmra.mrb[30].mxu0 %v19809_v59  ;;  %16908 = vmatmul.mubr.f32.gmra.mrb[32].mxu1 %v19827_v51 }
 0x6ab   :  { %16847 = vmatprep.mubr.f32.mxu0 %v12404_v38  ;;  %16910 = vmatprep.mubr.f32.mxu1 %v12424_v33 }
 0x6ac   :  { %17292 = vmatpush3.bf16.msra.mxu0 %v19811_v10 }
 0x6ae   :  { %16848 = vmatmul.mubr.f32.gmra.mrb[32].mxu0 %v19827_v51  ;;  %16911 = vmatmul.mubr.f32.gmra.mrb[34].mxu1 %v12434_v55 }
 0x6af   :  { %16850 = vmatprep.mubr.f32.mxu0 %v12424_v33  ;;  %16921 = vmatprep.mubr.f32.mxu1 %v19795_v12 }
 0x6b2   :  { %16851 = vmatmul.mubr.f32.gmra.mrb[34].mxu0 %v12434_v55  ;;  %16922 = vmatmul.mubr.f32.vlgmr.msra.gmra.mrb[28].mxu1 %v19789_v48  ;;  %v15370_v48 = vld [vmem:[%s20551_s5] ss:$0 sm:$0xff] }
 0x6b3   :  { %16861 = vmatprep.mubr.f32.mxu0 %v19799_v5  ;;  %16924 = vmatprep.mubr.f32.mxu1 %v19817_v29 }
 0x6b6   :  { %16862 = vmatmul.mubr.f32.vlgmr.msra.gmra.mrb[28].mxu0 %v19792_v13  ;;  %16925 = vmatmul.mubr.f32.gmra.mrb[30].mxu1 %v19809_v59  ;;  %v18014_v59 = vld [vmem:[%s20546_s0] sm:$0xff] }
 0x6b7   :  { %16864 = vmatprep.mubr.f32.mxu0 %v19821_v22  ;;  %16927 = vmatprep.mubr.f32.mxu1 %v12404_v38 }
 0x6ba   :  { %16865 = vmatmul.mubr.f32.gmra.mrb[30].mxu0 %v19814_v31  ;;  %16928 = vmatmul.mubr.f32.gmra.mrb[32].mxu1 %v19827_v51 }
 0x6bb   :  { %16867 = vmatprep.mubr.f32.mxu0 %v12405_v32  ;;  %16930 = vmatprep.mubr.f32.mxu1 %v12424_v33 }
 0x6be   :  { %16868 = vmatmul.mubr.f32.gmra.mrb[32].mxu0 %v19830_v61  ;;  %16931 = vmatmul.mubr.f32.gmra.mrb[34].mxu1 %v12434_v55 }
 0x6bf   :  { %16870 = vmatprep.mubr.f32.mxu0 %v12425_v30 }
 0x6c2   :  { %16871 = vmatmul.mubr.f32.gmra.mrb[34].mxu0 %v12435_v18 }
 0x785   :  { %v16923_v50 = vpop.f32.mrb[28].mxu1 }
 0x786   :  { %v13035_v35 = vpop.f32.mrb[29].mxu1 }
 0x789   :  { %v16863_v13 = vpop.f32.mrb[28].mxu0  ;;  %v16926_v12 = vpop.f32.mrb[30].mxu1 }
 0x78a   :  { %v17469_v5 = vadd.f32 %v16863_v13, %v15370_v48  ;;  %v12653_v25 = vpop.f32.mrb[29].mxu0  ;;  %v13047_v53 = vpop.f32.mrb[31].mxu1 }
 0x78b   :  { %v17471_v24 = vadd.f32 %v15370_v48, %v12653_v25 }
 0x78c   :  { %v17470_v8 = vadd.f32 %v17469_v5, %v16923_v50  ;;  %v20635_v50 = vld [vmem:[#allocation6_spill] sm:$0xff] }
 0x78d   :  { %v17472_v16 = vadd.f32 %v17471_v24, %v13035_v35  ;;  %v16866_v36 = vpop.f32.mrb[30].mxu0  ;;  %v16929_v1 = vpop.f32.mrb[32].mxu1 }
 0x78e   :  { %v19869_v46 = vadd.f32 %v18013_v58, %v17470_v8  ;;  %v17473_v28 = vadd.f32 %v16866_v36, %v15370_v48  ;;  %v12667_v44 = vpop.f32.mrb[31].mxu0  ;;  %v13059_v43 = vpop.f32.mrb[33].mxu1  ;;  %v13090_v8 = vld [vmem:[%s20552_s10 + $0x8] sm:$0xff]  ;;  %v13097_v36 = vld [vmem:[%s20553_s11] sm:$0xff]  ;;  %v13092_v58 = vld [vmem:[%s20552_s10 + $0x18] sm:$0xff] }
 0x78f   :  { %v19874_v10 = vadd.f32 %v18014_v59, %v17472_v16  ;;  %v17475_v31 = vadd.f32 %v15370_v48, %v12667_v44  ;;  %v13089_v16 = vld [vmem:[%s20552_s10] sm:$0xff]  ;;  %v13099_v44 = vld [vmem:[%s20553_s11 + $0x10] sm:$0xff] }
 0x790   :  { %v17474_v23 = vadd.f32 %v17473_v28, %v16926_v12  ;;  %v13108_v11 = vsel %vm80_vm0, %v19869_v46, 0.0  ;;  %v13130_v3 = vmul.f32 %v19869_v46, %v19869_v46  ;;  %v13091_v28 = vld [vmem:[%s20552_s10 + $0x10] sm:$0xff]  ;;  %v13093_v59 = vld [vmem:[%s20552_s10 + $0x20] sm:$0xff] }
 0x791   :  { %v17476_v42 = vadd.f32 %v17475_v31, %v13047_v53  ;;  %v16869_v29 = vpop.f32.mrb[32].mxu0  ;;  %13109 = vadd.xlane.f32.xlu0 %v13108_v11  ;;  %v16932_v39 = vpop.f32.mrb[34].mxu1  ;;  %v13105_v22 = vsel %vm80_vm0, %v19874_v10, 0.0  ;;  %v13129_v6 = vmul.f32 %v19874_v10, %v19874_v10 }
 0x792   :  { %v17477_v62 = vadd.f32 %v16869_v29, %v15370_v48  ;;  %v12681_v45 = vpop.f32.mrb[33].mxu0  ;;  %v13071_v49 = vpop.f32.mrb[35].mxu1  ;;  %13106 = vadd.xlane.f32.xlu1 %v13105_v22  ;;  %v19889_v9 = vadd.f32 %v17474_v23, %v20631_v26  ;;  %v13140_v21 = vsel %vm80_vm0, %v13130_v3, 0.0 }
 0x793   :  { %v17479_v7 = vadd.f32 %v15370_v48, %v12681_v45  ;;  %v13137_v0 = vsel %vm80_vm0, %v13129_v6, 0.0  ;;  %v19886_v51 = vadd.f32 %v17476_v42, %v20630_v40  ;;  %v13102_v6 = vld [vmem:[%s20553_s11 + $0x28] sm:$0xff] }
 0x794   :  { %v17478_v61 = vadd.f32 %v17477_v62, %v16929_v1  ;;  %v13114_v14 = vsel %vm80_vm0, %v19889_v9, 0.0  ;;  %v13132_v17 = vmul.f32 %v19889_v9, %v19889_v9  ;;  %v13098_v1 = vld [vmem:[%s20553_s11 + $0x8] sm:$0xff] }
 0x795   :  { %v17480_v41 = vadd.f32 %v17479_v7, %v13059_v43  ;;  %v16872_v38 = vpop.f32.mrb[34].mxu0  ;;  %13138 = vadd.xlane.f32.xlu0 %v13137_v0  ;;  %v13111_v34 = vsel %vm80_vm0, %v19886_v51, 0.0  ;;  %v13131_v47 = vmul.f32 %v19886_v51, %v19886_v51  ;;  %v13100_v43 = vld [vmem:[%s20553_s11 + $0x18] sm:$0xff] }
 0x796   :  { %v17481_v32 = vadd.f32 %v16872_v38, %v15370_v48  ;;  %v12695_v15 = vpop.f32.mrb[35].mxu0  ;;  %13141 = vadd.xlane.f32.xlu1 %v13140_v21  ;;  %v19905_v33 = vadd.f32 %v17478_v61, %v20633_v4  ;;  %v13146_v18 = vsel %vm80_vm0, %v13132_v17, 0.0 }
 0x797   :  { %v17483_v2 = vadd.f32 %v15370_v48, %v12695_v15  ;;  %v19901_v55 = vadd.f32 %v17480_v41, %v20632_v20  ;;  %v13143_v52 = vsel %vm80_vm0, %v13131_v47, 0.0 }
 0x798   :  { %v17482_v37 = vadd.f32 %v17481_v32, %v16932_v39  ;;  %v13120_v56 = vsel %vm80_vm0, %v19905_v33, 0.0  ;;  %v13134_v60 = vmul.f32 %v19905_v33, %v19905_v33 }
 0x799   :  { %v17484_v54 = vadd.f32 %v17483_v2, %v13071_v49  ;;  %13112 = vadd.xlane.f32.xlu0 %v13111_v34  ;;  %v13117_v30 = vsel %vm80_vm0, %v19901_v55, 0.0  ;;  %v13133_v63 = vmul.f32 %v19901_v55, %v19901_v55 }
 0x79a   :  { %13115 = vadd.xlane.f32.xlu1 %v13114_v14  ;;  %v19921_v35 = vadd.f32 %v17482_v37, %v20635_v50  ;;  %v13152_v48 = vsel %vm80_vm0, %v13134_v60, 0.0 }
 0x79b   :  { %v19917_v19 = vadd.f32 %v17484_v54, %v20634_v27  ;;  %v13149_v57 = vsel %vm80_vm0, %v13133_v63, 0.0 }
 0x79c   :  { %v13126_v5 = vsel %vm80_vm0, %v19921_v35, 0.0  ;;  %v13136_v25 = vmul.f32 %v19921_v35, %v19921_v35 }
 0x79d   :  { %13144 = vadd.xlane.f32.xlu0 %v13143_v52  ;;  %v13123_v13 = vsel %vm80_vm0, %v19917_v19, 0.0  ;;  %v13135_v12 = vmul.f32 %v19917_v19, %v19917_v19 }
 0x79e   :  { %13147 = vadd.xlane.f32.xlu1 %v13146_v18  ;;  %v13158_v24 = vsel %vm80_vm0, %v13136_v25, 0.0 }
 0x79f   :  { %v13155_v53 = vsel %vm80_vm0, %v13135_v12, 0.0 }
 0x7a1   :  { %13118 = vadd.xlane.f32.xlu0 %v13117_v30 }
 0x7a2   :  { %13121 = vadd.xlane.f32.xlu1 %v13120_v56 }
 0x7a5   :  { %13150 = vadd.xlane.f32.xlu0 %v13149_v57 }
 0x7a6   :  { %13153 = vadd.xlane.f32.xlu1 %v13152_v48 }
 0x7a9   :  { %13124 = vadd.xlane.f32.xlu0 %v13123_v13 }
 0x7aa   :  { %13127 = vadd.xlane.f32.xlu1 %v13126_v5 }
 0x7ad   :  { %13156 = vadd.xlane.f32.xlu0 %v13155_v53 }
 0x7ae   :  { %13159 = vadd.xlane.f32.xlu1 %v13158_v24  ;;  %v13094_v24 = vld [vmem:[%s20552_s10 + $0x28] sm:$0xff] }
 0x7bf   :  { %13256 = vperm.xlu1 %17964, %v13090_v8  }
 0x7c3   :  { %13251 = vperm.xlu0 %17963, %v13089_v16   ;;  %13299 = vperm.xlu1 %17964, %v13097_v36   ;;  %v13101_v16 = vld [vmem:[%s20553_s11 + $0x20] sm:$0xff] }
 0x7c7   :  { %13304 = vperm.xlu0 %17963, %v13098_v1   ;;  %13266 = vperm.xlu1 %17964, %v13092_v58   ;;  %v13345_v1 = vld [vmem:[%s20554_s6] sm:$0xff]  ;;  %v13346_v58 = vld [vmem:[%s20554_s6 + $0x8] sm:$0xff] }
 0x7cb   :  { %13261 = vperm.xlu0 %17963, %v13091_v28   ;;  %13309 = vperm.xlu1 %17964, %v13099_v44   ;;  %v13095_v28 = vld [vmem:[%s20552_s10 + $0x30] sm:$0xff]  ;;  %v13381_v44 = vand.u32 4294901760, %v13345_v1 }
 0x7cf   :  { %13314 = vperm.xlu0 %17963, %v13100_v43   ;;  %v13384_v43 = vand.u32 4294901760, %v13346_v58 }
 0x7d3   :  { %13271 = vperm.xlu0 %17963, %v13093_v59   ;;  %v19979_v59 = vpack.c.bf16 %v13384_v43, %v13381_v44 }
 0x7d5   :  { %17318 = vmatprep.subr.bf16.mxu0 %v19979_v59 }
 0x7d6   :  { %17320 = vmatpush3.bf16.msra.mxu0 %v19979_v59 }
 0x81e   :  { %v13110_v31 = vpop.xlane.xlu0 %13109 }
 0x81f   :  { %v13107_v23 = vpop.xlane.xlu1 %13106 }
 0x820   :  { %v13161_v11 = vadd.f32 %v13110_v31, %v13107_v23  ;;  %v13347_v31 = vld [vmem:[%s20554_s6 + $0x10] sm:$0xff]  ;;  %v13348_v23 = vld [vmem:[%s20554_s6 + $0x18] sm:$0xff] }
 0x822   :  { %v13169_v42 = vmul.f32 0.015625, %v13161_v11  ;;  %v13139_v29 = vpop.xlane.xlu0 %13138  ;;  %v13103_v11 = vld [vmem:[%s20553_s11 + $0x30] sm:$0xff] }
 0x823   :  { %v13142_v39 = vpop.xlane.xlu1 %13141 }
 0x824   :  { %13195 = vperm.xlu0 %17963, %v13169_v42   ;;  %v13165_v22 = vadd.f32 %v13142_v39, %v13139_v29  ;;  %v13177_v40 = vmul.f32 %v13169_v42, %v13169_v42  ;;  %v13387_v42 = vand.u32 4294901760, %v13347_v31  ;;  %v13390_v29 = vand.u32 4294901760, %v13348_v23 }
 0x826   :  { %v13113_v3 = vpop.xlane.xlu0 %13112  ;;  %v13173_v49 = vmul.f32 0.015625, %v13165_v22  ;;  %v19992_v22 = vpack.c.bf16 %v13390_v29, %v13387_v42 }
 0x827   :  { %v13116_v62 = vpop.xlane.xlu1 %13115 }
 0x828   :  { %v13162_v45 = vadd.f32 %v13116_v62, %v13113_v3  ;;  %13324 = vperm.xlu0 %17963, %v13102_v6   ;;  %v13181_v41 = vsub.f32 %v13173_v49, %v13177_v40  ;;  %v13096_v6 = vld [vmem:[%s20552_s10 + $0x38] sm:$0xff]  ;;  %17322 = vmatprep.subr.bf16.mxu0 %v19992_v22  ;;  %v13531_v62 = vsub.f32 %v13345_v1, %v13381_v44 }
 0x829   :  { %17324 = vmatpush3.bf16.msra.mxu0 %v19992_v22  ;;  %v13104_v3 = vld [vmem:[%s20553_s11 + $0x38] sm:$0xff]  ;;  %v13552_v40 = vsub.f32 %v13348_v23, %v13390_v29 }
 0x82a   :  { %v13170_v7 = vmul.f32 0.015625, %v13162_v45  ;;  %v13145_v0 = vpop.xlane.xlu0 %13144  ;;  %v13185_v34 = vadd.f32 1e-05, %v13181_v41  ;;  %v13538_v45 = vsub.f32 %v13346_v58, %v13384_v43  ;;  %v13532_v49 = vand.u32 4294901760, %v13531_v62 }
 0x82b   :  { %v13148_v61 = vpop.xlane.xlu1 %13147 }
 0x82c   :  { %v13166_v26 = vadd.f32 %v13148_v61, %v13145_v0  ;;  %13200 = vperm.xlu1 %17964, %v13170_v7   ;;  %v13178_v38 = vmul.f32 %v13170_v7, %v13170_v7  ;;  %v13539_v7 = vand.u32 4294901760, %v13538_v45  ;;  %v13545_v0 = vsub.f32 %v13347_v31, %v13387_v42 }
 0x82d   :  { %v13533_v61 = vsub.f32 %v13531_v62, %v13532_v49 }
 0x82e   :  { %v13174_v21 = vmul.f32 0.015625, %v13166_v26  ;;  %v13119_v32 = vpop.xlane.xlu0 %13118  ;;  %v13540_v26 = vsub.f32 %v13538_v45, %v13539_v7  ;;  %v13546_v41 = vand.u32 4294901760, %v13545_v0 }
 0x82f   :  { %v13122_v15 = vpop.xlane.xlu1 %13121 }
 0x830   :  { %v13182_v2 = vsub.f32 %v13174_v21, %v13178_v38  ;;  %v13163_v37 = vadd.f32 %v13122_v15, %v13119_v32  ;;  %v13553_v38 = vand.u32 4294901760, %v13552_v40  ;;  %v13534_v21 = vand.u32 4294901760, %v13533_v61 }
 0x831   :  { %v13541_v32 = vand.u32 4294901760, %v13540_v26  ;;  %v13547_v15 = vsub.f32 %v13545_v0, %v13546_v41 }
 0x832   :  { %v13186_v47 = vadd.f32 1e-05, %v13182_v2  ;;  %v13171_v54 = vmul.f32 0.015625, %v13163_v37  ;;  %v13151_v14 = vpop.xlane.xlu0 %13150  ;;  %v13554_v2 = vsub.f32 %v13552_v40, %v13553_v38 }
 0x833   :  { %v13154_v17 = vpop.xlane.xlu1 %13153  ;;  %v20002_v37 = vpack.c.bf16 %v13541_v32, %v13534_v21 }
 0x834   :  { %17997 = vrsqrt.f32 %v13186_v47  ;;  %v13167_v20 = vadd.f32 %v13154_v17, %v13151_v14  ;;  %13205 = vperm.xlu1 %17964, %v13171_v54   ;;  %v13179_v52 = vmul.f32 %v13171_v54, %v13171_v54  ;;  %v13555_v47 = vand.u32 4294901760, %v13554_v2 }
 0x835   :  { %17999 = vrsqrt.f32 %v13185_v34  ;;  %v13548_v34 = vand.u32 4294901760, %v13547_v15  ;;  %17326 = vmatprep.subr.bf16.mxu0 %v20002_v37  ;;  %v20007_v14 = vpack.c.bf16 %v13538_v45, %v13531_v62  ;;  %v20009_v17 = vpack.c.bf16 %v13552_v40, %v13545_v0 }
 0x836   :  { %v13175_v4 = vmul.f32 0.015625, %v13167_v20  ;;  %v13125_v18 = vpop.xlane.xlu0 %13124  ;;  %v20011_v20 = vpack.c.bf16 %v13539_v7, %v13532_v49 }
 0x837   :  { %v13128_v30 = vpop.xlane.xlu1 %13127  ;;  %v20005_v54 = vpack.c.bf16 %v13555_v47, %v13548_v34 }
 0x838   :  { %v13183_v63 = vsub.f32 %v13175_v4, %v13179_v52  ;;  %v13164_v56 = vadd.f32 %v13128_v30, %v13125_v18  ;;  %v20013_v52 = vpack.c.bf16 %v13553_v38, %v13546_v41 }
 0x83a   :  { %v13187_v60 = vadd.f32 1e-05, %v13183_v63  ;;  %v13172_v27 = vmul.f32 0.015625, %v13164_v56  ;;  %v13157_v57 = vpop.xlane.xlu0 %13156 }
 0x83b   :  { %v13160_v50 = vpop.xlane.xlu1 %13159 }
 0x83c   :  { %18001 = vrsqrt.f32 %v13187_v60  ;;  %v13168_v48 = vadd.f32 %v13160_v50, %v13157_v57  ;;  %13210 = vperm.xlu1 %17964, %v13172_v27   ;;  %v13180_v12 = vmul.f32 %v13172_v27, %v13172_v27 }
 0x83e   :  { %v17998_v13 = vpop.eup %17997  ;;  %v13176_v5 = vmul.f32 0.015625, %v13168_v48 }
 0x83f   :  { %v18000_v25 = vpop.eup %17999  ;;  %13228 = vperm.xlu0 %17963, %v17998_v13   ;;  %v13257_v18 = vpop.permute.xlu1 %13256 }
 0x840   :  { %v13184_v53 = vsub.f32 %v13176_v5, %v13180_v12  ;;  %13223 = vperm.xlu1 %17964, %v18000_v25  }
 0x842   :  { %v13188_v8 = vadd.f32 1e-05, %v13184_v53  ;;  %v13252_v4 = vpop.permute.xlu0 %13251 }
 0x843   :  { %v13300_v63 = vpop.permute.xlu1 %13299 }
 0x844   :  { %18003 = vrsqrt.f32 %v13188_v8  ;;  %13276 = vperm.xlu1 %17964, %v13094_v24  }
 0x846   :  { %v18002_v36 = vpop.eup %18001  ;;  %v13305_v30 = vpop.permute.xlu0 %13304 }
 0x847   :  { %13233 = vperm.xlu0 %17963, %v18002_v36   ;;  %v13267_v60 = vpop.permute.xlu1 %13266 }
 0x848   :  { %13319 = vperm.xlu1 %17964, %v13101_v16  }
 0x84a   :  { %v13262_v56 = vpop.permute.xlu0 %13261 }
 0x84b   :  { %v13310_v57 = vpop.permute.xlu1 %13309 }
 0x84c   :  { %13281 = vperm.xlu1 %17964, %v13095_v28  }
 0x84e   :  { %v18004_v39 = vpop.eup %18003  ;;  %v13315_v27 = vpop.permute.xlu0 %13314 }
 0x84f   :  { %13238 = vperm.xlu0 %17963, %v18004_v39  }
 0x850   :  { %13329 = vperm.xlu1 %17964, %v13103_v11  }
 0x852   :  { %v13272_v50 = vpop.permute.xlu0 %13271 }
 0x853   :  { %13286 = vperm.xlu0 %17963, %v13096_v6  }
 0x857   :  { %13334 = vperm.xlu0 %17963, %v13104_v3  }
 0x8a3   :  { %v13196_v13 = vpop.permute.xlu0 %13195 }
 0x8a4   :  { %v13213_v8 = vsub.f32 %v19874_v10, %v13196_v13  ;;  %v13214_v16 = vsub.f32 %v19869_v46, %v13196_v13 }
 0x8a7   :  { %v13325_v5 = vpop.permute.xlu0 %13324 }
 0x8ab   :  { %v13201_v48 = vpop.permute.xlu1 %13200 }
 0x8ac   :  { %v13215_v53 = vsub.f32 %v19886_v51, %v13201_v48  ;;  %v13216_v24 = vsub.f32 %v19889_v9, %v13201_v48 }
 0x8b3   :  { %v13206_v12 = vpop.permute.xlu1 %13205 }
 0x8b4   :  { %v13217_v46 = vsub.f32 %v19901_v55, %v13206_v12  ;;  %v13218_v6 = vsub.f32 %v19905_v33, %v13206_v12 }
 0x8bb   :  { %v20015_v25 = vpop.permute.xlu1 %13210 }
 0x8be   :  { %v13229_v36 = vpop.permute.xlu0 %13228 }
 0x8bf   :  { %v13243_v1 = vmul.f32 %v13229_v36, %v13215_v53  ;;  %v13244_v58 = vmul.f32 %v13229_v36, %v13216_v24  ;;  %v13224_v28 = vpop.permute.xlu1 %13223 }
 0x8c0   :  { %v13241_v44 = vmul.f32 %v13224_v28, %v13213_v8  ;;  %v13242_v43 = vmul.f32 %v13224_v28, %v13214_v16  ;;  %v13220_v28 = vsub.f32 %v19921_v35, %v20015_v25 }
 0x8c1   :  { %v13291_v31 = vmul.f32 %v13262_v56, %v13243_v1  ;;  %v13292_v23 = vmul.f32 %v13267_v60, %v13244_v58  ;;  %v13219_v56 = vsub.f32 %v19917_v19, %v20015_v25 }
 0x8c2   :  { %v13289_v11 = vmul.f32 %v13252_v4, %v13241_v44  ;;  %v13290_v42 = vmul.f32 %v13257_v18, %v13242_v43 }
 0x8c3   :  { %v20021_v29 = vadd.f32 %v13310_v57, %v13291_v31  ;;  %v20023_v39 = vadd.f32 %v13315_v27, %v13292_v23  ;;  %v13277_v51 = vpop.permute.xlu1 %13276 }
 0x8c4   :  { %v20025_v9 = vadd.f32 %v13300_v63, %v13289_v11  ;;  %v20027_v10 = vadd.f32 %v13305_v30, %v13290_v42 }
 0x8c5   :  { %v13363_v3 = vsel %vm80_vm0, %v20021_v29, 0  ;;  %v13366_v62 = vsel %vm80_vm0, %v20023_v39, 0 }
 0x8c6   :  { %v20035_v45 = vand.u32 4294901760, %v13363_v3  ;;  %v20037_v49 = vand.u32 4294901760, %v13366_v62  ;;  %v13357_v7 = vsel %vm80_vm0, %v20025_v9, 0  ;;  %v13360_v0 = vsel %vm80_vm0, %v20027_v10, 0  ;;  %v13234_v40 = vpop.permute.xlu0 %13233 }
 0x8c7   :  { %v20043_v55 = vand.u32 4294901760, %v13357_v7  ;;  %v20045_v33 = vand.u32 4294901760, %v13360_v0  ;;  %v13245_v61 = vmul.f32 %v13234_v40, %v13217_v46  ;;  %v13246_v26 = vmul.f32 %v13234_v40, %v13218_v6  ;;  %v13320_v41 = vpop.permute.xlu1 %13319 }
 0x8c8   :  { %v20048_v38 = vsub.f32 %v13363_v3, %v20035_v45  ;;  %v20051_v21 = vsub.f32 %v13366_v62, %v20037_v49 }
 0x8c9   :  { %v20054_v32 = vsub.f32 %v13357_v7, %v20043_v55  ;;  %v20057_v15 = vsub.f32 %v13360_v0, %v20045_v33  ;;  %v13294_v2 = vmul.f32 %v13277_v51, %v13246_v26  ;;  %v13293_v34 = vmul.f32 %v13272_v50, %v13245_v61 }
 0x8ca   :  { %v13471_v47 = vand.u32 4294901760, %v20048_v38  ;;  %v13481_v57 = vand.u32 4294901760, %v20051_v21 }
 0x8cb   :  { %v13461_v4 = vand.u32 4294901760, %v20057_v15  ;;  %v20061_v18 = vadd.f32 %v13325_v5, %v13294_v2  ;;  %v20063_v30 = vadd.f32 %v13320_v41, %v13293_v34  ;;  %v13451_v63 = vand.u32 4294901760, %v20054_v32  ;;  %v13282_v60 = vpop.permute.xlu1 %13281 }
 0x8cc   :  { %v13472_v27 = vsub.f32 %v20048_v38, %v13471_v47  ;;  %v13482_v58 = vsub.f32 %v20051_v21, %v13481_v57 }
 0x8cd   :  { %v13372_v50 = vsel %vm80_vm0, %v20061_v18, 0  ;;  %v13369_v48 = vsel %vm80_vm0, %v20063_v30, 0  ;;  %v13452_v13 = vsub.f32 %v20054_v32, %v13451_v63  ;;  %v13462_v19 = vsub.f32 %v20057_v15, %v13461_v4 }
 0x8ce   :  { %v20082_v12 = vand.u32 4294901760, %v13372_v50  ;;  %v20084_v5 = vand.u32 4294901760, %v13369_v48  ;;  %v13239_v53 = vpop.permute.xlu0 %13238  ;;  %v13473_v43 = vand.u32 4294901760, %v13472_v27  ;;  %v13483_v6 = vand.u32 4294901760, %v13482_v58 }
 0x8cf   :  { %v13247_v24 = vmul.f32 %v13239_v53, %v13219_v56  ;;  %v13453_v8 = vand.u32 4294901760, %v13452_v13  ;;  %v13463_v16 = vand.u32 4294901760, %v13462_v19  ;;  %v13330_v31 = vpop.permute.xlu1 %13329  ;;  %v13248_v51 = vmul.f32 %v13239_v53, %v13220_v28  ;;  %v14197_v13 = vld [vmem:[%s20555_s8 + $0x38] sm:$0xff] }
 0x8d0   :  { %v20087_v36 = vsub.f32 %v13372_v50, %v20082_v12  ;;  %v20090_v1 = vsub.f32 %v13369_v48, %v20084_v5 }
 0x8d1   :  { %v13295_v44 = vmul.f32 %v13282_v60, %v13247_v24  ;;  %16941 = vmatprep.mubr.f32.mxu0 %v13453_v8 }
 0x8d2   :  { %v13287_v23 = vpop.permute.xlu0 %13286  ;;  %16942 = vmatmul.mubr.f32.vlgmr.msra.gmra.mrb[36].mxu0 %v13463_v16  ;;  %v13491_v11 = vand.u32 4294901760, %v20090_v1  ;;  %v13501_v42 = vand.u32 4294901760, %v20087_v36 }
 0x8d3   :  { %v20099_v46 = vadd.f32 %v13330_v31, %v13295_v44  ;;  %16944 = vmatprep.mubr.f32.mxu0 %v13473_v43  ;;  %17328 = vmatpush3.bf16.msra.mxu0 %v20002_v37  ;;  %v13296_v62 = vmul.f32 %v13287_v23, %v13248_v51 }
 0x8d4   :  { %v13492_v35 = vsub.f32 %v20090_v1, %v13491_v11  ;;  %v13502_v25 = vsub.f32 %v20087_v36, %v13501_v42  ;;  %17330 = vmatprep.subr.bf16.mxu0 %v20005_v54 }
 0x8d5   :  { %v13375_v3 = vsel %vm80_vm0, %v20099_v46, 0 }
 0x8d6   :  { %v20111_v7 = vand.u32 4294901760, %v13375_v3  ;;  %v13335_v0 = vpop.permute.xlu0 %13334  ;;  %16945 = vmatmul.mubr.f32.gmra.mrb[38].mxu0 %v13483_v6  ;;  %v13493_v37 = vand.u32 4294901760, %v13492_v35  ;;  %v13503_v26 = vand.u32 4294901760, %v13502_v25 }
 0x8d7   :  { %v20113_v40 = vadd.f32 %v13335_v0, %v13296_v62  ;;  %17332 = vmatpush3.bf16.msra.mxu0 %v20005_v54 }
 0x8d8   :  { %v13510_v61 = vsub.f32 %v13375_v3, %v20111_v7  ;;  %16947 = vmatprep.mubr.f32.mxu0 %v13493_v37  ;;  %17334 = vmatprep.subr.bf16.mxu0 %v20007_v14 }
 0x8d9   :  { %v13378_v41 = vsel %vm80_vm0, %v20113_v40, 0 }
 0x8da   :  { %v20120_v2 = vand.u32 4294901760, %v13378_v41  ;;  %16948 = vmatmul.mubr.f32.gmra.mrb[40].mxu0 %v13503_v26  ;;  %v13511_v34 = vand.u32 4294901760, %v13510_v61 }
 0x8dc   :  { %v13520_v56 = vsub.f32 %v13378_v41, %v20120_v2  ;;  %v13512_v60 = vsub.f32 %v13510_v61, %v13511_v34 }
 0x8de   :  { %v13513_v27 = vand.u32 4294901760, %v13512_v60  ;;  %v13521_v50 = vand.u32 4294901760, %v13520_v56 }
 0x8e0   :  { %16950 = vmatprep.mubr.f32.mxu0 %v13513_v27  ;;  %v13522_v54 = vsub.f32 %v13520_v56, %v13521_v50 }
 0x8e2   :  { %v13523_v48 = vand.u32 4294901760, %v13522_v54 }
 0x8e4   :  { %16951 = vmatmul.mubr.f32.gmra.mrb[42].mxu0 %v13523_v48 }
 0x8e5   :  { %16961 = vmatprep.mubr.f32.mxu0 %v20043_v55 }
 0x8e8   :  { %16962 = vmatmul.mubr.f32.vlgmr.msra.gmra.mrb[36].mxu0 %v20045_v33 }
 0x8e9   :  { %17336 = vmatpush3.bf16.msra.mxu0 %v20007_v14  ;;  %16964 = vmatprep.mubr.f32.mxu0 %v20035_v45 }
 0x8ea   :  { %17338 = vmatprep.subr.bf16.mxu0 %v20009_v17 }
 0x8ec   :  { %16965 = vmatmul.mubr.f32.gmra.mrb[38].mxu0 %v20037_v49 }
 0x8ed   :  { %16967 = vmatprep.mubr.f32.mxu0 %v20084_v5  ;;  %17340 = vmatpush3.bf16.msra.mxu0 %v20009_v17 }
 0x8ee   :  { %17342 = vmatprep.subr.bf16.mxu0 %v19979_v59 }
 0x8f0   :  { %16968 = vmatmul.mubr.f32.gmra.mrb[40].mxu0 %v20082_v12 }
 0x8f1   :  { %16970 = vmatprep.mubr.f32.mxu0 %v20111_v7 }
 0x8f4   :  { %16971 = vmatmul.mubr.f32.gmra.mrb[42].mxu0 %v20120_v2 }
 0x8f5   :  { %16981 = vmatprep.mubr.f32.mxu0 %v20054_v32 }
 0x8f8   :  { %16982 = vmatmul.mubr.f32.vlgmr.msra.gmra.mrb[36].mxu0 %v20057_v15 }
 0x8f9   :  { %17344 = vmatpush3.bf16.msra.mxu0 %v19979_v59  ;;  %16984 = vmatprep.mubr.f32.mxu0 %v20048_v38  ;;  %v14194_v38 = vld [vmem:[%s20555_s8 + $0x20] sm:$0xff] }
 0x8fa   :  { %17346 = vmatprep.subr.bf16.mxu0 %v19992_v22  ;;  %v14243_v32 = vand.u32 4294901760, %v14194_v38 }
 0x8fc   :  { %16985 = vmatmul.mubr.f32.gmra.mrb[38].mxu0 %v20051_v21  ;;  %v14195_v21 = vld [vmem:[%s20555_s8 + $0x28] sm:$0xff] }
 0x8fd   :  { %16987 = vmatprep.mubr.f32.mxu0 %v20090_v1  ;;  %17348 = vmatpush3.bf16.msra.mxu0 %v19992_v22  ;;  %v14246_v15 = vand.u32 4294901760, %v14195_v21 }
 0x8fe   :  { %17350 = vmatprep.subr.bf16.mxu0 %v20011_v20 }
 0x8ff   :  { %v14420_v51 = vsub.f32 %v14195_v21, %v14246_v15 }
 0x900   :  { %16988 = vmatmul.mubr.f32.gmra.mrb[40].mxu0 %v20087_v36 }
 0x901   :  { %16990 = vmatprep.mubr.f32.mxu0 %v13510_v61  ;;  %v14421_v3 = vand.u32 4294901760, %v14420_v51 }
 0x903   :  { %v14422_v0 = vsub.f32 %v14420_v51, %v14421_v3 }
 0x904   :  { %16991 = vmatmul.mubr.f32.gmra.mrb[42].mxu0 %v13520_v56 }
 0x905   :  { %17001 = vmatprep.mubr.f32.mxu0 %v13451_v63  ;;  %v14423_v41 = vand.u32 4294901760, %v14422_v0 }
 0x908   :  { %17002 = vmatmul.mubr.f32.vlgmr.msra.gmra.mrb[36].mxu0 %v13461_v4 }
 0x909   :  { %17352 = vmatpush3.bf16.msra.mxu0 %v20011_v20  ;;  %17004 = vmatprep.mubr.f32.mxu0 %v13471_v47  ;;  %v20206_v47 = vpack.c.bf16 %v14246_v15, %v14243_v32 }
 0x90a   :  { %17354 = vmatprep.subr.bf16.mxu0 %v20013_v52 }
 0x90c   :  { %17005 = vmatmul.mubr.f32.gmra.mrb[38].mxu0 %v13481_v57  ;;  %v14196_v57 = vld [vmem:[%s20555_s8 + $0x30] sm:$0xff] }
 0x90d   :  { %17007 = vmatprep.mubr.f32.mxu0 %v13491_v11  ;;  %17356 = vmatpush3.bf16.msra.mxu0 %v20013_v52  ;;  %v14192_v52 = vld [vmem:[%s20555_s8 + $0x10] sm:$0xff]  ;;  %v14249_v19 = vand.u32 4294901760, %v14196_v57 }
 0x90e   :  { %17358 = vmatprep.subr.bf16.mxu0 %v19979_v59 }
 0x90f   :  { %v14427_v37 = vsub.f32 %v14196_v57, %v14249_v19 }
 0x910   :  { %17008 = vmatmul.mubr.f32.gmra.mrb[40].mxu0 %v13501_v42  ;;  %v14413_v42 = vsub.f32 %v14194_v38, %v14243_v32  ;;  %v15371_v38 = vld [vmem:[%s20556_s7] ss:$0 sm:$0xff] }
 0x911   :  { %17010 = vmatprep.mubr.f32.mxu0 %v13511_v34 }
 0x912   :  { %v14414_v25 = vand.u32 4294901760, %v14413_v42 }
 0x914   :  { %17011 = vmatmul.mubr.f32.gmra.mrb[42].mxu0 %v13521_v50 }
 0x915   :  { %17021 = vmatprep.mubr.f32.mxu0 %v20043_v55 }
 0x918   :  { %17022 = vmatmul.mubr.f32.vlgmr.msra.gmra.mrb[36].mxu0 %v20045_v33 }
 0x919   :  { %17360 = vmatpush3.bf16.msra.mxu0 %v19979_v59  ;;  %17024 = vmatprep.mubr.f32.mxu0 %v20035_v45  ;;  %v14190_v59 = vld [vmem:[%s20555_s8] sm:$0xff] }
 0x91a   :  { %17362 = vmatprep.subr.bf16.mxu0 %v19992_v22  ;;  %v14231_v14 = vand.u32 4294901760, %v14190_v59 }
 0x91c   :  { %17025 = vmatmul.mubr.f32.gmra.mrb[38].mxu0 %v20037_v49  ;;  %v14385_v4 = vsub.f32 %v14190_v59, %v14231_v14 }
 0x91d   :  { %17027 = vmatprep.mubr.f32.mxu0 %v20084_v5  ;;  %17364 = vmatpush3.bf16.msra.mxu0 %v19992_v22  ;;  %v14191_v22 = vld [vmem:[%s20555_s8 + $0x8] sm:$0xff] }
 0x91e   :  { %v14234_v17 = vand.u32 4294901760, %v14191_v22 }
 0x920   :  { %17028 = vmatmul.mubr.f32.gmra.mrb[40].mxu0 %v20082_v12  ;;  %v20186_v20 = vpack.c.bf16 %v14234_v17, %v14231_v14  ;;  %v14392_v63 = vsub.f32 %v14191_v22, %v14234_v17  ;;  %v20233_v14 = vpack.c.bf16 %v14420_v51, %v14413_v42 }
 0x921   :  { %17030 = vmatprep.mubr.f32.mxu0 %v20111_v7 }
 0x922   :  { %17366 = vmatprep.subr.bf16.mxu1 %v20186_v20  ;;  %v14393_v53 = vand.u32 4294901760, %v14392_v63  ;;  %v20229_v59 = vpack.c.bf16 %v14392_v63, %v14385_v4 }
 0x923   :  { %17368 = vmatpush3.bf16.msra.mxu1 %v20186_v20 }
 0x924   :  { %17031 = vmatmul.mubr.f32.gmra.mrb[42].mxu0 %v20120_v2  ;;  %v14394_v16 = vsub.f32 %v14392_v63, %v14393_v53 }
 0x925   :  { %17041 = vmatprep.mubr.f32.mxu0 %v20043_v55 }
 0x926   :  { %v14395_v28 = vand.u32 4294901760, %v14394_v16 }
 0x928   :  { %17042 = vmatmul.mubr.f32.vlgmr.msra.gmra.mrb[36].mxu0 %v20045_v33 }
 0x929   :  { %17044 = vmatprep.mubr.f32.mxu0 %v20035_v45  ;;  %v14193_v45 = vld [vmem:[%s20555_s8 + $0x18] sm:$0xff] }
 0x92a   :  { %v14240_v55 = vand.u32 4294901760, %v14193_v45 }
 0x92c   :  { %17045 = vmatmul.mubr.f32.gmra.mrb[38].mxu0 %v20037_v49  ;;  %v14237_v49 = vand.u32 4294901760, %v14192_v52  ;;  %v14406_v1 = vsub.f32 %v14193_v45, %v14240_v55 }
 0x92d   :  { %17047 = vmatprep.mubr.f32.mxu0 %v20084_v5  ;;  %v14386_v5 = vand.u32 4294901760, %v14385_v4 }
 0x92e   :  { %v20196_v33 = vpack.c.bf16 %v14240_v55, %v14237_v49  ;;  %v14399_v36 = vsub.f32 %v14192_v52, %v14237_v49  ;;  %v14407_v43 = vand.u32 4294901760, %v14406_v1  ;;  %v20241_v49 = vpack.c.bf16 %v14421_v3, %v14414_v25 }
 0x92f   :  { %v14387_v8 = vsub.f32 %v14385_v4, %v14386_v5  ;;  %v20237_v52 = vpack.c.bf16 %v14393_v53, %v14386_v5 }
 0x930   :  { %17048 = vmatmul.mubr.f32.gmra.mrb[40].mxu0 %v20082_v12  ;;  %17370 = vmatprep.subr.bf16.mxu1 %v20196_v33  ;;  %v14252_v12 = vand.u32 4294901760, %v14197_v13  ;;  %v14400_v44 = vand.u32 4294901760, %v14399_v36  ;;  %v14408_v11 = vsub.f32 %v14406_v1, %v14407_v43  ;;  %v20231_v22 = vpack.c.bf16 %v14406_v1, %v14399_v36 }
 0x931   :  { %17050 = vmatprep.mubr.f32.mxu0 %v20111_v7  ;;  %17372 = vmatpush3.bf16.msra.mxu1 %v20196_v33  ;;  %v14388_v58 = vand.u32 4294901760, %v14387_v8  ;;  %v14415_v7 = vsub.f32 %v14413_v42, %v14414_v25 }
 0x932   :  { %17374 = vmatprep.subr.bf16.mxu1 %v20206_v47  ;;  %v20216_v24 = vpack.c.bf16 %v14252_v12, %v14249_v19  ;;  %v14401_v23 = vsub.f32 %v14399_v36, %v14400_v44  ;;  %v14409_v35 = vand.u32 4294901760, %v14408_v11  ;;  %v14434_v61 = vsub.f32 %v14197_v13, %v14252_v12 }
 0x933   :  { %v20220_v31 = vpack.c.bf16 %v14395_v28, %v14388_v58  ;;  %v14416_v26 = vand.u32 4294901760, %v14415_v7  ;;  %v20239_v45 = vpack.c.bf16 %v14407_v43, %v14400_v44 }
 0x934   :  { %17051 = vmatmul.mubr.f32.gmra.mrb[42].mxu0 %v20120_v2  ;;  %v14402_v6 = vand.u32 4294901760, %v14401_v23  ;;  %v14428_v2 = vand.u32 4294901760, %v14427_v37  ;;  %v14435_v34 = vand.u32 4294901760, %v14434_v61  ;;  %v20235_v17 = vpack.c.bf16 %v14434_v61, %v14427_v37 }
 0x935   :  { %17376 = vmatpush3.bf16.msra.mxu1 %v20206_v47  ;;  %v20225_v56 = vpack.c.bf16 %v14423_v41, %v14416_v26 }
 0x936   :  { %17378 = vmatprep.subr.bf16.mxu1 %v20216_v24  ;;  %v20223_v62 = vpack.c.bf16 %v14409_v35, %v14402_v6  ;;  %v14429_v60 = vsub.f32 %v14427_v37, %v14428_v2  ;;  %v14436_v27 = vsub.f32 %v14434_v61, %v14435_v34  ;;  %v20243_v55 = vpack.c.bf16 %v14435_v34, %v14428_v2 }
 0x938   :  { %v14430_v50 = vand.u32 4294901760, %v14429_v60  ;;  %v14437_v54 = vand.u32 4294901760, %v14436_v27 }
 0x939   :  { %17380 = vmatpush3.bf16.msra.mxu1 %v20216_v24 }
 0x93a   :  { %17382 = vmatprep.subr.bf16.mxu1 %v20220_v31  ;;  %v20227_v48 = vpack.c.bf16 %v14437_v54, %v14430_v50 }
 0x9fb   :  { %v17043_v21 = vpop.f32.mrb[36].mxu0 }
 0x9fc   :  { %v17485_v32 = vadd.f32 %v17043_v21, %v15371_v38  ;;  %v14120_v15 = vpop.f32.mrb[37].mxu0 }
 0x9fd   :  { %v17486_v4 = vadd.f32 %v15371_v38, %v14120_v15 }
 0x9fe   :  { %vm14167_vm12 = vcmp.ge.f32.partialorder %v17485_v32, 0.0  ;;  %v14175_v63 = vmul.f32 0.01, %v17485_v32 }
 0x9ff   :  { %vm14166_vm14 = vcmp.ge.f32.partialorder %v17486_v4, 0.0  ;;  %v14174_v57 = vmul.f32 0.01, %v17486_v4  ;;  %v17046_v13 = vpop.f32.mrb[38].mxu0 }
 0xa00   :  { %v14183_v19 = vsel %vm14167_vm12, %v17485_v32, %v14175_v63  ;;  %v17487_v12 = vadd.f32 %v17046_v13, %v15371_v38  ;;  %v14132_v5 = vpop.f32.mrb[39].mxu0 }
 0xa01   :  { %v14210_v53 = vsel %vm14205_vm13, %v14183_v19, 0  ;;  %v14182_v8 = vsel %vm14166_vm14, %v17486_v4, %v14174_v57  ;;  %v17488_v16 = vadd.f32 %v15371_v38, %v14132_v5 }
 0xa02   :  { %v20249_v36 = vand.u32 4294901760, %v14210_v53  ;;  %v14207_v1 = vsel %vm14205_vm13, %v14182_v8, 0  ;;  %vm14169_vm15 = vcmp.ge.f32.partialorder %v17487_v12, 0.0  ;;  %v14177_v58 = vmul.f32 0.01, %v17487_v12 }
 0xa03   :  { %v20252_v28 = vand.u32 4294901760, %v14207_v1  ;;  %vm14168_vm1 = vcmp.ge.f32.partialorder %v17488_v16, 0.0  ;;  %v14176_v44 = vmul.f32 0.01, %v17488_v16  ;;  %v17049_v43 = vpop.f32.mrb[40].mxu0 }
 0xa04   :  { %v20255_v23 = vsub.f32 %v14210_v53, %v20249_v36  ;;  %v14185_v11 = vsel %vm14169_vm15, %v17487_v12, %v14177_v58  ;;  %v17489_v42 = vadd.f32 %v17049_v43, %v15371_v38  ;;  %v14144_v51 = vpop.f32.mrb[41].mxu0 }
 0xa05   :  { %v20258_v6 = vsub.f32 %v14207_v1, %v20252_v28  ;;  %v14216_v35 = vsel %vm14205_vm13, %v14185_v11, 0  ;;  %v14184_v25 = vsel %vm14168_vm1, %v17488_v16, %v14176_v44  ;;  %v17490_v3 = vadd.f32 %v15371_v38, %v14144_v51 }
 0xa06   :  { %v14315_v7 = vand.u32 4294901760, %v20255_v23  ;;  %v20262_v0 = vand.u32 4294901760, %v14216_v35  ;;  %v14213_v37 = vsel %vm14205_vm13, %v14184_v25, 0  ;;  %vm14171_vm2 = vcmp.ge.f32.partialorder %v17489_v42, 0.0 }
 0xa07   :  { %v20265_v61 = vand.u32 4294901760, %v14213_v37  ;;  %v14179_v26 = vmul.f32 0.01, %v17489_v42  ;;  %vm14170_vm3 = vcmp.ge.f32.partialorder %v17490_v3, 0.0  ;;  %v14178_v41 = vmul.f32 0.01, %v17490_v3 }
 0xa08   :  { %v14316_v2 = vsub.f32 %v20255_v23, %v14315_v7  ;;  %v20271_v34 = vsub.f32 %v14216_v35, %v20262_v0  ;;  %v17052_v60 = vpop.f32.mrb[42].mxu0  ;;  %v14305_v27 = vand.u32 4294901760, %v20258_v6 }
 0xa09   :  { %v20275_v50 = vsub.f32 %v14213_v37, %v20265_v61  ;;  %v14187_v54 = vsel %vm14171_vm2, %v17489_v42, %v14179_v26  ;;  %v14186_v21 = vsel %vm14170_vm3, %v17490_v3, %v14178_v41  ;;  %v17491_v32 = vadd.f32 %v17052_v60, %v15371_v38  ;;  %v14156_v15 = vpop.f32.mrb[43].mxu0 }
 0xa0a   :  { %v14222_v4 = vsel %vm14205_vm13, %v14187_v54, 0  ;;  %v14219_v63 = vsel %vm14205_vm13, %v14186_v21, 0  ;;  %v17492_v57 = vadd.f32 %v15371_v38, %v14156_v15  ;;  %v14306_v13 = vsub.f32 %v20258_v6, %v14305_v27 }
 0xa0b   :  { %v20282_v19 = vand.u32 4294901760, %v14222_v4  ;;  %v20284_v12 = vand.u32 4294901760, %v14219_v63  ;;  %vm14173_vm4 = vcmp.ge.f32.partialorder %v17491_v32, 0.0  ;;  %v14181_v5 = vmul.f32 0.01, %v17491_v32 }
 0xa0c   :  { %vm14172_vm5 = vcmp.ge.f32.partialorder %v17492_v57, 0.0  ;;  %v14180_v53 = vmul.f32 0.01, %v17492_v57  ;;  %v14307_v8 = vand.u32 4294901760, %v14306_v13  ;;  %v14317_v16 = vand.u32 4294901760, %v14316_v2 }
 0xa0d   :  { %v20287_v1 = vsub.f32 %v14222_v4, %v20282_v19  ;;  %v20290_v58 = vsub.f32 %v14219_v63, %v20284_v12  ;;  %v14189_v38 = vsel %vm14173_vm4, %v17491_v32, %v14181_v5  ;;  %v14325_v44 = vand.u32 4294901760, %v20275_v50 }
 0xa0e   :  { %v14228_v43 = vsel %vm14205_vm13, %v14189_v38, 0  ;;  %v14188_v11 = vsel %vm14172_vm5, %v17492_v57, %v14180_v53  ;;  %17069 = vmatprep.mubr.f32.mxu1 %v14307_v8  ;;  %v14335_v42 = vand.u32 4294901760, %v20271_v34 }
 0xa0f   :  { %v20295_v51 = vand.u32 4294901760, %v14228_v43  ;;  %v14225_v35 = vsel %vm14205_vm13, %v14188_v11, 0  ;;  %17070 = vmatmul.mubr.f32.vlgmr.msra.gmra.mrb[36].mxu1 %v14317_v16  ;;  %v14326_v25 = vsub.f32 %v20275_v50, %v14325_v44  ;;  %v14345_v3 = vand.u32 4294901760, %v20290_v58 }
 0xa10   :  { %v20302_v37 = vand.u32 4294901760, %v14225_v35  ;;  %17384 = vmatpush3.bf16.msra.mxu1 %v20220_v31  ;;  %v14336_v26 = vsub.f32 %v20271_v34, %v14335_v42  ;;  %v14355_v41 = vand.u32 4294901760, %v20287_v1 }
 0xa11   :  { %v20310_v2 = vsub.f32 %v14228_v43, %v20295_v51  ;;  %v14327_v60 = vand.u32 4294901760, %v14326_v25  ;;  %17386 = vmatprep.subr.bf16.mxu1 %v20223_v62  ;;  %v14346_v54 = vsub.f32 %v20290_v58, %v14345_v3 }
 0xa12   :  { %v20317_v21 = vsub.f32 %v14225_v35, %v20302_v37  ;;  %v14337_v31 = vand.u32 4294901760, %v14336_v26  ;;  %v14356_v32 = vsub.f32 %v20287_v1, %v14355_v41 }
 0xa13   :  { %17072 = vmatprep.mubr.f32.mxu1 %v14327_v60  ;;  %v14347_v15 = vand.u32 4294901760, %v14346_v54  ;;  %v14375_v4 = vand.u32 4294901760, %v20310_v2  ;;  %v15079_v60 = vld [vmem:[%s20558_s12 + $0x18] sm:$0xff]  ;;  %v15082_v54 = vld [vmem:[%s20558_s12 + $0x30] sm:$0xff] }
 0xa14   :  { %17073 = vmatmul.mubr.f32.gmra.mrb[38].mxu1 %v14337_v31  ;;  %v14365_v63 = vand.u32 4294901760, %v20317_v21  ;;  %v14357_v57 = vand.u32 4294901760, %v14356_v32  ;;  %v15086_v31 = vld [vmem:[%s20559_s13 + $0x10] sm:$0xff]  ;;  %v15083_v32 = vld [vmem:[%s20558_s12 + $0x38] sm:$0xff] }
 0xa15   :  { %17388 = vmatpush3.bf16.msra.mxu1 %v20223_v62  ;;  %17075 = vmatprep.mubr.f32.mxu1 %v14347_v15  ;;  %v14376_v5 = vsub.f32 %v20310_v2, %v14375_v4  ;;  %v15087_v15 = vld [vmem:[%s20559_s13 + $0x18] sm:$0xff] }
 0xa16   :  { %17390 = vmatprep.subr.bf16.mxu1 %v20225_v56  ;;  %v14366_v13 = vsub.f32 %v20317_v21, %v14365_v63 }
 0xa17   :  { %v14377_v8 = vand.u32 4294901760, %v14376_v5 }
 0xa18   :  { %17076 = vmatmul.mubr.f32.gmra.mrb[40].mxu1 %v14357_v57  ;;  %v14367_v53 = vand.u32 4294901760, %v14366_v13 }
 0xa19   :  { %17392 = vmatpush3.bf16.msra.mxu1 %v20225_v56 }
 0xa1a   :  { %17078 = vmatprep.mubr.f32.mxu1 %v14367_v53  ;;  %17394 = vmatprep.subr.bf16.mxu1 %v20227_v48 }
 0xa1c   :  { %17079 = vmatmul.mubr.f32.gmra.mrb[42].mxu1 %v14377_v8 }
 0xa1d   :  { %17396 = vmatpush3.bf16.msra.mxu1 %v20227_v48  ;;  %17097 = vmatprep.mubr.f32.mxu1 %v20252_v28 }
 0xa1e   :  { %17398 = vmatprep.subr.bf16.mxu1 %v20229_v59 }
 0xa20   :  { %17098 = vmatmul.mubr.f32.vlgmr.msra.gmra.mrb[36].mxu1 %v20249_v36 }
 0xa21   :  { %17400 = vmatpush3.bf16.msra.mxu1 %v20229_v59  ;;  %17100 = vmatprep.mubr.f32.mxu1 %v20265_v61 }
 0xa22   :  { %17402 = vmatprep.subr.bf16.mxu1 %v20231_v22 }
 0xa24   :  { %17101 = vmatmul.mubr.f32.gmra.mrb[38].mxu1 %v20262_v0 }
 0xa25   :  { %17404 = vmatpush3.bf16.msra.mxu1 %v20231_v22  ;;  %17103 = vmatprep.mubr.f32.mxu1 %v20284_v12 }
 0xa26   :  { %17406 = vmatprep.subr.bf16.mxu1 %v20233_v14 }
 0xa28   :  { %17104 = vmatmul.mubr.f32.gmra.mrb[40].mxu1 %v20282_v19 }
 0xa29   :  { %17408 = vmatpush3.bf16.msra.mxu1 %v20233_v14  ;;  %17106 = vmatprep.mubr.f32.mxu1 %v20302_v37 }
 0xa2a   :  { %17410 = vmatprep.subr.bf16.mxu1 %v20235_v17 }
 0xa2c   :  { %17107 = vmatmul.mubr.f32.gmra.mrb[42].mxu1 %v20295_v51 }
 0xa2d   :  { %17412 = vmatpush3.bf16.msra.mxu1 %v20235_v17  ;;  %17125 = vmatprep.mubr.f32.mxu1 %v20258_v6 }
 0xa2e   :  { %17414 = vmatprep.subr.bf16.mxu1 %v20186_v20 }
 0xa30   :  { %17126 = vmatmul.mubr.f32.vlgmr.msra.gmra.mrb[36].mxu1 %v20255_v23 }
 0xa31   :  { %17416 = vmatpush3.bf16.msra.mxu1 %v20186_v20  ;;  %17128 = vmatprep.mubr.f32.mxu1 %v20275_v50 }
 0xa32   :  { %17418 = vmatprep.subr.bf16.mxu1 %v20196_v33 }
 0xa34   :  { %17129 = vmatmul.mubr.f32.gmra.mrb[38].mxu1 %v20271_v34 }
 0xa35   :  { %17420 = vmatpush3.bf16.msra.mxu1 %v20196_v33  ;;  %17131 = vmatprep.mubr.f32.mxu1 %v20290_v58 }
 0xa36   :  { %17422 = vmatprep.subr.bf16.mxu1 %v20206_v47 }
 0xa38   :  { %17132 = vmatmul.mubr.f32.gmra.mrb[40].mxu1 %v20287_v1 }
 0xa39   :  { %17424 = vmatpush3.bf16.msra.mxu1 %v20206_v47  ;;  %17134 = vmatprep.mubr.f32.mxu1 %v20317_v21  ;;  %v15081_v21 = vld [vmem:[%s20558_s12 + $0x28] sm:$0xff] }
 0xa3a   :  { %17426 = vmatprep.subr.bf16.mxu1 %v20216_v24 }
 0xa3c   :  { %17135 = vmatmul.mubr.f32.gmra.mrb[42].mxu1 %v20310_v2  ;;  %v15080_v2 = vld [vmem:[%s20558_s12 + $0x20] sm:$0xff] }
 0xa3d   :  { %17428 = vmatpush3.bf16.msra.mxu1 %v20216_v24  ;;  %17153 = vmatprep.mubr.f32.mxu1 %v14305_v27 }
 0xa3e   :  { %17430 = vmatprep.subr.bf16.mxu1 %v20237_v52 }
 0xa40   :  { %17154 = vmatmul.mubr.f32.vlgmr.msra.gmra.mrb[36].mxu1 %v14315_v7 }
 0xa41   :  { %17432 = vmatpush3.bf16.msra.mxu1 %v20237_v52  ;;  %17156 = vmatprep.mubr.f32.mxu1 %v14325_v44 }
 0xa42   :  { %17434 = vmatprep.subr.bf16.mxu1 %v20239_v45 }
 0xa44   :  { %17157 = vmatmul.mubr.f32.gmra.mrb[38].mxu1 %v14335_v42 }
 0xa45   :  { %17436 = vmatpush3.bf16.msra.mxu1 %v20239_v45  ;;  %17159 = vmatprep.mubr.f32.mxu1 %v14345_v3 }
 0xa46   :  { %17438 = vmatprep.subr.bf16.mxu1 %v20241_v49 }
 0xa48   :  { %17160 = vmatmul.mubr.f32.gmra.mrb[40].mxu1 %v14355_v41  ;;  %v15078_v41 = vld [vmem:[%s20558_s12 + $0x10] sm:$0xff] }
 0xa49   :  { %17440 = vmatpush3.bf16.msra.mxu1 %v20241_v49  ;;  %17162 = vmatprep.mubr.f32.mxu1 %v14365_v63 }
 0xa4a   :  { %17442 = vmatprep.subr.bf16.mxu1 %v20243_v55 }
 0xa4c   :  { %17163 = vmatmul.mubr.f32.gmra.mrb[42].mxu1 %v14375_v4 }
 0xa4d   :  { %17444 = vmatpush3.bf16.msra.mxu1 %v20243_v55  ;;  %17181 = vmatprep.mubr.f32.mxu1 %v20252_v28 }
 0xa4e   :  { %17446 = vmatprep.subr.bf16.mxu1 %v20186_v20 }
 0xa50   :  { %17182 = vmatmul.mubr.f32.vlgmr.msra.gmra.mrb[36].mxu1 %v20249_v36 }
 0xa51   :  { %17448 = vmatpush3.bf16.msra.mxu1 %v20186_v20  ;;  %17184 = vmatprep.mubr.f32.mxu1 %v20265_v61 }
 0xa52   :  { %17450 = vmatprep.subr.bf16.mxu1 %v20196_v33 }
 0xa54   :  { %17185 = vmatmul.mubr.f32.gmra.mrb[38].mxu1 %v20262_v0 }
 0xa55   :  { %17452 = vmatpush3.bf16.msra.mxu1 %v20196_v33  ;;  %17187 = vmatprep.mubr.f32.mxu1 %v20284_v12 }
 0xa56   :  { %17454 = vmatprep.subr.bf16.mxu1 %v20206_v47 }
 0xa58   :  { %17188 = vmatmul.mubr.f32.gmra.mrb[40].mxu1 %v20282_v19 }
 0xa59   :  { %17456 = vmatpush3.bf16.msra.mxu1 %v20206_v47  ;;  %17190 = vmatprep.mubr.f32.mxu1 %v20302_v37  ;;  %v15372_v47 = vld [vmem:[%s20557_s9] ss:$0 sm:$0xff] }
 0xa5a   :  { %17458 = vmatprep.subr.bf16.mxu1 %v20216_v24 }
 0xa5c   :  { %17191 = vmatmul.mubr.f32.gmra.mrb[42].mxu1 %v20295_v51 }
 0xa5d   :  { %17460 = vmatpush3.bf16.msra.mxu1 %v20216_v24  ;;  %17209 = vmatprep.mubr.f32.mxu1 %v20252_v28 }
 0xa60   :  { %17210 = vmatmul.mubr.f32.vlgmr.msra.gmra.mrb[36].mxu1 %v20249_v36 }
 0xa61   :  { %17212 = vmatprep.mubr.f32.mxu1 %v20265_v61 }
 0xa64   :  { %17213 = vmatmul.mubr.f32.gmra.mrb[38].mxu1 %v20262_v0 }
 0xa65   :  { %17215 = vmatprep.mubr.f32.mxu1 %v20284_v12 }
 0xa68   :  { %17216 = vmatmul.mubr.f32.gmra.mrb[40].mxu1 %v20282_v19 }
 0xa69   :  { %17218 = vmatprep.mubr.f32.mxu1 %v20302_v37 }
 0xa6c   :  { %17219 = vmatmul.mubr.f32.gmra.mrb[42].mxu1 %v20295_v51 }
 0xb33   :  { %v17211_v20 = vpop.f32.mrb[36].mxu1 }
 0xb34   :  { %v15022_v33 = vpop.f32.mrb[37].mxu1  ;;  %v17493_v43 = vadd.f32 %v17211_v20, %v15372_v47 }
 0xb35   :  { %v17494_v58 = vadd.f32 %v15372_v47, %v15022_v33 }
 0xb36   :  { %v20461_v51 = vadd.f32 %v17493_v43, %v20027_v10 }
 0xb37   :  { %v17214_v24 = vpop.f32.mrb[38].mxu1  ;;  %v20457_v11 = vadd.f32 %v17494_v58, %v20025_v9 }
 0xb38   :  { %v17495_v62 = vadd.f32 %v17214_v24, %v15372_v47  ;;  %v15034_v56 = vpop.f32.mrb[39].mxu1  ;;  %v15095_v9 = vsel %vm80_vm0, %v20461_v51, 0.0  ;;  %v15117_v37 = vmul.f32 %v20461_v51, %v20461_v51 }
 0xb39   :  { %v17496_v48 = vadd.f32 %v15372_v47, %v15034_v56  ;;  %v15092_v25 = vsel %vm80_vm0, %v20457_v11, 0.0  ;;  %v15116_v3 = vmul.f32 %v20457_v11, %v20457_v11 }
 0xb3a   :  { %v20411_v59 = vadd.f32 %v17495_v62, %v20023_v39  ;;  %v15127_v26 = vsel %vm80_vm0, %v15117_v37, 0.0 }
 0xb3b   :  { %v20414_v22 = vadd.f32 %v17496_v48, %v20021_v29  ;;  %v17217_v14 = vpop.f32.mrb[40].mxu1  ;;  %v15124_v10 = vsel %vm80_vm0, %v15116_v3, 0.0 }
 0xb3c   :  { %v17497_v17 = vadd.f32 %v17217_v14, %v15372_v47  ;;  %v15046_v52 = vpop.f32.mrb[41].mxu1  ;;  %v15101_v45 = vsel %vm80_vm0, %v20411_v59, 0.0  ;;  %v15119_v39 = vmul.f32 %v20411_v59, %v20411_v59 }
 0xb3d   :  { %v17498_v49 = vadd.f32 %v15372_v47, %v15046_v52  ;;  %15102 = vadd.xlane.f32.xlu0 %v15101_v45  ;;  %v15098_v55 = vsel %vm80_vm0, %v20414_v22, 0.0  ;;  %v15118_v36 = vmul.f32 %v20414_v22, %v20414_v22 }
 0xb3e   :  { %15099 = vadd.xlane.f32.xlu1 %v15098_v55  ;;  %v20429_v7 = vadd.f32 %v17497_v17, %v20061_v18  ;;  %v15133_v0 = vsel %vm80_vm0, %v15119_v39, 0.0 }
 0xb3f   :  { %v17220_v29 = vpop.f32.mrb[42].mxu1  ;;  %v15130_v28 = vsel %vm80_vm0, %v15118_v36, 0.0  ;;  %v20426_v23 = vadd.f32 %v17498_v49, %v20063_v30 }
 0xb40   :  { %v15058_v6 = vpop.f32.mrb[43].mxu1  ;;  %v17499_v50 = vadd.f32 %v17220_v29, %v15372_v47  ;;  %v15107_v30 = vsel %vm80_vm0, %v20429_v7, 0.0  ;;  %v15121_v18 = vmul.f32 %v20429_v7, %v20429_v7 }
 0xb41   :  { %15131 = vadd.xlane.f32.xlu0 %v15130_v28  ;;  %v17500_v61 = vadd.f32 %v15372_v47, %v15058_v6  ;;  %v15104_v34 = vsel %vm80_vm0, %v20426_v23, 0.0  ;;  %v15120_v27 = vmul.f32 %v20426_v23, %v20426_v23 }
 0xb42   :  { %15134 = vadd.xlane.f32.xlu1 %v15133_v0  ;;  %v20445_v16 = vadd.f32 %v17499_v50, %v20113_v40  ;;  %v15139_v1 = vsel %vm80_vm0, %v15121_v18, 0.0 }
 0xb43   :  { %v20441_v19 = vadd.f32 %v17500_v61, %v20099_v46  ;;  %v15136_v12 = vsel %vm80_vm0, %v15120_v27, 0.0 }
 0xb44   :  { %v15113_v46 = vsel %vm80_vm0, %v20445_v16, 0.0  ;;  %v15123_v40 = vmul.f32 %v20445_v16, %v20445_v16 }
 0xb45   :  { %15105 = vadd.xlane.f32.xlu0 %v15104_v34  ;;  %v15110_v38 = vsel %vm80_vm0, %v20441_v19, 0.0  ;;  %v15122_v44 = vmul.f32 %v20441_v19, %v20441_v19 }
 0xb46   :  { %15108 = vadd.xlane.f32.xlu1 %v15107_v30  ;;  %v15145_v35 = vsel %vm80_vm0, %v15123_v40, 0.0 }
 0xb47   :  { %v15142_v42 = vsel %vm80_vm0, %v15122_v44, 0.0  ;;  %v15089_v44 = vld [vmem:[%s20559_s13 + $0x28] sm:$0xff] }
 0xb49   :  { %15137 = vadd.xlane.f32.xlu0 %v15136_v12 }
 0xb4a   :  { %15140 = vadd.xlane.f32.xlu1 %v15139_v1 }
 0xb4d   :  { %15111 = vadd.xlane.f32.xlu0 %v15110_v38 }
 0xb4e   :  { %15114 = vadd.xlane.f32.xlu1 %v15113_v46 }
 0xb51   :  { %15143 = vadd.xlane.f32.xlu0 %v15142_v42 }
 0xb52   :  { %15146 = vadd.xlane.f32.xlu1 %v15145_v35 }
 0xb55   :  { %15093 = vadd.xlane.f32.xlu0 %v15092_v25 }
 0xb56   :  { %15096 = vadd.xlane.f32.xlu1 %v15095_v9 }
 0xb59   :  { %15125 = vadd.xlane.f32.xlu0 %v15124_v10  ;;  %v15088_v10 = vld [vmem:[%s20559_s13 + $0x20] sm:$0xff] }
 0xb5a   :  { %15128 = vadd.xlane.f32.xlu1 %v15127_v26 }
 0xb6b   :  { %15248 = vperm.xlu1 %17964, %v15078_v41   ;;  %v15090_v41 = vld [vmem:[%s20559_s13 + $0x30] sm:$0xff] }
 0xb6f   :  { %15258 = vperm.xlu1 %17964, %v15080_v2   ;;  %15253 = vperm.xlu0 %17963, %v15079_v60   ;;  %v15091_v60 = vld [vmem:[%s20559_s13 + $0x38] sm:$0xff] }
 0xb73   :  { %15268 = vperm.xlu1 %17964, %v15082_v54   ;;  %15263 = vperm.xlu0 %17963, %v15081_v21   ;;  %v15076_v54 = vld [vmem:[%s20558_s12] sm:$0xff] }
 0xb77   :  { %15296 = vperm.xlu1 %17964, %v15086_v31   ;;  %15273 = vperm.xlu0 %17963, %v15083_v32   ;;  %v15084_v31 = vld [vmem:[%s20559_s13] sm:$0xff]  ;;  %v15077_v32 = vld [vmem:[%s20558_s12 + $0x8] sm:$0xff] }
 0xb7b   :  { %15301 = vperm.xlu0 %17963, %v15087_v15   ;;  %v15085_v15 = vld [vmem:[%s20559_s13 + $0x8] sm:$0xff] }
 0xbca   :  { %v15103_v4 = vpop.xlane.xlu0 %15102 }
 0xbcb   :  { %v15100_v63 = vpop.xlane.xlu1 %15099 }
 0xbcc   :  { %v15149_v57 = vadd.f32 %v15103_v4, %v15100_v63 }
 0xbce   :  { %v15157_v13 = vmul.f32 0.015625, %v15149_v57  ;;  %v15132_v5 = vpop.xlane.xlu0 %15131 }
 0xbcf   :  { %v15135_v53 = vpop.xlane.xlu1 %15134 }
 0xbd0   :  { %v15153_v8 = vadd.f32 %v15135_v53, %v15132_v5  ;;  %15187 = vperm.xlu0 %17963, %v15157_v13   ;;  %v15165_v20 = vmul.f32 %v15157_v13, %v15157_v13 }
 0xbd2   :  { %v15161_v33 = vmul.f32 0.015625, %v15153_v8  ;;  %v15106_v47 = vpop.xlane.xlu0 %15105 }
 0xbd3   :  { %v15109_v24 = vpop.xlane.xlu1 %15108 }
 0xbd4   :  { %v15169_v62 = vsub.f32 %v15161_v33, %v15165_v20  ;;  %v15150_v56 = vadd.f32 %v15109_v24, %v15106_v47 }
 0xbd6   :  { %v15173_v48 = vadd.f32 1e-05, %v15169_v62  ;;  %v15158_v14 = vmul.f32 0.015625, %v15150_v56  ;;  %v15138_v17 = vpop.xlane.xlu0 %15137 }
 0xbd7   :  { %v15141_v52 = vpop.xlane.xlu1 %15140 }
 0xbd8   :  { %18005 = vrsqrt.f32 %v15173_v48  ;;  %v15154_v45 = vadd.f32 %v15141_v52, %v15138_v17  ;;  %15192 = vperm.xlu1 %17964, %v15158_v14   ;;  %v15166_v49 = vmul.f32 %v15158_v14, %v15158_v14 }
 0xbda   :  { %v15162_v55 = vmul.f32 0.015625, %v15154_v45  ;;  %v15112_v36 = vpop.xlane.xlu0 %15111 }
 0xbdb   :  { %v15115_v39 = vpop.xlane.xlu1 %15114 }
 0xbdc   :  { %v15170_v29 = vsub.f32 %v15162_v55, %v15166_v49  ;;  %v15151_v28 = vadd.f32 %v15115_v39, %v15112_v36 }
 0xbde   :  { %v15174_v6 = vadd.f32 1e-05, %v15170_v29  ;;  %v15159_v0 = vmul.f32 0.015625, %v15151_v28  ;;  %v15144_v61 = vpop.xlane.xlu0 %15143 }
 0xbdf   :  { %v15147_v34 = vpop.xlane.xlu1 %15146 }
 0xbe0   :  { %18007 = vrsqrt.f32 %v15174_v6  ;;  %v15155_v27 = vadd.f32 %v15147_v34, %v15144_v61  ;;  %15197 = vperm.xlu1 %17964, %v15159_v0   ;;  %v15167_v30 = vmul.f32 %v15159_v0, %v15159_v0 }
 0xbe2   :  { %v18006_v50 = vpop.eup %18005  ;;  %v15163_v18 = vmul.f32 0.015625, %v15155_v27  ;;  %v15094_v12 = vpop.xlane.xlu0 %15093 }
 0xbe3   :  { %v15097_v1 = vpop.xlane.xlu1 %15096  ;;  %15215 = vperm.xlu0 %17963, %v18006_v50  }
 0xbe4   :  { %v15171_v58 = vsub.f32 %v15163_v18, %v15167_v30  ;;  %v15148_v38 = vadd.f32 %v15097_v1, %v15094_v12 }
 0xbe6   :  { %v15175_v43 = vadd.f32 1e-05, %v15171_v58  ;;  %v15156_v46 = vmul.f32 0.015625, %v15148_v38  ;;  %v15126_v40 = vpop.xlane.xlu0 %15125 }
 0xbe7   :  { %v15129_v42 = vpop.xlane.xlu1 %15128  ;;  %15311 = vperm.xlu0 %17963, %v15089_v44  }
 0xbe8   :  { %18009 = vrsqrt.f32 %v15175_v43  ;;  %v15152_v35 = vadd.f32 %v15129_v42, %v15126_v40  ;;  %v15164_v3 = vmul.f32 %v15156_v46, %v15156_v46 }
 0xbea   :  { %v18008_v25 = vpop.eup %18007  ;;  %v15160_v9 = vmul.f32 0.015625, %v15152_v35 }
 0xbeb   :  { %15220 = vperm.xlu1 %17964, %v18008_v25   ;;  %v15249_v63 = vpop.permute.xlu1 %15248 }
 0xbec   :  { %v15168_v37 = vsub.f32 %v15160_v9, %v15164_v3 }
 0xbee   :  { %v15172_v26 = vadd.f32 1e-05, %v15168_v37  ;;  %v15254_v4 = vpop.permute.xlu0 %15253 }
 0xbef   :  { %15306 = vperm.xlu1 %17964, %v15088_v10   ;;  %v15259_v13 = vpop.permute.xlu1 %15258 }
 0xbf0   :  { %18011 = vrsqrt.f32 %v15172_v26 }
 0xbf2   :  { %v18010_v2 = vpop.eup %18009  ;;  %v15264_v57 = vpop.permute.xlu0 %15263 }
 0xbf3   :  { %15316 = vperm.xlu1 %17964, %v15090_v41   ;;  %15225 = vperm.xlu0 %17963, %v18010_v2   ;;  %v15269_v53 = vpop.permute.xlu1 %15268 }
 0xbf6   :  { %v15274_v5 = vpop.permute.xlu0 %15273 }
 0xbf7   :  { %15321 = vperm.xlu0 %17963, %v15091_v60   ;;  %15182 = vperm.xlu1 %17964, %v15156_v46   ;;  %v15297_v20 = vpop.permute.xlu1 %15296 }
 0xbfa   :  { %v18012_v21 = vpop.eup %18011  ;;  %v15302_v8 = vpop.permute.xlu0 %15301 }
 0xbfb   :  { %15238 = vperm.xlu1 %17964, %v15076_v54   ;;  %15210 = vperm.xlu0 %17963, %v18012_v21  }
 0xbff   :  { %15286 = vperm.xlu1 %17964, %v15084_v31   ;;  %15243 = vperm.xlu0 %17963, %v15077_v32  }
 0xc03   :  { %15291 = vperm.xlu0 %17963, %v15085_v15  }
 0xc4f   :  { %v15188_v33 = vpop.permute.xlu0 %15187 }
 0xc50   :  { %v15202_v47 = vsub.f32 %v20414_v22, %v15188_v33  ;;  %v15203_v24 = vsub.f32 %v20411_v59, %v15188_v33 }
 0xc57   :  { %v15193_v62 = vpop.permute.xlu1 %15192 }
 0xc58   :  { %v15204_v36 = vsub.f32 %v20426_v23, %v15193_v62  ;;  %v15205_v39 = vsub.f32 %v20429_v7, %v15193_v62 }
 0xc5f   :  { %v15198_v45 = vpop.permute.xlu1 %15197 }
 0xc60   :  { %v15206_v50 = vsub.f32 %v20441_v19, %v15198_v45  ;;  %v15207_v30 = vsub.f32 %v20445_v16, %v15198_v45 }
 0xc62   :  { %v15216_v56 = vpop.permute.xlu0 %15215 }
 0xc63   :  { %v15230_v48 = vmul.f32 %v15216_v56, %v15202_v47  ;;  %v15231_v14 = vmul.f32 %v15216_v56, %v15203_v24 }
 0xc65   :  { %v15278_v17 = vmul.f32 %v15249_v63, %v15230_v48  ;;  %v15279_v52 = vmul.f32 %v15254_v4, %v15231_v14 }
 0xc66   :  { %v15312_v0 = vpop.permute.xlu0 %15311 }
 0xc67   :  { %v15326_v49 = vadd.f32 %v15297_v20, %v15278_v17  ;;  %v15327_v55 = vadd.f32 %v15302_v8, %v15279_v52 }
 0xc69   :  { %15336 = vrot.lane.b32.xlu0 %v15327_v55, %s18017_s1  ;;  %15334 = vrot.lane.b32.xlu1 %v15326_v49, %s18017_s1 }
 0xc6a   :  { %v15221_v22 = vpop.permute.xlu1 %15220 }
 0xc6b   :  { %v15232_v29 = vmul.f32 %v15221_v22, %v15204_v36  ;;  %v15233_v59 = vmul.f32 %v15221_v22, %v15205_v39 }
 0xc6d   :  { %v15281_v28 = vmul.f32 %v15264_v57, %v15233_v59  ;;  %v15280_v6 = vmul.f32 %v15259_v13, %v15232_v29 }
 0xc6e   :  { %v15307_v61 = vpop.permute.xlu1 %15306 }
 0xc6f   :  { %v15329_v34 = vadd.f32 %v15312_v0, %v15281_v28  ;;  %v15328_v27 = vadd.f32 %v15307_v61, %v15280_v6 }
 0xc71   :  { %15342 = vrot.lane.b32.xlu1 %v15328_v27, %s18015_s19  ;;  %15344 = vrot.lane.b32.xlu0 %v15329_v34, %s18015_s19 }
 0xc72   :  { %v15226_v23 = vpop.permute.xlu0 %15225  ;;  %v15317_v58 = vpop.permute.xlu1 %15316 }
 0xc73   :  { %v15234_v7 = vmul.f32 %v15226_v23, %v15206_v50  ;;  %v15235_v18 = vmul.f32 %v15226_v23, %v15207_v30 }
 0xc75   :  { %v15282_v12 = vmul.f32 %v15269_v53, %v15234_v7  ;;  %v15283_v1 = vmul.f32 %v15274_v5, %v15235_v18 }
 0xc76   :  { %v15322_v38 = vpop.permute.xlu0 %15321  ;;  %v15183_v19 = vpop.permute.xlu1 %15182 }
 0xc77   :  { %v15330_v44 = vadd.f32 %v15317_v58, %v15282_v12  ;;  %v15331_v43 = vadd.f32 %v15322_v38, %v15283_v1  ;;  %v15200_v42 = vsub.f32 %v20457_v11, %v15183_v19  ;;  %v15201_v9 = vsub.f32 %v20461_v51, %v15183_v19 }
 0xc79   :  { %15350 = vrot.lane.b32.xlu1 %v15330_v44, %s18016_s20  ;;  %15352 = vrot.lane.b32.xlu0 %v15331_v43, %s18016_s20 }
 0xc7a   :  { %v15211_v46 = vpop.permute.xlu0 %15210  ;;  %v15239_v16 = vpop.permute.xlu1 %15238 }
 0xc7b   :  { %v15228_v3 = vmul.f32 %v15211_v46, %v15200_v42  ;;  %v15229_v26 = vmul.f32 %v15211_v46, %v15201_v9 }
 0xc7d   :  { %v15276_v41 = vmul.f32 %v15239_v16, %v15228_v3 }
 0xc7e   :  { %v15244_v40 = vpop.permute.xlu0 %15243  ;;  %v15287_v35 = vpop.permute.xlu1 %15286 }
 0xc7f   :  { %v15277_v2 = vmul.f32 %v15244_v40, %v15229_v26  ;;  %v15324_v21 = vadd.f32 %v15287_v35, %v15276_v41 }
 0xc82   :  { %v15292_v25 = vpop.permute.xlu0 %15291 }
 0xc83   :  { %v15325_v31 = vadd.f32 %v15292_v25, %v15277_v2 }
 0xcdb   :  { %v15335_v37 = vpop.permute.xlu1 %15334  ;;  %v15337_v10 = vpop.permute.xlu0 %15336 }
 0xcdc   :  { %v15356_v32 = vsel %vm80_vm0, %v15324_v21, %v15335_v37  ;;  %v15357_v15 = vsel %vm80_vm0, %v15325_v31, %v15337_v10 }
 0xce3   :  { %v15343_v60 = vpop.permute.xlu1 %15342  ;;  %v15345_v54 = vpop.permute.xlu0 %15344 }
 0xce4   :  { %v15358_v11 = vsel %vm14205_vm13, %v15356_v32, %v15343_v60  ;;  %v15359_v4 = vsel %vm14205_vm13, %v15357_v15, %v15345_v54 }
 0xceb   :  { %v15351_v63 = vpop.permute.xlu1 %15350  ;;  %v15353_v51 = vpop.permute.xlu0 %15352 }
 0xcec   :  { %v15361_v57 = vsel %vm15360_vm6, %v15358_v11, %v15351_v63  ;;  %v15362_v13 = vsel %vm15360_vm6, %v15359_v4, %v15353_v51 }
 0xced   :  { %15363 = vst [vmem:[%s20560_s14] sm:$0xff] %v15361_v57  ;;  %15364 = vst [vmem:[%s20560_s14 + $0x8] sm:$0xff] %v15362_v13 }

</bundles_post_ra>
